<compile_context>
chip_gen: v5e
topology: v5e:2x2
jax: 0.10.0
libtpu: 0.0.40
codegen_flags: <defaults>
</compile_context>

<pallas_src>
import math

import jax
import jax.numpy as jnp
from jax import lax
from jax.experimental import pallas as pl
from jax.experimental.pallas import tpu as pltpu

# ---- small, module-consistent sizes (scaled down from the reference script) ----
B = 8        # batch
T = 12       # sequence length
D = 64       # input_size
H = 32       # hidden_size  (4H = 128 = exactly one vreg lane width)
P = 16       # proj_size (must be < hidden_size)
FC = 25      # fc_nodes
C = 7        # num_classes
EPS = 1e-5
INV_SQRT2 = 0.7071067811865476


def _erf(x):
    """Abramowitz & Stegun 7.1.26 erf (max abs err ~1.5e-7, fp32)."""
    p = 0.3275911
    a1, a2, a3, a4, a5 = (0.254829592, -0.284496736, 1.421413741,
                          -1.453152027, 1.061405429)
    ax = jnp.abs(x)
    t = 1.0 / (1.0 + p * ax)
    poly = ((((a5 * t + a4) * t + a3) * t + a2) * t + a1) * t
    y = 1.0 - poly * jnp.exp(-ax * ax)
    return jnp.where(x >= 0, y, -y)


def _gelu_exact(x):
    return 0.5 * x * (1.0 + _erf(x * INV_SQRT2))


# ----------------------------- fused Pallas kernel ------------------------------

def _lstm1_fused_kernel(x_ref, wih_ref, whh_ref, whr_ref, b_ref,
                        w1_ref, b1_ref, gamma_ref, beta_ref, w2_ref, b2_ref,
                        out_ref, gxf_ref, gxr_ref):
    """Bidirectional LSTM (proj_size) recurrence + Linear->BN->GELU->Linear head.

    x_ref:   (T*B, D)   time-major, flattened
    wih_ref: (2, D, 4H) pre-transposed W_ih, stacked over direction
    whh_ref: (2, P, 4H) pre-transposed W_hh
    whr_ref: (2, H, P)  pre-transposed W_hr (projection)
    b_ref:   (2, 1, 4H) b_ih + b_hh
    head:    w1 (2P, FC), b1/gamma/beta (1, FC), w2 (FC, C), b2 (1, C)
    out_ref: (B, C)
    gxf_ref/gxr_ref: (T*B, 4H) VMEM scratch for the hoisted input-gate slabs
    """
    # Hoisted input projection: one big MXU matmul per direction (off the
    # carry-dependent critical path), biases folded in here too.
    x2d = x_ref[...]                                                   # (T*B, D)
    gxf_ref[...] = jnp.dot(x2d, wih_ref[0],
                           preferred_element_type=jnp.float32) + b_ref[0]
    gxr_ref[...] = jnp.dot(x2d, wih_ref[1],
                           preferred_element_type=jnp.float32) + b_ref[1]

    whh_f, whh_r = whh_ref[0], whh_ref[1]
    whr_f, whr_r = whr_ref[0], whr_ref[1]

    hf = jnp.zeros((B, P), jnp.float32)
    cf = jnp.zeros((B, H), jnp.float32)
    hr = jnp.zeros((B, P), jnp.float32)
    cr = jnp.zeros((B, H), jnp.float32)

    # T is a small static constant: fully unroll; both direction chains interleave.
    # All scratch reads below are static sublane-aligned (8,128) slabs.
    for t in range(T):
        gf = gxf_ref[pl.ds(t * B, B), :] + jnp.dot(
            hf, whh_f, preferred_element_type=jnp.float32)             # (B, 4H)
        gr = gxr_ref[pl.ds((T - 1 - t) * B, B), :] + jnp.dot(
            hr, whh_r, preferred_element_type=jnp.float32)             # (B, 4H)
        # one full-tile sigmoid per direction; tanh only on the g-gate lanes
        sf = jax.nn.sigmoid(gf)
        sr = jax.nn.sigmoid(gr)
        cf = sf[:, H:2 * H] * cf + sf[:, 0:H] * jnp.tanh(gf[:, 2 * H:3 * H])
        cr = sr[:, H:2 * H] * cr + sr[:, 0:H] * jnp.tanh(gr[:, 2 * H:3 * H])
        hf = jnp.dot(sf[:, 3 * H:] * jnp.tanh(cf), whr_f,
                     preferred_element_type=jnp.float32)               # (B, P)
        hr = jnp.dot(sr[:, 3 * H:] * jnp.tanh(cr), whr_r,
                     preferred_element_type=jnp.float32)               # (B, P)

    # hn (2,B,P) -> permute(1,0,2) -> flatten(start=1)  ==  concat([h_fwd, h_rev], 1)
    h_flat = jnp.concatenate([hf, hr], axis=1)                         # (B, 2P)

    # ---- MLP head: Linear -> BatchNorm1d (batch stats) -> exact GELU -> Linear ----
    z = jnp.dot(h_flat, w1_ref[...], preferred_element_type=jnp.float32) + b1_ref[...]
    mean = jnp.mean(z, axis=0, keepdims=True)
    var = jnp.mean((z - mean) ** 2, axis=0, keepdims=True)             # biased variance
    zn = (z - mean) * lax.rsqrt(var + EPS) * gamma_ref[...] + beta_ref[...]
    a = _gelu_exact(zn)
    out_ref[...] = jnp.dot(a, w2_ref[...], preferred_element_type=jnp.float32) + b2_ref[...]
    # TODO(synk): BatchNorm1d running-stat (momentum) update is a training side effect
    # with no returned value; only the training-mode forward math is implemented.


# ------------------------------ wrappers ---------------------------------------

def prepare_kernel_params(p):
    """One-time weight layout prep (transpose / stack / bias-fuse), outside the hot path."""
    return {
        "wih": jnp.transpose(p["w_ih"], (0, 2, 1)),      # (2, D, 4H)
        "whh": jnp.transpose(p["w_hh"], (0, 2, 1)),      # (2, P, 4H)
        "whr": jnp.transpose(p["w_hr"], (0, 2, 1)),      # (2, H, P)
        "b": (p["b_ih"] + p["b_hh"])[:, None, :],        # (2, 1, 4H)
        "w1": p["w1"].T,                                 # (2P, FC)
        "b1": p["b1"][None, :],                          # (1, FC)
        "gamma": p["gamma"][None, :],                    # (1, FC)
        "beta": p["beta"][None, :],                      # (1, FC)
        "w2": p["w2"].T,                                 # (FC, C)
        "b2": p["b2"][None, :],                          # (1, C)
    }


@jax.jit
def lstm1_forward(x, kp):
    # time-major + flatten for the hoisted input projection: (B,T,D) -> (T*B, D)
    x2d = jnp.transpose(x, (1, 0, 2)).reshape(T * B, D)
    return pl.pallas_call(
        _lstm1_fused_kernel,
        out_shape=jax.ShapeDtypeStruct((B, C), jnp.float32),
        # No grid / BlockSpecs: all operands (~100 KB total incl. scratch) live in VMEM.
        scratch_shapes=[
            pltpu.VMEM((T * B, 4 * H), jnp.float32),     # hoisted forward input gates
            pltpu.VMEM((T * B, 4 * H), jnp.float32),     # hoisted reverse input gates
        ],
    )(x2d, kp["wih"], kp["whh"], kp["whr"], kp["b"],
      kp["w1"], kp["b1"], kp["gamma"], kp["beta"], kp["w2"], kp["b2"])


# --------------------------- pure-JAX reference ---------------------------------

def reference_forward(x, p):
    def run_dir(xs, d):
        h = jnp.zeros((B, P), jnp.float32)
        c = jnp.zeros((B, H), jnp.float32)
        for t in range(xs.shape[0]):
            gates = (xs[t] @ p["w_ih"][d].T + p["b_ih"][d]
                     + h @ p["w_hh"][d].T + p["b_hh"][d])
            i, f, g, o = jnp.split(gates, 4, axis=1)
            i, f, g, o = jax.nn.sigmoid(i), jax.nn.sigmoid(f), jnp.tanh(g), jax.nn.sigmoid(o)
            c = f * c + i * g
            h = (o * jnp.tanh(c)) @ p["w_hr"][d].T
        return h

    x_tm = jnp.transpose(x, (1, 0, 2))
    hn = jnp.stack([run_dir(x_tm, 0), run_dir(x_tm[::-1], 1)], axis=0)
    hf = jnp.transpose(hn, (1, 0, 2)).reshape(B, 2 * P)
    z = hf @ p["w1"].T + p["b1"]
    mean = z.mean(0, keepdims=True)
    var = ((z - mean) ** 2).mean(0, keepdims=True)
    zn = (z - mean) / jnp.sqrt(var + EPS) * p["gamma"] + p["beta"]
    a = jax.nn.gelu(zn, approximate=False)                 # true erf GELU
    return a @ p["w2"].T + p["b2"]


# ---------------------------------- main ----------------------------------------

def make_params(key):
    ks = jax.random.split(key, 12)
    k_lstm = 1.0 / math.sqrt(H)
    k_l1 = 1.0 / math.sqrt(2 * P)
    k_l2 = 1.0 / math.sqrt(FC)
    u = lambda kk, shape, scale: jax.random.uniform(kk, shape, jnp.float32, -scale, scale)
    return {
        # PyTorch-convention shapes (weight_ih_l0[_reverse] etc.), stacked over direction
        "w_ih": u(ks[0], (2, 4 * H, D), k_lstm),
        "w_hh": u(ks[1], (2, 4 * H, P), k_lstm),
        "w_hr": u(ks[2], (2, P, H), k_lstm),
        "b_ih": u(ks[3], (2, 4 * H), k_lstm),
        "b_hh": u(ks[4], (2, 4 * H), k_lstm),
        "w1": u(ks[5], (FC, 2 * P), k_l1),
        "b1": u(ks[6], (FC,), k_l1),
        "gamma": jnp.ones((FC,), jnp.float32),
        "beta": jnp.zeros((FC,), jnp.float32),
        "w2": u(ks[7], (C, FC), k_l2),
        "b2": u(ks[8], (C,), k_l2),
    }


if __name__ == "__main__":
    key = jax.random.PRNGKey(0)
    k_x, k_p = jax.random.split(key)
    x = jax.random.normal(k_x, (B, T, D), jnp.float32)
    params = make_params(k_p)
    kparams = prepare_kernel_params(params)   # one-time layout prep (not per-forward)

    out = jax.block_until_ready(lstm1_forward(x, kparams))
    ref = jax.block_until_ready(reference_forward(x, params))

    assert out.shape == (B, C), out.shape
    assert jnp.allclose(out, ref, rtol=1e-3, atol=1e-3), float(jnp.max(jnp.abs(out - ref)))
    print("KERNEL_OK")
</pallas_src>

<mosaic_0001>
module attributes {stable_mosaic.version = 11 : i64} {
  func.func @_lstm1_fused_kernel(%arg0: memref<96x64xf32, #tpu.memory_space<vmem>>, %arg1: memref<2x64x128xf32, #tpu.memory_space<vmem>>, %arg2: memref<2x16x128xf32, #tpu.memory_space<vmem>>, %arg3: memref<2x32x16xf32, #tpu.memory_space<vmem>>, %arg4: memref<2x1x128xf32, #tpu.memory_space<vmem>>, %arg5: memref<32x25xf32, #tpu.memory_space<vmem>>, %arg6: memref<1x25xf32, #tpu.memory_space<vmem>>, %arg7: memref<1x25xf32, #tpu.memory_space<vmem>>, %arg8: memref<1x25xf32, #tpu.memory_space<vmem>>, %arg9: memref<25x7xf32, #tpu.memory_space<vmem>>, %arg10: memref<1x7xf32, #tpu.memory_space<vmem>>, %arg11: memref<8x7xf32, #tpu.memory_space<vmem>>, %arg12: memref<96x128xf32, #tpu.memory_space<vmem>>, %arg13: memref<96x128xf32, #tpu.memory_space<vmem>>) attributes {dimension_semantics = [], scalar_prefetch = 0 : i64, scratch_operands = 2 : i64, tpu.core_type = #tpu.core_type<tc>} {
    %c0 = arith.constant 0 : index
    %c0_0 = arith.constant 0 : index
    %0 = vector.load %arg0[%c0, %c0_0] : memref<96x64xf32, #tpu.memory_space<vmem>>, vector<96x64xf32>
    %c0_1 = arith.constant 0 : index
    %c0_2 = arith.constant 0 : index
    %c0_3 = arith.constant 0 : index
    %1 = vector.load %arg1[%c0_1, %c0_2, %c0_3] : memref<2x64x128xf32, #tpu.memory_space<vmem>>, vector<1x64x128xf32>
    %2 = vector.shape_cast %1 : vector<1x64x128xf32> to vector<64x128xf32>
    %cst = arith.constant dense<0.000000e+00> : vector<96x128xf32>
    %3 = tpu.matmul %0, %2, %cst {dimension_numbers = #tpu.dot_dimension_numbers<[1], [0], [0], [1], [0, 0, 1, 1], [], []>} : vector<96x64xf32>, vector<64x128xf32>, vector<96x128xf32> -> vector<96x128xf32>
    %c0_4 = arith.constant 0 : index
    %c0_5 = arith.constant 0 : index
    %c0_6 = arith.constant 0 : index
    %4 = vector.load %arg4[%c0_4, %c0_5, %c0_6] : memref<2x1x128xf32, #tpu.memory_space<vmem>>, vector<1x1x128xf32>
    %5 = vector.shape_cast %4 : vector<1x1x128xf32> to vector<1x128xf32>
    %6 = vector.broadcast %5 : vector<1x128xf32> to vector<96x128xf32>
    %7 = arith.addf %3, %6 : vector<96x128xf32>
    %c0_7 = arith.constant 0 : index
    %c0_8 = arith.constant 0 : index
    %8 = vector.load %arg12[%c0_7, %c0_8] : memref<96x128xf32, #tpu.memory_space<vmem>>, vector<96x128xf32>
    tpu.vector_store %arg12[%c0_7, %c0_8], %7 {strides = array<i32>} : memref<96x128xf32, #tpu.memory_space<vmem>>, vector<96x128xf32>,
    %c1 = arith.constant 1 : index
    %c0_9 = arith.constant 0 : index
    %c0_10 = arith.constant 0 : index
    %9 = vector.load %arg1[%c1, %c0_9, %c0_10] : memref<2x64x128xf32, #tpu.memory_space<vmem>>, vector<1x64x128xf32>
    %10 = vector.shape_cast %9 : vector<1x64x128xf32> to vector<64x128xf32>
    %cst_11 = arith.constant dense<0.000000e+00> : vector<96x128xf32>
    %11 = tpu.matmul %0, %10, %cst_11 {dimension_numbers = #tpu.dot_dimension_numbers<[1], [0], [0], [1], [0, 0, 1, 1], [], []>} : vector<96x64xf32>, vector<64x128xf32>, vector<96x128xf32> -> vector<96x128xf32>
    %c1_12 = arith.constant 1 : index
    %c0_13 = arith.constant 0 : index
    %c0_14 = arith.constant 0 : index
    %12 = vector.load %arg4[%c1_12, %c0_13, %c0_14] : memref<2x1x128xf32, #tpu.memory_space<vmem>>, vector<1x1x128xf32>
    %13 = vector.shape_cast %12 : vector<1x1x128xf32> to vector<1x128xf32>
    %14 = vector.broadcast %13 : vector<1x128xf32> to vector<96x128xf32>
    %15 = arith.addf %11, %14 : vector<96x128xf32>
    %c0_15 = arith.constant 0 : index
    %c0_16 = arith.constant 0 : index
    %16 = vector.load %arg13[%c0_15, %c0_16] : memref<96x128xf32, #tpu.memory_space<vmem>>, vector<96x128xf32>
    tpu.vector_store %arg13[%c0_15, %c0_16], %15 {strides = array<i32>} : memref<96x128xf32, #tpu.memory_space<vmem>>, vector<96x128xf32>,
    %c0_17 = arith.constant 0 : index
    %c0_18 = arith.constant 0 : index
    %c0_19 = arith.constant 0 : index
    %17 = vector.load %arg2[%c0_17, %c0_18, %c0_19] : memref<2x16x128xf32, #tpu.memory_space<vmem>>, vector<1x16x128xf32>
    %18 = vector.shape_cast %17 : vector<1x16x128xf32> to vector<16x128xf32>
    %c1_20 = arith.constant 1 : index
    %c0_21 = arith.constant 0 : index
    %c0_22 = arith.constant 0 : index
    %19 = vector.load %arg2[%c1_20, %c0_21, %c0_22] : memref<2x16x128xf32, #tpu.memory_space<vmem>>, vector<1x16x128xf32>
    %20 = vector.shape_cast %19 : vector<1x16x128xf32> to vector<16x128xf32>
    %c0_23 = arith.constant 0 : index
    %c0_24 = arith.constant 0 : index
    %c0_25 = arith.constant 0 : index
    %21 = vector.load %arg3[%c0_23, %c0_24, %c0_25] : memref<2x32x16xf32, #tpu.memory_space<vmem>>, vector<1x32x16xf32>
    %22 = vector.shape_cast %21 : vector<1x32x16xf32> to vector<32x16xf32>
    %c1_26 = arith.constant 1 : index
    %c0_27 = arith.constant 0 : index
    %c0_28 = arith.constant 0 : index
    %23 = vector.load %arg3[%c1_26, %c0_27, %c0_28] : memref<2x32x16xf32, #tpu.memory_space<vmem>>, vector<1x32x16xf32>
    %24 = vector.shape_cast %23 : vector<1x32x16xf32> to vector<32x16xf32>
    %cst_29 = arith.constant 0.000000e+00 : f32
    %25 = vector.broadcast %cst_29 : f32 to vector<8x16xf32>
    %cst_30 = arith.constant 0.000000e+00 : f32
    %26 = vector.broadcast %cst_30 : f32 to vector<8x32xf32>
    %cst_31 = arith.constant 0.000000e+00 : f32
    %27 = vector.broadcast %cst_31 : f32 to vector<8x16xf32>
    %cst_32 = arith.constant 0.000000e+00 : f32
    %28 = vector.broadcast %cst_32 : f32 to vector<8x32xf32>
    %c0_33 = arith.constant 0 : index
    %c0_34 = arith.constant 0 : index
    %29 = vector.load %arg12[%c0_33, %c0_34] : memref<96x128xf32, #tpu.memory_space<vmem>>, vector<8x128xf32>
    %cst_35 = arith.constant dense<0.000000e+00> : vector<8x128xf32>
    %30 = tpu.matmul %25, %18, %cst_35 {dimension_numbers = #tpu.dot_dimension_numbers<[1], [0], [0], [1], [0, 0, 1, 1], [], []>} : vector<8x16xf32>, vector<16x128xf32>, vector<8x128xf32> -> vector<8x128xf32>
    %31 = arith.addf %29, %30 : vector<8x128xf32>
    %c88 = arith.constant 88 : index
    %c0_36 = arith.constant 0 : index
    %32 = vector.load %arg13[%c88, %c0_36] : memref<96x128xf32, #tpu.memory_space<vmem>>, vector<8x128xf32>
    %cst_37 = arith.constant dense<0.000000e+00> : vector<8x128xf32>
    %33 = tpu.matmul %27, %20, %cst_37 {dimension_numbers = #tpu.dot_dimension_numbers<[1], [0], [0], [1], [0, 0, 1, 1], [], []>} : vector<8x16xf32>, vector<16x128xf32>, vector<8x128xf32> -> vector<8x128xf32>
    %34 = arith.addf %32, %33 : vector<8x128xf32>
    %35 = arith.negf %31 : vector<8x128xf32>
    %36 = math.exp %35 : vector<8x128xf32>
    %cst_38 = arith.constant 1.000000e+00 : f32
    %37 = vector.broadcast %cst_38 : f32 to vector<8x128xf32>
    %38 = arith.addf %37, %36 : vector<8x128xf32>
    %39 = arith.divf %37, %38 : vector<8x128xf32>
    %40 = arith.negf %34 : vector<8x128xf32>
    %41 = math.exp %40 : vector<8x128xf32>
    %cst_39 = arith.constant 1.000000e+00 : f32
    %42 = vector.broadcast %cst_39 : f32 to vector<8x128xf32>
    %43 = arith.addf %42, %41 : vector<8x128xf32>
    %44 = arith.divf %42, %43 : vector<8x128xf32>
    %45 = vector.extract_strided_slice %39 {offsets = [0, 32], sizes = [8, 32], strides = [1, 1]} : vector<8x128xf32> to vector<8x32xf32>
    %46 = arith.mulf %45, %26 : vector<8x32xf32>
    %47 = vector.extract_strided_slice %39 {offsets = [0, 0], sizes = [8, 32], strides = [1, 1]} : vector<8x128xf32> to vector<8x32xf32>
    %48 = vector.extract_strided_slice %31 {offsets = [0, 64], sizes = [8, 32], strides = [1, 1]} : vector<8x128xf32> to vector<8x32xf32>
    %49 = math.tanh %48 : vector<8x32xf32>
    %50 = arith.mulf %47, %49 : vector<8x32xf32>
    %51 = arith.addf %46, %50 : vector<8x32xf32>
    %52 = vector.extract_strided_slice %44 {offsets = [0, 32], sizes = [8, 32], strides = [1, 1]} : vector<8x128xf32> to vector<8x32xf32>
    %53 = arith.mulf %52, %28 : vector<8x32xf32>
    %54 = vector.extract_strided_slice %44 {offsets = [0, 0], sizes = [8, 32], strides = [1, 1]} : vector<8x128xf32> to vector<8x32xf32>
    %55 = vector.extract_strided_slice %34 {offsets = [0, 64], sizes = [8, 32], strides = [1, 1]} : vector<8x128xf32> to vector<8x32xf32>
    %56 = math.tanh %55 : vector<8x32xf32>
    %57 = arith.mulf %54, %56 : vector<8x32xf32>
    %58 = arith.addf %53, %57 : vector<8x32xf32>
    %59 = vector.extract_strided_slice %39 {offsets = [0, 96], sizes = [8, 32], strides = [1, 1]} : vector<8x128xf32> to vector<8x32xf32>
    %60 = math.tanh %51 : vector<8x32xf32>
    %61 = arith.mulf %59, %60 : vector<8x32xf32>
    %cst_40 = arith.constant dense<0.000000e+00> : vector<8x16xf32>
    %62 = tpu.matmul %61, %22, %cst_40 {dimension_numbers = #tpu.dot_dimension_numbers<[1], [0], [0], [1], [0, 0, 1, 1], [], []>} : vector<8x32xf32>, vector<32x16xf32>, vector<8x16xf32> -> vector<8x16xf32>
    %63 = vector.extract_strided_slice %44 {offsets = [0, 96], sizes = [8, 32], strides = [1, 1]} : vector<8x128xf32> to vector<8x32xf32>
    %64 = math.tanh %58 : vector<8x32xf32>
    %65 = arith.mulf %63, %64 : vector<8x32xf32>
    %cst_41 = arith.constant dense<0.000000e+00> : vector<8x16xf32>
    %66 = tpu.matmul %65, %24, %cst_41 {dimension_numbers = #tpu.dot_dimension_numbers<[1], [0], [0], [1], [0, 0, 1, 1], [], []>} : vector<8x32xf32>, vector<32x16xf32>, vector<8x16xf32> -> vector<8x16xf32>
    %c8 = arith.constant 8 : index
    %c0_42 = arith.constant 0 : index
    %67 = vector.load %arg12[%c8, %c0_42] : memref<96x128xf32, #tpu.memory_space<vmem>>, vector<8x128xf32>
    %cst_43 = arith.constant dense<0.000000e+00> : vector<8x128xf32>
    %68 = tpu.matmul %62, %18, %cst_43 {dimension_numbers = #tpu.dot_dimension_numbers<[1], [0], [0], [1], [0, 0, 1, 1], [], []>} : vector<8x16xf32>, vector<16x128xf32>, vector<8x128xf32> -> vector<8x128xf32>
    %69 = arith.addf %67, %68 : vector<8x128xf32>
    %c80 = arith.constant 80 : index
    %c0_44 = arith.constant 0 : index
    %70 = vector.load %arg13[%c80, %c0_44] : memref<96x128xf32, #tpu.memory_space<vmem>>, vector<8x128xf32>
    %cst_45 = arith.constant dense<0.000000e+00> : vector<8x128xf32>
    %71 = tpu.matmul %66, %20, %cst_45 {dimension_numbers = #tpu.dot_dimension_numbers<[1], [0], [0], [1], [0, 0, 1, 1], [], []>} : vector<8x16xf32>, vector<16x128xf32>, vector<8x128xf32> -> vector<8x128xf32>
    %72 = arith.addf %70, %71 : vector<8x128xf32>
    %73 = arith.negf %69 : vector<8x128xf32>
    %74 = math.exp %73 : vector<8x128xf32>
    %cst_46 = arith.constant 1.000000e+00 : f32
    %75 = vector.broadcast %cst_46 : f32 to vector<8x128xf32>
    %76 = arith.addf %75, %74 : vector<8x128xf32>
    %77 = arith.divf %75, %76 : vector<8x128xf32>
    %78 = arith.negf %72 : vector<8x128xf32>
    %79 = math.exp %78 : vector<8x128xf32>
    %cst_47 = arith.constant 1.000000e+00 : f32
    %80 = vector.broadcast %cst_47 : f32 to vector<8x128xf32>
    %81 = arith.addf %80, %79 : vector<8x128xf32>
    %82 = arith.divf %80, %81 : vector<8x128xf32>
    %83 = vector.extract_strided_slice %77 {offsets = [0, 32], sizes = [8, 32], strides = [1, 1]} : vector<8x128xf32> to vector<8x32xf32>
    %84 = arith.mulf %83, %51 : vector<8x32xf32>
    %85 = vector.extract_strided_slice %77 {offsets = [0, 0], sizes = [8, 32], strides = [1, 1]} : vector<8x128xf32> to vector<8x32xf32>
    %86 = vector.extract_strided_slice %69 {offsets = [0, 64], sizes = [8, 32], strides = [1, 1]} : vector<8x128xf32> to vector<8x32xf32>
    %87 = math.tanh %86 : vector<8x32xf32>
    %88 = arith.mulf %85, %87 : vector<8x32xf32>
    %89 = arith.addf %84, %88 : vector<8x32xf32>
    %90 = vector.extract_strided_slice %82 {offsets = [0, 32], sizes = [8, 32], strides = [1, 1]} : vector<8x128xf32> to vector<8x32xf32>
    %91 = arith.mulf %90, %58 : vector<8x32xf32>
    %92 = vector.extract_strided_slice %82 {offsets = [0, 0], sizes = [8, 32], strides = [1, 1]} : vector<8x128xf32> to vector<8x32xf32>
    %93 = vector.extract_strided_slice %72 {offsets = [0, 64], sizes = [8, 32], strides = [1, 1]} : vector<8x128xf32> to vector<8x32xf32>
    %94 = math.tanh %93 : vector<8x32xf32>
    %95 = arith.mulf %92, %94 : vector<8x32xf32>
    %96 = arith.addf %91, %95 : vector<8x32xf32>
    %97 = vector.extract_strided_slice %77 {offsets = [0, 96], sizes = [8, 32], strides = [1, 1]} : vector<8x128xf32> to vector<8x32xf32>
    %98 = math.tanh %89 : vector<8x32xf32>
    %99 = arith.mulf %97, %98 : vector<8x32xf32>
    %cst_48 = arith.constant dense<0.000000e+00> : vector<8x16xf32>
    %100 = tpu.matmul %99, %22, %cst_48 {dimension_numbers = #tpu.dot_dimension_numbers<[1], [0], [0], [1], [0, 0, 1, 1], [], []>} : vector<8x32xf32>, vector<32x16xf32>, vector<8x16xf32> -> vector<8x16xf32>
    %101 = vector.extract_strided_slice %82 {offsets = [0, 96], sizes = [8, 32], strides = [1, 1]} : vector<8x128xf32> to vector<8x32xf32>
    %102 = math.tanh %96 : vector<8x32xf32>
    %103 = arith.mulf %101, %102 : vector<8x32xf32>
    %cst_49 = arith.constant dense<0.000000e+00> : vector<8x16xf32>
    %104 = tpu.matmul %103, %24, %cst_49 {dimension_numbers = #tpu.dot_dimension_numbers<[1], [0], [0], [1], [0, 0, 1, 1], [], []>} : vector<8x32xf32>, vector<32x16xf32>, vector<8x16xf32> -> vector<8x16xf32>
    %c16 = arith.constant 16 : index
    %c0_50 = arith.constant 0 : index
    %105 = vector.load %arg12[%c16, %c0_50] : memref<96x128xf32, #tpu.memory_space<vmem>>, vector<8x128xf32>
    %cst_51 = arith.constant dense<0.000000e+00> : vector<8x128xf32>
    %106 = tpu.matmul %100, %18, %cst_51 {dimension_numbers = #tpu.dot_dimension_numbers<[1], [0], [0], [1], [0, 0, 1, 1], [], []>} : vector<8x16xf32>, vector<16x128xf32>, vector<8x128xf32> -> vector<8x128xf32>
    %107 = arith.addf %105, %106 : vector<8x128xf32>
    %c72 = arith.constant 72 : index
    %c0_52 = arith.constant 0 : index
    %108 = vector.load %arg13[%c72, %c0_52] : memref<96x128xf32, #tpu.memory_space<vmem>>, vector<8x128xf32>
    %cst_53 = arith.constant dense<0.000000e+00> : vector<8x128xf32>
    %109 = tpu.matmul %104, %20, %cst_53 {dimension_numbers = #tpu.dot_dimension_numbers<[1], [0], [0], [1], [0, 0, 1, 1], [], []>} : vector<8x16xf32>, vector<16x128xf32>, vector<8x128xf32> -> vector<8x128xf32>
    %110 = arith.addf %108, %109 : vector<8x128xf32>
    %111 = arith.negf %107 : vector<8x128xf32>
    %112 = math.exp %111 : vector<8x128xf32>
    %cst_54 = arith.constant 1.000000e+00 : f32
    %113 = vector.broadcast %cst_54 : f32 to vector<8x128xf32>
    %114 = arith.addf %113, %112 : vector<8x128xf32>
    %115 = arith.divf %113, %114 : vector<8x128xf32>
    %116 = arith.negf %110 : vector<8x128xf32>
    %117 = math.exp %116 : vector<8x128xf32>
    %cst_55 = arith.constant 1.000000e+00 : f32
    %118 = vector.broadcast %cst_55 : f32 to vector<8x128xf32>
    %119 = arith.addf %118, %117 : vector<8x128xf32>
    %120 = arith.divf %118, %119 : vector<8x128xf32>
    %121 = vector.extract_strided_slice %115 {offsets = [0, 32], sizes = [8, 32], strides = [1, 1]} : vector<8x128xf32> to vector<8x32xf32>
    %122 = arith.mulf %121, %89 : vector<8x32xf32>
    %123 = vector.extract_strided_slice %115 {offsets = [0, 0], sizes = [8, 32], strides = [1, 1]} : vector<8x128xf32> to vector<8x32xf32>
    %124 = vector.extract_strided_slice %107 {offsets = [0, 64], sizes = [8, 32], strides = [1, 1]} : vector<8x128xf32> to vector<8x32xf32>
    %125 = math.tanh %124 : vector<8x32xf32>
    %126 = arith.mulf %123, %125 : vector<8x32xf32>
    %127 = arith.addf %122, %126 : vector<8x32xf32>
    %128 = vector.extract_strided_slice %120 {offsets = [0, 32], sizes = [8, 32], strides = [1, 1]} : vector<8x128xf32> to vector<8x32xf32>
    %129 = arith.mulf %128, %96 : vector<8x32xf32>
    %130 = vector.extract_strided_slice %120 {offsets = [0, 0], sizes = [8, 32], strides = [1, 1]} : vector<8x128xf32> to vector<8x32xf32>
    %131 = vector.extract_strided_slice %110 {offsets = [0, 64], sizes = [8, 32], strides = [1, 1]} : vector<8x128xf32> to vector<8x32xf32>
    %132 = math.tanh %131 : vector<8x32xf32>
    %133 = arith.mulf %130, %132 : vector<8x32xf32>
    %134 = arith.addf %129, %133 : vector<8x32xf32>
    %135 = vector.extract_strided_slice %115 {offsets = [0, 96], sizes = [8, 32], strides = [1, 1]} : vector<8x128xf32> to vector<8x32xf32>
    %136 = math.tanh %127 : vector<8x32xf32>
    %137 = arith.mulf %135, %136 : vector<8x32xf32>
    %cst_56 = arith.constant dense<0.000000e+00> : vector<8x16xf32>
    %138 = tpu.matmul %137, %22, %cst_56 {dimension_numbers = #tpu.dot_dimension_numbers<[1], [0], [0], [1], [0, 0, 1, 1], [], []>} : vector<8x32xf32>, vector<32x16xf32>, vector<8x16xf32> -> vector<8x16xf32>
    %139 = vector.extract_strided_slice %120 {offsets = [0, 96], sizes = [8, 32], strides = [1, 1]} : vector<8x128xf32> to vector<8x32xf32>
    %140 = math.tanh %134 : vector<8x32xf32>
    %141 = arith.mulf %139, %140 : vector<8x32xf32>
    %cst_57 = arith.constant dense<0.000000e+00> : vector<8x16xf32>
    %142 = tpu.matmul %141, %24, %cst_57 {dimension_numbers = #tpu.dot_dimension_numbers<[1], [0], [0], [1], [0, 0, 1, 1], [], []>} : vector<8x32xf32>, vector<32x16xf32>, vector<8x16xf32> -> vector<8x16xf32>
    %c24 = arith.constant 24 : index
    %c0_58 = arith.constant 0 : index
    %143 = vector.load %arg12[%c24, %c0_58] : memref<96x128xf32, #tpu.memory_space<vmem>>, vector<8x128xf32>
    %cst_59 = arith.constant dense<0.000000e+00> : vector<8x128xf32>
    %144 = tpu.matmul %138, %18, %cst_59 {dimension_numbers = #tpu.dot_dimension_numbers<[1], [0], [0], [1], [0, 0, 1, 1], [], []>} : vector<8x16xf32>, vector<16x128xf32>, vector<8x128xf32> -> vector<8x128xf32>
    %145 = arith.addf %143, %144 : vector<8x128xf32>
    %c64 = arith.constant 64 : index
    %c0_60 = arith.constant 0 : index
    %146 = vector.load %arg13[%c64, %c0_60] : memref<96x128xf32, #tpu.memory_space<vmem>>, vector<8x128xf32>
    %cst_61 = arith.constant dense<0.000000e+00> : vector<8x128xf32>
    %147 = tpu.matmul %142, %20, %cst_61 {dimension_numbers = #tpu.dot_dimension_numbers<[1], [0], [0], [1], [0, 0, 1, 1], [], []>} : vector<8x16xf32>, vector<16x128xf32>, vector<8x128xf32> -> vector<8x128xf32>
    %148 = arith.addf %146, %147 : vector<8x128xf32>
    %149 = arith.negf %145 : vector<8x128xf32>
    %150 = math.exp %149 : vector<8x128xf32>
    %cst_62 = arith.constant 1.000000e+00 : f32
    %151 = vector.broadcast %cst_62 : f32 to vector<8x128xf32>
    %152 = arith.addf %151, %150 : vector<8x128xf32>
    %153 = arith.divf %151, %152 : vector<8x128xf32>
    %154 = arith.negf %148 : vector<8x128xf32>
    %155 = math.exp %154 : vector<8x128xf32>
    %cst_63 = arith.constant 1.000000e+00 : f32
    %156 = vector.broadcast %cst_63 : f32 to vector<8x128xf32>
    %157 = arith.addf %156, %155 : vector<8x128xf32>
    %158 = arith.divf %156, %157 : vector<8x128xf32>
    %159 = vector.extract_strided_slice %153 {offsets = [0, 32], sizes = [8, 32], strides = [1, 1]} : vector<8x128xf32> to vector<8x32xf32>
    %160 = arith.mulf %159, %127 : vector<8x32xf32>
    %161 = vector.extract_strided_slice %153 {offsets = [0, 0], sizes = [8, 32], strides = [1, 1]} : vector<8x128xf32> to vector<8x32xf32>
    %162 = vector.extract_strided_slice %145 {offsets = [0, 64], sizes = [8, 32], strides = [1, 1]} : vector<8x128xf32> to vector<8x32xf32>
    %163 = math.tanh %162 : vector<8x32xf32>
    %164 = arith.mulf %161, %163 : vector<8x32xf32>
    %165 = arith.addf %160, %164 : vector<8x32xf32>
    %166 = vector.extract_strided_slice %158 {offsets = [0, 32], sizes = [8, 32], strides = [1, 1]} : vector<8x128xf32> to vector<8x32xf32>
    %167 = arith.mulf %166, %134 : vector<8x32xf32>
    %168 = vector.extract_strided_slice %158 {offsets = [0, 0], sizes = [8, 32], strides = [1, 1]} : vector<8x128xf32> to vector<8x32xf32>
    %169 = vector.extract_strided_slice %148 {offsets = [0, 64], sizes = [8, 32], strides = [1, 1]} : vector<8x128xf32> to vector<8x32xf32>
    %170 = math.tanh %169 : vector<8x32xf32>
    %171 = arith.mulf %168, %170 : vector<8x32xf32>
    %172 = arith.addf %167, %171 : vector<8x32xf32>
    %173 = vector.extract_strided_slice %153 {offsets = [0, 96], sizes = [8, 32], strides = [1, 1]} : vector<8x128xf32> to vector<8x32xf32>
    %174 = math.tanh %165 : vector<8x32xf32>
    %175 = arith.mulf %173, %174 : vector<8x32xf32>
    %cst_64 = arith.constant dense<0.000000e+00> : vector<8x16xf32>
    %176 = tpu.matmul %175, %22, %cst_64 {dimension_numbers = #tpu.dot_dimension_numbers<[1], [0], [0], [1], [0, 0, 1, 1], [], []>} : vector<8x32xf32>, vector<32x16xf32>, vector<8x16xf32> -> vector<8x16xf32>
    %177 = vector.extract_strided_slice %158 {offsets = [0, 96], sizes = [8, 32], strides = [1, 1]} : vector<8x128xf32> to vector<8x32xf32>
    %178 = math.tanh %172 : vector<8x32xf32>
    %179 = arith.mulf %177, %178 : vector<8x32xf32>
    %cst_65 = arith.constant dense<0.000000e+00> : vector<8x16xf32>
    %180 = tpu.matmul %179, %24, %cst_65 {dimension_numbers = #tpu.dot_dimension_numbers<[1], [0], [0], [1], [0, 0, 1, 1], [], []>} : vector<8x32xf32>, vector<32x16xf32>, vector<8x16xf32> -> vector<8x16xf32>
    %c32 = arith.constant 32 : index
    %c0_66 = arith.constant 0 : index
    %181 = vector.load %arg12[%c32, %c0_66] : memref<96x128xf32, #tpu.memory_space<vmem>>, vector<8x128xf32>
    %cst_67 = arith.constant dense<0.000000e+00> : vector<8x128xf32>
    %182 = tpu.matmul %176, %18, %cst_67 {dimension_numbers = #tpu.dot_dimension_numbers<[1], [0], [0], [1], [0, 0, 1, 1], [], []>} : vector<8x16xf32>, vector<16x128xf32>, vector<8x128xf32> -> vector<8x128xf32>
    %183 = arith.addf %181, %182 : vector<8x128xf32>
    %c56 = arith.constant 56 : index
    %c0_68 = arith.constant 0 : index
    %184 = vector.load %arg13[%c56, %c0_68] : memref<96x128xf32, #tpu.memory_space<vmem>>, vector<8x128xf32>
    %cst_69 = arith.constant dense<0.000000e+00> : vector<8x128xf32>
    %185 = tpu.matmul %180, %20, %cst_69 {dimension_numbers = #tpu.dot_dimension_numbers<[1], [0], [0], [1], [0, 0, 1, 1], [], []>} : vector<8x16xf32>, vector<16x128xf32>, vector<8x128xf32> -> vector<8x128xf32>
    %186 = arith.addf %184, %185 : vector<8x128xf32>
    %187 = arith.negf %183 : vector<8x128xf32>
    %188 = math.exp %187 : vector<8x128xf32>
    %cst_70 = arith.constant 1.000000e+00 : f32
    %189 = vector.broadcast %cst_70 : f32 to vector<8x128xf32>
    %190 = arith.addf %189, %188 : vector<8x128xf32>
    %191 = arith.divf %189, %190 : vector<8x128xf32>
    %192 = arith.negf %186 : vector<8x128xf32>
    %193 = math.exp %192 : vector<8x128xf32>
    %cst_71 = arith.constant 1.000000e+00 : f32
    %194 = vector.broadcast %cst_71 : f32 to vector<8x128xf32>
    %195 = arith.addf %194, %193 : vector<8x128xf32>
    %196 = arith.divf %194, %195 : vector<8x128xf32>
    %197 = vector.extract_strided_slice %191 {offsets = [0, 32], sizes = [8, 32], strides = [1, 1]} : vector<8x128xf32> to vector<8x32xf32>
    %198 = arith.mulf %197, %165 : vector<8x32xf32>
    %199 = vector.extract_strided_slice %191 {offsets = [0, 0], sizes = [8, 32], strides = [1, 1]} : vector<8x128xf32> to vector<8x32xf32>
    %200 = vector.extract_strided_slice %183 {offsets = [0, 64], sizes = [8, 32], strides = [1, 1]} : vector<8x128xf32> to vector<8x32xf32>
    %201 = math.tanh %200 : vector<8x32xf32>
    %202 = arith.mulf %199, %201 : vector<8x32xf32>
    %203 = arith.addf %198, %202 : vector<8x32xf32>
    %204 = vector.extract_strided_slice %196 {offsets = [0, 32], sizes = [8, 32], strides = [1, 1]} : vector<8x128xf32> to vector<8x32xf32>
    %205 = arith.mulf %204, %172 : vector<8x32xf32>
    %206 = vector.extract_strided_slice %196 {offsets = [0, 0], sizes = [8, 32], strides = [1, 1]} : vector<8x128xf32> to vector<8x32xf32>
    %207 = vector.extract_strided_slice %186 {offsets = [0, 64], sizes = [8, 32], strides = [1, 1]} : vector<8x128xf32> to vector<8x32xf32>
    %208 = math.tanh %207 : vector<8x32xf32>
    %209 = arith.mulf %206, %208 : vector<8x32xf32>
    %210 = arith.addf %205, %209 : vector<8x32xf32>
    %211 = vector.extract_strided_slice %191 {offsets = [0, 96], sizes = [8, 32], strides = [1, 1]} : vector<8x128xf32> to vector<8x32xf32>
    %212 = math.tanh %203 : vector<8x32xf32>
    %213 = arith.mulf %211, %212 : vector<8x32xf32>
    %cst_72 = arith.constant dense<0.000000e+00> : vector<8x16xf32>
    %214 = tpu.matmul %213, %22, %cst_72 {dimension_numbers = #tpu.dot_dimension_numbers<[1], [0], [0], [1], [0, 0, 1, 1], [], []>} : vector<8x32xf32>, vector<32x16xf32>, vector<8x16xf32> -> vector<8x16xf32>
    %215 = vector.extract_strided_slice %196 {offsets = [0, 96], sizes = [8, 32], strides = [1, 1]} : vector<8x128xf32> to vector<8x32xf32>
    %216 = math.tanh %210 : vector<8x32xf32>
    %217 = arith.mulf %215, %216 : vector<8x32xf32>
    %cst_73 = arith.constant dense<0.000000e+00> : vector<8x16xf32>
    %218 = tpu.matmul %217, %24, %cst_73 {dimension_numbers = #tpu.dot_dimension_numbers<[1], [0], [0], [1], [0, 0, 1, 1], [], []>} : vector<8x32xf32>, vector<32x16xf32>, vector<8x16xf32> -> vector<8x16xf32>
    %c40 = arith.constant 40 : index
    %c0_74 = arith.constant 0 : index
    %219 = vector.load %arg12[%c40, %c0_74] : memref<96x128xf32, #tpu.memory_space<vmem>>, vector<8x128xf32>
    %cst_75 = arith.constant dense<0.000000e+00> : vector<8x128xf32>
    %220 = tpu.matmul %214, %18, %cst_75 {dimension_numbers = #tpu.dot_dimension_numbers<[1], [0], [0], [1], [0, 0, 1, 1], [], []>} : vector<8x16xf32>, vector<16x128xf32>, vector<8x128xf32> -> vector<8x128xf32>
    %221 = arith.addf %219, %220 : vector<8x128xf32>
    %c48 = arith.constant 48 : index
    %c0_76 = arith.constant 0 : index
    %222 = vector.load %arg13[%c48, %c0_76] : memref<96x128xf32, #tpu.memory_space<vmem>>, vector<8x128xf32>
    %cst_77 = arith.constant dense<0.000000e+00> : vector<8x128xf32>
    %223 = tpu.matmul %218, %20, %cst_77 {dimension_numbers = #tpu.dot_dimension_numbers<[1], [0], [0], [1], [0, 0, 1, 1], [], []>} : vector<8x16xf32>, vector<16x128xf32>, vector<8x128xf32> -> vector<8x128xf32>
    %224 = arith.addf %222, %223 : vector<8x128xf32>
    %225 = arith.negf %221 : vector<8x128xf32>
    %226 = math.exp %225 : vector<8x128xf32>
    %cst_78 = arith.constant 1.000000e+00 : f32
    %227 = vector.broadcast %cst_78 : f32 to vector<8x128xf32>
    %228 = arith.addf %227, %226 : vector<8x128xf32>
    %229 = arith.divf %227, %228 : vector<8x128xf32>
    %230 = arith.negf %224 : vector<8x128xf32>
    %231 = math.exp %230 : vector<8x128xf32>
    %cst_79 = arith.constant 1.000000e+00 : f32
    %232 = vector.broadcast %cst_79 : f32 to vector<8x128xf32>
    %233 = arith.addf %232, %231 : vector<8x128xf32>
    %234 = arith.divf %232, %233 : vector<8x128xf32>
    %235 = vector.extract_strided_slice %229 {offsets = [0, 32], sizes = [8, 32], strides = [1, 1]} : vector<8x128xf32> to vector<8x32xf32>
    %236 = arith.mulf %235, %203 : vector<8x32xf32>
    %237 = vector.extract_strided_slice %229 {offsets = [0, 0], sizes = [8, 32], strides = [1, 1]} : vector<8x128xf32> to vector<8x32xf32>
    %238 = vector.extract_strided_slice %221 {offsets = [0, 64], sizes = [8, 32], strides = [1, 1]} : vector<8x128xf32> to vector<8x32xf32>
    %239 = math.tanh %238 : vector<8x32xf32>
    %240 = arith.mulf %237, %239 : vector<8x32xf32>
    %241 = arith.addf %236, %240 : vector<8x32xf32>
    %242 = vector.extract_strided_slice %234 {offsets = [0, 32], sizes = [8, 32], strides = [1, 1]} : vector<8x128xf32> to vector<8x32xf32>
    %243 = arith.mulf %242, %210 : vector<8x32xf32>
    %244 = vector.extract_strided_slice %234 {offsets = [0, 0], sizes = [8, 32], strides = [1, 1]} : vector<8x128xf32> to vector<8x32xf32>
    %245 = vector.extract_strided_slice %224 {offsets = [0, 64], sizes = [8, 32], strides = [1, 1]} : vector<8x128xf32> to vector<8x32xf32>
    %246 = math.tanh %245 : vector<8x32xf32>
    %247 = arith.mulf %244, %246 : vector<8x32xf32>
    %248 = arith.addf %243, %247 : vector<8x32xf32>
    %249 = vector.extract_strided_slice %229 {offsets = [0, 96], sizes = [8, 32], strides = [1, 1]} : vector<8x128xf32> to vector<8x32xf32>
    %250 = math.tanh %241 : vector<8x32xf32>
    %251 = arith.mulf %249, %250 : vector<8x32xf32>
    %cst_80 = arith.constant dense<0.000000e+00> : vector<8x16xf32>
    %252 = tpu.matmul %251, %22, %cst_80 {dimension_numbers = #tpu.dot_dimension_numbers<[1], [0], [0], [1], [0, 0, 1, 1], [], []>} : vector<8x32xf32>, vector<32x16xf32>, vector<8x16xf32> -> vector<8x16xf32>
    %253 = vector.extract_strided_slice %234 {offsets = [0, 96], sizes = [8, 32], strides = [1, 1]} : vector<8x128xf32> to vector<8x32xf32>
    %254 = math.tanh %248 : vector<8x32xf32>
    %255 = arith.mulf %253, %254 : vector<8x32xf32>
    %cst_81 = arith.constant dense<0.000000e+00> : vector<8x16xf32>
    %256 = tpu.matmul %255, %24, %cst_81 {dimension_numbers = #tpu.dot_dimension_numbers<[1], [0], [0], [1], [0, 0, 1, 1], [], []>} : vector<8x32xf32>, vector<32x16xf32>, vector<8x16xf32> -> vector<8x16xf32>
    %c48_82 = arith.constant 48 : index
    %c0_83 = arith.constant 0 : index
    %257 = vector.load %arg12[%c48_82, %c0_83] : memref<96x128xf32, #tpu.memory_space<vmem>>, vector<8x128xf32>
    %cst_84 = arith.constant dense<0.000000e+00> : vector<8x128xf32>
    %258 = tpu.matmul %252, %18, %cst_84 {dimension_numbers = #tpu.dot_dimension_numbers<[1], [0], [0], [1], [0, 0, 1, 1], [], []>} : vector<8x16xf32>, vector<16x128xf32>, vector<8x128xf32> -> vector<8x128xf32>
    %259 = arith.addf %257, %258 : vector<8x128xf32>
    %c40_85 = arith.constant 40 : index
    %c0_86 = arith.constant 0 : index
    %260 = vector.load %arg13[%c40_85, %c0_86] : memref<96x128xf32, #tpu.memory_space<vmem>>, vector<8x128xf32>
    %cst_87 = arith.constant dense<0.000000e+00> : vector<8x128xf32>
    %261 = tpu.matmul %256, %20, %cst_87 {dimension_numbers = #tpu.dot_dimension_numbers<[1], [0], [0], [1], [0, 0, 1, 1], [], []>} : vector<8x16xf32>, vector<16x128xf32>, vector<8x128xf32> -> vector<8x128xf32>
    %262 = arith.addf %260, %261 : vector<8x128xf32>
    %263 = arith.negf %259 : vector<8x128xf32>
    %264 = math.exp %263 : vector<8x128xf32>
    %cst_88 = arith.constant 1.000000e+00 : f32
    %265 = vector.broadcast %cst_88 : f32 to vector<8x128xf32>
    %266 = arith.addf %265, %264 : vector<8x128xf32>
    %267 = arith.divf %265, %266 : vector<8x128xf32>
    %268 = arith.negf %262 : vector<8x128xf32>
    %269 = math.exp %268 : vector<8x128xf32>
    %cst_89 = arith.constant 1.000000e+00 : f32
    %270 = vector.broadcast %cst_89 : f32 to vector<8x128xf32>
    %271 = arith.addf %270, %269 : vector<8x128xf32>
    %272 = arith.divf %270, %271 : vector<8x128xf32>
    %273 = vector.extract_strided_slice %267 {offsets = [0, 32], sizes = [8, 32], strides = [1, 1]} : vector<8x128xf32> to vector<8x32xf32>
    %274 = arith.mulf %273, %241 : vector<8x32xf32>
    %275 = vector.extract_strided_slice %267 {offsets = [0, 0], sizes = [8, 32], strides = [1, 1]} : vector<8x128xf32> to vector<8x32xf32>
    %276 = vector.extract_strided_slice %259 {offsets = [0, 64], sizes = [8, 32], strides = [1, 1]} : vector<8x128xf32> to vector<8x32xf32>
    %277 = math.tanh %276 : vector<8x32xf32>
    %278 = arith.mulf %275, %277 : vector<8x32xf32>
    %279 = arith.addf %274, %278 : vector<8x32xf32>
    %280 = vector.extract_strided_slice %272 {offsets = [0, 32], sizes = [8, 32], strides = [1, 1]} : vector<8x128xf32> to vector<8x32xf32>
    %281 = arith.mulf %280, %248 : vector<8x32xf32>
    %282 = vector.extract_strided_slice %272 {offsets = [0, 0], sizes = [8, 32], strides = [1, 1]} : vector<8x128xf32> to vector<8x32xf32>
    %283 = vector.extract_strided_slice %262 {offsets = [0, 64], sizes = [8, 32], strides = [1, 1]} : vector<8x128xf32> to vector<8x32xf32>
    %284 = math.tanh %283 : vector<8x32xf32>
    %285 = arith.mulf %282, %284 : vector<8x32xf32>
    %286 = arith.addf %281, %285 : vector<8x32xf32>
    %287 = vector.extract_strided_slice %267 {offsets = [0, 96], sizes = [8, 32], strides = [1, 1]} : vector<8x128xf32> to vector<8x32xf32>
    %288 = math.tanh %279 : vector<8x32xf32>
    %289 = arith.mulf %287, %288 : vector<8x32xf32>
    %cst_90 = arith.constant dense<0.000000e+00> : vector<8x16xf32>
    %290 = tpu.matmul %289, %22, %cst_90 {dimension_numbers = #tpu.dot_dimension_numbers<[1], [0], [0], [1], [0, 0, 1, 1], [], []>} : vector<8x32xf32>, vector<32x16xf32>, vector<8x16xf32> -> vector<8x16xf32>
    %291 = vector.extract_strided_slice %272 {offsets = [0, 96], sizes = [8, 32], strides = [1, 1]} : vector<8x128xf32> to vector<8x32xf32>
    %292 = math.tanh %286 : vector<8x32xf32>
    %293 = arith.mulf %291, %292 : vector<8x32xf32>
    %cst_91 = arith.constant dense<0.000000e+00> : vector<8x16xf32>
    %294 = tpu.matmul %293, %24, %cst_91 {dimension_numbers = #tpu.dot_dimension_numbers<[1], [0], [0], [1], [0, 0, 1, 1], [], []>} : vector<8x32xf32>, vector<32x16xf32>, vector<8x16xf32> -> vector<8x16xf32>
    %c56_92 = arith.constant 56 : index
    %c0_93 = arith.constant 0 : index
    %295 = vector.load %arg12[%c56_92, %c0_93] : memref<96x128xf32, #tpu.memory_space<vmem>>, vector<8x128xf32>
    %cst_94 = arith.constant dense<0.000000e+00> : vector<8x128xf32>
    %296 = tpu.matmul %290, %18, %cst_94 {dimension_numbers = #tpu.dot_dimension_numbers<[1], [0], [0], [1], [0, 0, 1, 1], [], []>} : vector<8x16xf32>, vector<16x128xf32>, vector<8x128xf32> -> vector<8x128xf32>
    %297 = arith.addf %295, %296 : vector<8x128xf32>
    %c32_95 = arith.constant 32 : index
    %c0_96 = arith.constant 0 : index
    %298 = vector.load %arg13[%c32_95, %c0_96] : memref<96x128xf32, #tpu.memory_space<vmem>>, vector<8x128xf32>
    %cst_97 = arith.constant dense<0.000000e+00> : vector<8x128xf32>
    %299 = tpu.matmul %294, %20, %cst_97 {dimension_numbers = #tpu.dot_dimension_numbers<[1], [0], [0], [1], [0, 0, 1, 1], [], []>} : vector<8x16xf32>, vector<16x128xf32>, vector<8x128xf32> -> vector<8x128xf32>
    %300 = arith.addf %298, %299 : vector<8x128xf32>
    %301 = arith.negf %297 : vector<8x128xf32>
    %302 = math.exp %301 : vector<8x128xf32>
    %cst_98 = arith.constant 1.000000e+00 : f32
    %303 = vector.broadcast %cst_98 : f32 to vector<8x128xf32>
    %304 = arith.addf %303, %302 : vector<8x128xf32>
    %305 = arith.divf %303, %304 : vector<8x128xf32>
    %306 = arith.negf %300 : vector<8x128xf32>
    %307 = math.exp %306 : vector<8x128xf32>
    %cst_99 = arith.constant 1.000000e+00 : f32
    %308 = vector.broadcast %cst_99 : f32 to vector<8x128xf32>
    %309 = arith.addf %308, %307 : vector<8x128xf32>
    %310 = arith.divf %308, %309 : vector<8x128xf32>
    %311 = vector.extract_strided_slice %305 {offsets = [0, 32], sizes = [8, 32], strides = [1, 1]} : vector<8x128xf32> to vector<8x32xf32>
    %312 = arith.mulf %311, %279 : vector<8x32xf32>
    %313 = vector.extract_strided_slice %305 {offsets = [0, 0], sizes = [8, 32], strides = [1, 1]} : vector<8x128xf32> to vector<8x32xf32>
    %314 = vector.extract_strided_slice %297 {offsets = [0, 64], sizes = [8, 32], strides = [1, 1]} : vector<8x128xf32> to vector<8x32xf32>
    %315 = math.tanh %314 : vector<8x32xf32>
    %316 = arith.mulf %313, %315 : vector<8x32xf32>
    %317 = arith.addf %312, %316 : vector<8x32xf32>
    %318 = vector.extract_strided_slice %310 {offsets = [0, 32], sizes = [8, 32], strides = [1, 1]} : vector<8x128xf32> to vector<8x32xf32>
    %319 = arith.mulf %318, %286 : vector<8x32xf32>
    %320 = vector.extract_strided_slice %310 {offsets = [0, 0], sizes = [8, 32], strides = [1, 1]} : vector<8x128xf32> to vector<8x32xf32>
    %321 = vector.extract_strided_slice %300 {offsets = [0, 64], sizes = [8, 32], strides = [1, 1]} : vector<8x128xf32> to vector<8x32xf32>
    %322 = math.tanh %321 : vector<8x32xf32>
    %323 = arith.mulf %320, %322 : vector<8x32xf32>
    %324 = arith.addf %319, %323 : vector<8x32xf32>
    %325 = vector.extract_strided_slice %305 {offsets = [0, 96], sizes = [8, 32], strides = [1, 1]} : vector<8x128xf32> to vector<8x32xf32>
    %326 = math.tanh %317 : vector<8x32xf32>
    %327 = arith.mulf %325, %326 : vector<8x32xf32>
    %cst_100 = arith.constant dense<0.000000e+00> : vector<8x16xf32>
    %328 = tpu.matmul %327, %22, %cst_100 {dimension_numbers = #tpu.dot_dimension_numbers<[1], [0], [0], [1], [0, 0, 1, 1], [], []>} : vector<8x32xf32>, vector<32x16xf32>, vector<8x16xf32> -> vector<8x16xf32>
    %329 = vector.extract_strided_slice %310 {offsets = [0, 96], sizes = [8, 32], strides = [1, 1]} : vector<8x128xf32> to vector<8x32xf32>
    %330 = math.tanh %324 : vector<8x32xf32>
    %331 = arith.mulf %329, %330 : vector<8x32xf32>
    %cst_101 = arith.constant dense<0.000000e+00> : vector<8x16xf32>
    %332 = tpu.matmul %331, %24, %cst_101 {dimension_numbers = #tpu.dot_dimension_numbers<[1], [0], [0], [1], [0, 0, 1, 1], [], []>} : vector<8x32xf32>, vector<32x16xf32>, vector<8x16xf32> -> vector<8x16xf32>
    %c64_102 = arith.constant 64 : index
    %c0_103 = arith.constant 0 : index
    %333 = vector.load %arg12[%c64_102, %c0_103] : memref<96x128xf32, #tpu.memory_space<vmem>>, vector<8x128xf32>
    %cst_104 = arith.constant dense<0.000000e+00> : vector<8x128xf32>
    %334 = tpu.matmul %328, %18, %cst_104 {dimension_numbers = #tpu.dot_dimension_numbers<[1], [0], [0], [1], [0, 0, 1, 1], [], []>} : vector<8x16xf32>, vector<16x128xf32>, vector<8x128xf32> -> vector<8x128xf32>
    %335 = arith.addf %333, %334 : vector<8x128xf32>
    %c24_105 = arith.constant 24 : index
    %c0_106 = arith.constant 0 : index
    %336 = vector.load %arg13[%c24_105, %c0_106] : memref<96x128xf32, #tpu.memory_space<vmem>>, vector<8x128xf32>
    %cst_107 = arith.constant dense<0.000000e+00> : vector<8x128xf32>
    %337 = tpu.matmul %332, %20, %cst_107 {dimension_numbers = #tpu.dot_dimension_numbers<[1], [0], [0], [1], [0, 0, 1, 1], [], []>} : vector<8x16xf32>, vector<16x128xf32>, vector<8x128xf32> -> vector<8x128xf32>
    %338 = arith.addf %336, %337 : vector<8x128xf32>
    %339 = arith.negf %335 : vector<8x128xf32>
    %340 = math.exp %339 : vector<8x128xf32>
    %cst_108 = arith.constant 1.000000e+00 : f32
    %341 = vector.broadcast %cst_108 : f32 to vector<8x128xf32>
    %342 = arith.addf %341, %340 : vector<8x128xf32>
    %343 = arith.divf %341, %342 : vector<8x128xf32>
    %344 = arith.negf %338 : vector<8x128xf32>
    %345 = math.exp %344 : vector<8x128xf32>
    %cst_109 = arith.constant 1.000000e+00 : f32
    %346 = vector.broadcast %cst_109 : f32 to vector<8x128xf32>
    %347 = arith.addf %346, %345 : vector<8x128xf32>
    %348 = arith.divf %346, %347 : vector<8x128xf32>
    %349 = vector.extract_strided_slice %343 {offsets = [0, 32], sizes = [8, 32], strides = [1, 1]} : vector<8x128xf32> to vector<8x32xf32>
    %350 = arith.mulf %349, %317 : vector<8x32xf32>
    %351 = vector.extract_strided_slice %343 {offsets = [0, 0], sizes = [8, 32], strides = [1, 1]} : vector<8x128xf32> to vector<8x32xf32>
    %352 = vector.extract_strided_slice %335 {offsets = [0, 64], sizes = [8, 32], strides = [1, 1]} : vector<8x128xf32> to vector<8x32xf32>
    %353 = math.tanh %352 : vector<8x32xf32>
    %354 = arith.mulf %351, %353 : vector<8x32xf32>
    %355 = arith.addf %350, %354 : vector<8x32xf32>
    %356 = vector.extract_strided_slice %348 {offsets = [0, 32], sizes = [8, 32], strides = [1, 1]} : vector<8x128xf32> to vector<8x32xf32>
    %357 = arith.mulf %356, %324 : vector<8x32xf32>
    %358 = vector.extract_strided_slice %348 {offsets = [0, 0], sizes = [8, 32], strides = [1, 1]} : vector<8x128xf32> to vector<8x32xf32>
    %359 = vector.extract_strided_slice %338 {offsets = [0, 64], sizes = [8, 32], strides = [1, 1]} : vector<8x128xf32> to vector<8x32xf32>
    %360 = math.tanh %359 : vector<8x32xf32>
    %361 = arith.mulf %358, %360 : vector<8x32xf32>
    %362 = arith.addf %357, %361 : vector<8x32xf32>
    %363 = vector.extract_strided_slice %343 {offsets = [0, 96], sizes = [8, 32], strides = [1, 1]} : vector<8x128xf32> to vector<8x32xf32>
    %364 = math.tanh %355 : vector<8x32xf32>
    %365 = arith.mulf %363, %364 : vector<8x32xf32>
    %cst_110 = arith.constant dense<0.000000e+00> : vector<8x16xf32>
    %366 = tpu.matmul %365, %22, %cst_110 {dimension_numbers = #tpu.dot_dimension_numbers<[1], [0], [0], [1], [0, 0, 1, 1], [], []>} : vector<8x32xf32>, vector<32x16xf32>, vector<8x16xf32> -> vector<8x16xf32>
    %367 = vector.extract_strided_slice %348 {offsets = [0, 96], sizes = [8, 32], strides = [1, 1]} : vector<8x128xf32> to vector<8x32xf32>
    %368 = math.tanh %362 : vector<8x32xf32>
    %369 = arith.mulf %367, %368 : vector<8x32xf32>
    %cst_111 = arith.constant dense<0.000000e+00> : vector<8x16xf32>
    %370 = tpu.matmul %369, %24, %cst_111 {dimension_numbers = #tpu.dot_dimension_numbers<[1], [0], [0], [1], [0, 0, 1, 1], [], []>} : vector<8x32xf32>, vector<32x16xf32>, vector<8x16xf32> -> vector<8x16xf32>
    %c72_112 = arith.constant 72 : index
    %c0_113 = arith.constant 0 : index
    %371 = vector.load %arg12[%c72_112, %c0_113] : memref<96x128xf32, #tpu.memory_space<vmem>>, vector<8x128xf32>
    %cst_114 = arith.constant dense<0.000000e+00> : vector<8x128xf32>
    %372 = tpu.matmul %366, %18, %cst_114 {dimension_numbers = #tpu.dot_dimension_numbers<[1], [0], [0], [1], [0, 0, 1, 1], [], []>} : vector<8x16xf32>, vector<16x128xf32>, vector<8x128xf32> -> vector<8x128xf32>
    %373 = arith.addf %371, %372 : vector<8x128xf32>
    %c16_115 = arith.constant 16 : index
    %c0_116 = arith.constant 0 : index
    %374 = vector.load %arg13[%c16_115, %c0_116] : memref<96x128xf32, #tpu.memory_space<vmem>>, vector<8x128xf32>
    %cst_117 = arith.constant dense<0.000000e+00> : vector<8x128xf32>
    %375 = tpu.matmul %370, %20, %cst_117 {dimension_numbers = #tpu.dot_dimension_numbers<[1], [0], [0], [1], [0, 0, 1, 1], [], []>} : vector<8x16xf32>, vector<16x128xf32>, vector<8x128xf32> -> vector<8x128xf32>
    %376 = arith.addf %374, %375 : vector<8x128xf32>
    %377 = arith.negf %373 : vector<8x128xf32>
    %378 = math.exp %377 : vector<8x128xf32>
    %cst_118 = arith.constant 1.000000e+00 : f32
    %379 = vector.broadcast %cst_118 : f32 to vector<8x128xf32>
    %380 = arith.addf %379, %378 : vector<8x128xf32>
    %381 = arith.divf %379, %380 : vector<8x128xf32>
    %382 = arith.negf %376 : vector<8x128xf32>
    %383 = math.exp %382 : vector<8x128xf32>
    %cst_119 = arith.constant 1.000000e+00 : f32
    %384 = vector.broadcast %cst_119 : f32 to vector<8x128xf32>
    %385 = arith.addf %384, %383 : vector<8x128xf32>
    %386 = arith.divf %384, %385 : vector<8x128xf32>
    %387 = vector.extract_strided_slice %381 {offsets = [0, 32], sizes = [8, 32], strides = [1, 1]} : vector<8x128xf32> to vector<8x32xf32>
    %388 = arith.mulf %387, %355 : vector<8x32xf32>
    %389 = vector.extract_strided_slice %381 {offsets = [0, 0], sizes = [8, 32], strides = [1, 1]} : vector<8x128xf32> to vector<8x32xf32>
    %390 = vector.extract_strided_slice %373 {offsets = [0, 64], sizes = [8, 32], strides = [1, 1]} : vector<8x128xf32> to vector<8x32xf32>
    %391 = math.tanh %390 : vector<8x32xf32>
    %392 = arith.mulf %389, %391 : vector<8x32xf32>
    %393 = arith.addf %388, %392 : vector<8x32xf32>
    %394 = vector.extract_strided_slice %386 {offsets = [0, 32], sizes = [8, 32], strides = [1, 1]} : vector<8x128xf32> to vector<8x32xf32>
    %395 = arith.mulf %394, %362 : vector<8x32xf32>
    %396 = vector.extract_strided_slice %386 {offsets = [0, 0], sizes = [8, 32], strides = [1, 1]} : vector<8x128xf32> to vector<8x32xf32>
    %397 = vector.extract_strided_slice %376 {offsets = [0, 64], sizes = [8, 32], strides = [1, 1]} : vector<8x128xf32> to vector<8x32xf32>
    %398 = math.tanh %397 : vector<8x32xf32>
    %399 = arith.mulf %396, %398 : vector<8x32xf32>
    %400 = arith.addf %395, %399 : vector<8x32xf32>
    %401 = vector.extract_strided_slice %381 {offsets = [0, 96], sizes = [8, 32], strides = [1, 1]} : vector<8x128xf32> to vector<8x32xf32>
    %402 = math.tanh %393 : vector<8x32xf32>
    %403 = arith.mulf %401, %402 : vector<8x32xf32>
    %cst_120 = arith.constant dense<0.000000e+00> : vector<8x16xf32>
    %404 = tpu.matmul %403, %22, %cst_120 {dimension_numbers = #tpu.dot_dimension_numbers<[1], [0], [0], [1], [0, 0, 1, 1], [], []>} : vector<8x32xf32>, vector<32x16xf32>, vector<8x16xf32> -> vector<8x16xf32>
    %405 = vector.extract_strided_slice %386 {offsets = [0, 96], sizes = [8, 32], strides = [1, 1]} : vector<8x128xf32> to vector<8x32xf32>
    %406 = math.tanh %400 : vector<8x32xf32>
    %407 = arith.mulf %405, %406 : vector<8x32xf32>
    %cst_121 = arith.constant dense<0.000000e+00> : vector<8x16xf32>
    %408 = tpu.matmul %407, %24, %cst_121 {dimension_numbers = #tpu.dot_dimension_numbers<[1], [0], [0], [1], [0, 0, 1, 1], [], []>} : vector<8x32xf32>, vector<32x16xf32>, vector<8x16xf32> -> vector<8x16xf32>
    %c80_122 = arith.constant 80 : index
    %c0_123 = arith.constant 0 : index
    %409 = vector.load %arg12[%c80_122, %c0_123] : memref<96x128xf32, #tpu.memory_space<vmem>>, vector<8x128xf32>
    %cst_124 = arith.constant dense<0.000000e+00> : vector<8x128xf32>
    %410 = tpu.matmul %404, %18, %cst_124 {dimension_numbers = #tpu.dot_dimension_numbers<[1], [0], [0], [1], [0, 0, 1, 1], [], []>} : vector<8x16xf32>, vector<16x128xf32>, vector<8x128xf32> -> vector<8x128xf32>
    %411 = arith.addf %409, %410 : vector<8x128xf32>
    %c8_125 = arith.constant 8 : index
    %c0_126 = arith.constant 0 : index
    %412 = vector.load %arg13[%c8_125, %c0_126] : memref<96x128xf32, #tpu.memory_space<vmem>>, vector<8x128xf32>
    %cst_127 = arith.constant dense<0.000000e+00> : vector<8x128xf32>
    %413 = tpu.matmul %408, %20, %cst_127 {dimension_numbers = #tpu.dot_dimension_numbers<[1], [0], [0], [1], [0, 0, 1, 1], [], []>} : vector<8x16xf32>, vector<16x128xf32>, vector<8x128xf32> -> vector<8x128xf32>
    %414 = arith.addf %412, %413 : vector<8x128xf32>
    %415 = arith.negf %411 : vector<8x128xf32>
    %416 = math.exp %415 : vector<8x128xf32>
    %cst_128 = arith.constant 1.000000e+00 : f32
    %417 = vector.broadcast %cst_128 : f32 to vector<8x128xf32>
    %418 = arith.addf %417, %416 : vector<8x128xf32>
    %419 = arith.divf %417, %418 : vector<8x128xf32>
    %420 = arith.negf %414 : vector<8x128xf32>
    %421 = math.exp %420 : vector<8x128xf32>
    %cst_129 = arith.constant 1.000000e+00 : f32
    %422 = vector.broadcast %cst_129 : f32 to vector<8x128xf32>
    %423 = arith.addf %422, %421 : vector<8x128xf32>
    %424 = arith.divf %422, %423 : vector<8x128xf32>
    %425 = vector.extract_strided_slice %419 {offsets = [0, 32], sizes = [8, 32], strides = [1, 1]} : vector<8x128xf32> to vector<8x32xf32>
    %426 = arith.mulf %425, %393 : vector<8x32xf32>
    %427 = vector.extract_strided_slice %419 {offsets = [0, 0], sizes = [8, 32], strides = [1, 1]} : vector<8x128xf32> to vector<8x32xf32>
    %428 = vector.extract_strided_slice %411 {offsets = [0, 64], sizes = [8, 32], strides = [1, 1]} : vector<8x128xf32> to vector<8x32xf32>
    %429 = math.tanh %428 : vector<8x32xf32>
    %430 = arith.mulf %427, %429 : vector<8x32xf32>
    %431 = arith.addf %426, %430 : vector<8x32xf32>
    %432 = vector.extract_strided_slice %424 {offsets = [0, 32], sizes = [8, 32], strides = [1, 1]} : vector<8x128xf32> to vector<8x32xf32>
    %433 = arith.mulf %432, %400 : vector<8x32xf32>
    %434 = vector.extract_strided_slice %424 {offsets = [0, 0], sizes = [8, 32], strides = [1, 1]} : vector<8x128xf32> to vector<8x32xf32>
    %435 = vector.extract_strided_slice %414 {offsets = [0, 64], sizes = [8, 32], strides = [1, 1]} : vector<8x128xf32> to vector<8x32xf32>
    %436 = math.tanh %435 : vector<8x32xf32>
    %437 = arith.mulf %434, %436 : vector<8x32xf32>
    %438 = arith.addf %433, %437 : vector<8x32xf32>
    %439 = vector.extract_strided_slice %419 {offsets = [0, 96], sizes = [8, 32], strides = [1, 1]} : vector<8x128xf32> to vector<8x32xf32>
    %440 = math.tanh %431 : vector<8x32xf32>
    %441 = arith.mulf %439, %440 : vector<8x32xf32>
    %cst_130 = arith.constant dense<0.000000e+00> : vector<8x16xf32>
    %442 = tpu.matmul %441, %22, %cst_130 {dimension_numbers = #tpu.dot_dimension_numbers<[1], [0], [0], [1], [0, 0, 1, 1], [], []>} : vector<8x32xf32>, vector<32x16xf32>, vector<8x16xf32> -> vector<8x16xf32>
    %443 = vector.extract_strided_slice %424 {offsets = [0, 96], sizes = [8, 32], strides = [1, 1]} : vector<8x128xf32> to vector<8x32xf32>
    %444 = math.tanh %438 : vector<8x32xf32>
    %445 = arith.mulf %443, %444 : vector<8x32xf32>
    %cst_131 = arith.constant dense<0.000000e+00> : vector<8x16xf32>
    %446 = tpu.matmul %445, %24, %cst_131 {dimension_numbers = #tpu.dot_dimension_numbers<[1], [0], [0], [1], [0, 0, 1, 1], [], []>} : vector<8x32xf32>, vector<32x16xf32>, vector<8x16xf32> -> vector<8x16xf32>
    %c88_132 = arith.constant 88 : index
    %c0_133 = arith.constant 0 : index
    %447 = vector.load %arg12[%c88_132, %c0_133] : memref<96x128xf32, #tpu.memory_space<vmem>>, vector<8x128xf32>
    %cst_134 = arith.constant dense<0.000000e+00> : vector<8x128xf32>
    %448 = tpu.matmul %442, %18, %cst_134 {dimension_numbers = #tpu.dot_dimension_numbers<[1], [0], [0], [1], [0, 0, 1, 1], [], []>} : vector<8x16xf32>, vector<16x128xf32>, vector<8x128xf32> -> vector<8x128xf32>
    %449 = arith.addf %447, %448 : vector<8x128xf32>
    %c0_135 = arith.constant 0 : index
    %c0_136 = arith.constant 0 : index
    %450 = vector.load %arg13[%c0_135, %c0_136] : memref<96x128xf32, #tpu.memory_space<vmem>>, vector<8x128xf32>
    %cst_137 = arith.constant dense<0.000000e+00> : vector<8x128xf32>
    %451 = tpu.matmul %446, %20, %cst_137 {dimension_numbers = #tpu.dot_dimension_numbers<[1], [0], [0], [1], [0, 0, 1, 1], [], []>} : vector<8x16xf32>, vector<16x128xf32>, vector<8x128xf32> -> vector<8x128xf32>
    %452 = arith.addf %450, %451 : vector<8x128xf32>
    %453 = arith.negf %449 : vector<8x128xf32>
    %454 = math.exp %453 : vector<8x128xf32>
    %cst_138 = arith.constant 1.000000e+00 : f32
    %455 = vector.broadcast %cst_138 : f32 to vector<8x128xf32>
    %456 = arith.addf %455, %454 : vector<8x128xf32>
    %457 = arith.divf %455, %456 : vector<8x128xf32>
    %458 = arith.negf %452 : vector<8x128xf32>
    %459 = math.exp %458 : vector<8x128xf32>
    %cst_139 = arith.constant 1.000000e+00 : f32
    %460 = vector.broadcast %cst_139 : f32 to vector<8x128xf32>
    %461 = arith.addf %460, %459 : vector<8x128xf32>
    %462 = arith.divf %460, %461 : vector<8x128xf32>
    %463 = vector.extract_strided_slice %457 {offsets = [0, 32], sizes = [8, 32], strides = [1, 1]} : vector<8x128xf32> to vector<8x32xf32>
    %464 = arith.mulf %463, %431 : vector<8x32xf32>
    %465 = vector.extract_strided_slice %457 {offsets = [0, 0], sizes = [8, 32], strides = [1, 1]} : vector<8x128xf32> to vector<8x32xf32>
    %466 = vector.extract_strided_slice %449 {offsets = [0, 64], sizes = [8, 32], strides = [1, 1]} : vector<8x128xf32> to vector<8x32xf32>
    %467 = math.tanh %466 : vector<8x32xf32>
    %468 = arith.mulf %465, %467 : vector<8x32xf32>
    %469 = arith.addf %464, %468 : vector<8x32xf32>
    %470 = vector.extract_strided_slice %462 {offsets = [0, 32], sizes = [8, 32], strides = [1, 1]} : vector<8x128xf32> to vector<8x32xf32>
    %471 = arith.mulf %470, %438 : vector<8x32xf32>
    %472 = vector.extract_strided_slice %462 {offsets = [0, 0], sizes = [8, 32], strides = [1, 1]} : vector<8x128xf32> to vector<8x32xf32>
    %473 = vector.extract_strided_slice %452 {offsets = [0, 64], sizes = [8, 32], strides = [1, 1]} : vector<8x128xf32> to vector<8x32xf32>
    %474 = math.tanh %473 : vector<8x32xf32>
    %475 = arith.mulf %472, %474 : vector<8x32xf32>
    %476 = arith.addf %471, %475 : vector<8x32xf32>
    %477 = vector.extract_strided_slice %457 {offsets = [0, 96], sizes = [8, 32], strides = [1, 1]} : vector<8x128xf32> to vector<8x32xf32>
    %478 = math.tanh %469 : vector<8x32xf32>
    %479 = arith.mulf %477, %478 : vector<8x32xf32>
    %cst_140 = arith.constant dense<0.000000e+00> : vector<8x16xf32>
    %480 = tpu.matmul %479, %22, %cst_140 {dimension_numbers = #tpu.dot_dimension_numbers<[1], [0], [0], [1], [0, 0, 1, 1], [], []>} : vector<8x32xf32>, vector<32x16xf32>, vector<8x16xf32> -> vector<8x16xf32>
    %481 = vector.extract_strided_slice %462 {offsets = [0, 96], sizes = [8, 32], strides = [1, 1]} : vector<8x128xf32> to vector<8x32xf32>
    %482 = math.tanh %476 : vector<8x32xf32>
    %483 = arith.mulf %481, %482 : vector<8x32xf32>
    %cst_141 = arith.constant dense<0.000000e+00> : vector<8x16xf32>
    %484 = tpu.matmul %483, %24, %cst_141 {dimension_numbers = #tpu.dot_dimension_numbers<[1], [0], [0], [1], [0, 0, 1, 1], [], []>} : vector<8x32xf32>, vector<32x16xf32>, vector<8x16xf32> -> vector<8x16xf32>
    %485 = tpu.concatenate %480, %484 in 1 : vector<8x16xf32>, vector<8x16xf32> -> vector<8x32xf32>
    %c0_142 = arith.constant 0 : index
    %c0_143 = arith.constant 0 : index
    %486 = vector.load %arg5[%c0_142, %c0_143] : memref<32x25xf32, #tpu.memory_space<vmem>>, vector<32x25xf32>
    %cst_144 = arith.constant dense<0.000000e+00> : vector<8x25xf32>
    %487 = tpu.matmul %485, %486, %cst_144 {dimension_numbers = #tpu.dot_dimension_numbers<[1], [0], [0], [1], [0, 0, 1, 1], [], []>} : vector<8x32xf32>, vector<32x25xf32>, vector<8x25xf32> -> vector<8x25xf32>
    %c0_145 = arith.constant 0 : index
    %c0_146 = arith.constant 0 : index
    %488 = vector.load %arg6[%c0_145, %c0_146] : memref<1x25xf32, #tpu.memory_space<vmem>>, vector<1x25xf32>
    %489 = vector.broadcast %488 : vector<1x25xf32> to vector<8x25xf32>
    %490 = arith.addf %487, %489 : vector<8x25xf32>
    %cst_147 = arith.constant dense<0.000000e+00> : vector<25xf32>
    %491 = vector.multi_reduction <add>, %490, %cst_147 [0] : vector<8x25xf32> to vector<25xf32>
    %492 = vector.shape_cast %491 : vector<25xf32> to vector<1x25xf32>
    %cst_148 = arith.constant 8.000000e+00 : f32
    %493 = vector.broadcast %cst_148 : f32 to vector<1x25xf32>
    %494 = arith.divf %492, %493 : vector<1x25xf32>
    %495 = vector.broadcast %494 : vector<1x25xf32> to vector<8x25xf32>
    %496 = arith.subf %490, %495 : vector<8x25xf32>
    %497 = arith.mulf %496, %496 : vector<8x25xf32>
    %cst_149 = arith.constant dense<0.000000e+00> : vector<25xf32>
    %498 = vector.multi_reduction <add>, %497, %cst_149 [0] : vector<8x25xf32> to vector<25xf32>
    %499 = vector.shape_cast %498 : vector<25xf32> to vector<1x25xf32>
    %cst_150 = arith.constant 8.000000e+00 : f32
    %500 = vector.broadcast %cst_150 : f32 to vector<1x25xf32>
    %501 = arith.divf %499, %500 : vector<1x25xf32>
    %502 = vector.broadcast %494 : vector<1x25xf32> to vector<8x25xf32>
    %503 = arith.subf %490, %502 : vector<8x25xf32>
    %cst_151 = arith.constant 9.99999974E-6 : f32
    %504 = vector.broadcast %cst_151 : f32 to vector<1x25xf32>
    %505 = arith.addf %501, %504 : vector<1x25xf32>
    %506 = math.rsqrt %505 : vector<1x25xf32>
    %507 = vector.broadcast %506 : vector<1x25xf32> to vector<8x25xf32>
    %508 = arith.mulf %503, %507 : vector<8x25xf32>
    %c0_152 = arith.constant 0 : index
    %c0_153 = arith.constant 0 : index
    %509 = vector.load %arg7[%c0_152, %c0_153] : memref<1x25xf32, #tpu.memory_space<vmem>>, vector<1x25xf32>
    %510 = vector.broadcast %509 : vector<1x25xf32> to vector<8x25xf32>
    %511 = arith.mulf %508, %510 : vector<8x25xf32>
    %c0_154 = arith.constant 0 : index
    %c0_155 = arith.constant 0 : index
    %512 = vector.load %arg8[%c0_154, %c0_155] : memref<1x25xf32, #tpu.memory_space<vmem>>, vector<1x25xf32>
    %513 = vector.broadcast %512 : vector<1x25xf32> to vector<8x25xf32>
    %514 = arith.addf %511, %513 : vector<8x25xf32>
    %cst_156 = arith.constant 5.000000e-01 : f32
    %515 = vector.broadcast %cst_156 : f32 to vector<8x25xf32>
    %516 = arith.mulf %515, %514 : vector<8x25xf32>
    %cst_157 = arith.constant 0.707106769 : f32
    %517 = vector.broadcast %cst_157 : f32 to vector<8x25xf32>
    %518 = arith.mulf %514, %517 : vector<8x25xf32>
    %519 = math.absf %518 : vector<8x25xf32>
    %cst_158 = arith.constant 0.327591091 : f32
    %520 = vector.broadcast %cst_158 : f32 to vector<8x25xf32>
    %521 = arith.mulf %520, %519 : vector<8x25xf32>
    %cst_159 = arith.constant 1.000000e+00 : f32
    %522 = vector.broadcast %cst_159 : f32 to vector<8x25xf32>
    %523 = arith.addf %522, %521 : vector<8x25xf32>
    %cst_160 = arith.constant 1.000000e+00 : f32
    %524 = vector.broadcast %cst_160 : f32 to vector<8x25xf32>
    %525 = arith.divf %524, %523 : vector<8x25xf32>
    %cst_161 = arith.constant 1.06140542 : f32
    %526 = vector.broadcast %cst_161 : f32 to vector<8x25xf32>
    %527 = arith.mulf %526, %525 : vector<8x25xf32>
    %cst_162 = arith.constant -1.45315206 : f32
    %528 = vector.broadcast %cst_162 : f32 to vector<8x25xf32>
    %529 = arith.addf %527, %528 : vector<8x25xf32>
    %530 = arith.mulf %529, %525 : vector<8x25xf32>
    %cst_163 = arith.constant 1.42141378 : f32
    %531 = vector.broadcast %cst_163 : f32 to vector<8x25xf32>
    %532 = arith.addf %530, %531 : vector<8x25xf32>
    %533 = arith.mulf %532, %525 : vector<8x25xf32>
    %cst_164 = arith.constant -0.284496725 : f32
    %534 = vector.broadcast %cst_164 : f32 to vector<8x25xf32>
    %535 = arith.addf %533, %534 : vector<8x25xf32>
    %536 = arith.mulf %535, %525 : vector<8x25xf32>
    %cst_165 = arith.constant 0.254829586 : f32
    %537 = vector.broadcast %cst_165 : f32 to vector<8x25xf32>
    %538 = arith.addf %536, %537 : vector<8x25xf32>
    %539 = arith.mulf %538, %525 : vector<8x25xf32>
    %cst_166 = arith.constant 0.000000e+00 : f32
    %540 = vector.broadcast %cst_166 : f32 to vector<8x25xf32>
    %541 = arith.subf %540, %519 : vector<8x25xf32>
    %542 = arith.mulf %541, %519 : vector<8x25xf32>
    %543 = math.exp %542 : vector<8x25xf32>
    %544 = arith.mulf %539, %543 : vector<8x25xf32>
    %cst_167 = arith.constant 1.000000e+00 : f32
    %545 = vector.broadcast %cst_167 : f32 to vector<8x25xf32>
    %546 = arith.subf %545, %544 : vector<8x25xf32>
    %cst_168 = arith.constant 0.000000e+00 : f32
    %547 = vector.broadcast %cst_168 : f32 to vector<8x25xf32>
    %548 = arith.cmpf oge, %518, %547 : vector<8x25xf32>
    %cst_169 = arith.constant 0.000000e+00 : f32
    %549 = vector.broadcast %cst_169 : f32 to vector<8x25xf32>
    %550 = arith.subf %549, %546 : vector<8x25xf32>
    %551 = arith.select %548, %546, %550 : vector<8x25xi1>, vector<8x25xf32>
    %cst_170 = arith.constant 1.000000e+00 : f32
    %552 = vector.broadcast %cst_170 : f32 to vector<8x25xf32>
    %553 = arith.addf %552, %551 : vector<8x25xf32>
    %554 = arith.mulf %516, %553 : vector<8x25xf32>
    %c0_171 = arith.constant 0 : index
    %c0_172 = arith.constant 0 : index
    %555 = vector.load %arg9[%c0_171, %c0_172] : memref<25x7xf32, #tpu.memory_space<vmem>>, vector<25x7xf32>
    %cst_173 = arith.constant dense<0.000000e+00> : vector<8x7xf32>
    %556 = tpu.matmul %554, %555, %cst_173 {dimension_numbers = #tpu.dot_dimension_numbers<[1], [0], [0], [1], [0, 0, 1, 1], [], []>} : vector<8x25xf32>, vector<25x7xf32>, vector<8x7xf32> -> vector<8x7xf32>
    %c0_174 = arith.constant 0 : index
    %c0_175 = arith.constant 0 : index
    %557 = vector.load %arg10[%c0_174, %c0_175] : memref<1x7xf32, #tpu.memory_space<vmem>>, vector<1x7xf32>
    %558 = vector.broadcast %557 : vector<1x7xf32> to vector<8x7xf32>
    %559 = arith.addf %556, %558 : vector<8x7xf32>
    %c0_176 = arith.constant 0 : index
    %c0_177 = arith.constant 0 : index
    %560 = vector.load %arg11[%c0_176, %c0_177] : memref<8x7xf32, #tpu.memory_space<vmem>>, vector<8x7xf32>
    tpu.vector_store %arg11[%c0_176, %c0_177], %559 {strides = array<i32>} : memref<8x7xf32, #tpu.memory_space<vmem>>, vector<8x7xf32>,
    return
  }
}

</mosaic_0001>

<bundles_post_ra>
// kernel: lstm1_forward.1
= control target key start
LH: loop header
LB: loop body
LE: loop exit
PB: predicated region body
PF: predicated region fallthrough
CT: control target
= control target key end

     0   :  { %16 = vsyncpa [#allocation5], 0  ;;  %s3737_s0 = inlined_call_operand.vmem [shape: f32[96,64], index: 0, kind: input, shape index: {}]   ;;  %s3738_s1 = inlined_call_operand.hbm [shape: f32[2,64,128], index: 1, kind: input, shape index: {}]   ;;  %s3739_s2 = inlined_call_operand.hbm [shape: f32[2,16,128], index: 2, kind: input, shape index: {}]   ;;  %s3740_s3 = inlined_call_operand.vmem [shape: f32[2,32,16], index: 3, kind: input, shape index: {}]   ;;  %s3741_s4 = inlined_call_operand.vmem [shape: f32[2,1,128], index: 4, kind: input, shape index: {}]   ;;  %s3742_s5 = inlined_call_operand.hbm [shape: f32[32,25], index: 5, kind: input, shape index: {}]   ;;  %s3743_s6 = inlined_call_operand.vmem [shape: f32[1,25], index: 6, kind: input, shape index: {}]   ;;  %s3744_s7 = inlined_call_operand.vmem [shape: f32[1,25], index: 7, kind: input, shape index: {}]   ;;  %s3745_s8 = inlined_call_operand.vmem [shape: f32[1,25], index: 8, kind: input, shape index: {}]   ;;  %s3746_s9 = inlined_call_operand.vmem [shape: f32[25,7], index: 9, kind: input, shape index: {}]   ;;  %s3747_s10 = inlined_call_operand.vmem [shape: f32[1,7], index: 10, kind: input, shape index: {}]   ;;  %s3748_s11 = inlined_call_operand.hbm [shape: f32[8,7], index: 11, kind: output, shape index: {}]  }
   0x1   :  { %17 = vsyncpa [#allocation8], 0 }
   0x2   :  { %18 = vsyncpa [#allocation6], 0  ;;  %s38_s19 = sshll.u32 %s3739_s2, 4  ;;  %s3006_s20 = smov [#allocation7]   ;;  %s39_s19 = int_to_ptr.hbm [resolvable:$true] %s38_s19 }
   0x3   :  { %s40_s21 = sshll.u32 %s3006_s20, 4  ;;  %s25_s24 = sshll.u32 %s3738_s1, 4  ;;  %s41_s21 = int_to_ptr.vmem [resolvable:$true] %s40_s21  ;;  %s26_s24 = int_to_ptr.hbm [resolvable:$true] %s25_s24 }
   0x4   :  { %s3007_s25 = smov 128   ;;  %s3008_s26 = smov 8  }
   0x5   :  { %46 = dma.hbm_to_vmem [thread:$0]  %s39_s19, 512, %s41_s21, [#allocation8], %s3007_s25, %s3007_s25, %s3008_s26  }
   0x6   :  { %s3009_s27 = smov [#allocation4]   ;;  %s55_s12 = sshll.u32 %s3742_s5, 4  ;;  %s56_s12 = int_to_ptr.hbm [resolvable:$true] %s55_s12 }
   0x7   :  { %s27_s28 = sshll.u32 %s3009_s27, 4  ;;  %s3010_s2 = smov [#allocation9]   ;;  %s28_s28 = int_to_ptr.vmem [resolvable:$true] %s27_s28 }
   0x8   :  { %33 = dma.hbm_to_vmem [thread:$0]  %s26_s24, 2048, %s28_s28, [#allocation5], %s3007_s25, %s3007_s25, %s3008_s26  }
   0x9   :  { %s57_s13 = sshll.u32 %s3010_s2, 4  ;;  %s58_s13 = int_to_ptr.vmem [resolvable:$true] %s57_s13 }
   0xa   :  { %63 = dma.hbm_to_vmem [thread:$0]  %s56_s12, 512, %s58_s13, [#allocation8], %s3007_s25, %s3007_s25, %s3008_s26  }
   0xb   :  { %3000 = dma.done.wait [#allocation5], 2048  }
   0xc   :  { %3001 = vsyncadd [#allocation5], 4294965248 }
   0xd   :  { %3002 = dma.done.wait [#allocation8], 1024  }
   0xe   :  { %3003 = vsyncadd [#allocation8], 4294966272  ;;  %v220_v0 = vld [vmem:[#allocation4 + $0x78] sm:$0xff]  ;;  %v219_v1 = vld [vmem:[#allocation4 + $0x70] sm:$0xff]  ;;  %vm110_vm0 = vcmask 523264   ;;  %v3011_v20 = vmov 0.0  }
   0xf   :  { %234 = vmatpush.msra.mxu1 %v220_v0  ;;  %v218_v2 = vld [vmem:[#allocation4 + $0x68] sm:$0xff]  ;;  %v217_v3 = vld [vmem:[#allocation4 + $0x60] sm:$0xff]  ;;  %v216_v4 = vld [vmem:[#allocation4 + $0x58] sm:$0xff]  ;;  %s3012_s17 = smov 64   ;;  %s3013_s18 = smov 32   ;;  %vm424_vm9 = vcmask 261120  }
  0x10   :  { %v215_v5 = vld [vmem:[#allocation4 + $0x50] sm:$0xff]  ;;  %v214_v6 = vld [vmem:[#allocation4 + $0x48] sm:$0xff]  ;;  %v213_v7 = vld [vmem:[#allocation4 + $0x40] sm:$0xff]  ;;  %vm306_vm10 = vcmask 130048  }
  0x11   :  { %235 = vmatpush.msra.mxu1 %v219_v1  ;;  %v86_v8 = vld [vmem:[%s3737_s0] sm:$0xff]  ;;  %v87_v9 = vld [vmem:[%s3737_s0 + $0x8] sm:$0xff]  ;;  %v88_v10 = vld [vmem:[%s3737_s0 + $0x10] sm:$0xff] }
  0x12   :  { %v89_v11 = vld [vmem:[%s3737_s0 + $0x18] sm:$0xff]  ;;  %v90_v12 = vld [vmem:[%s3737_s0 + $0x20] sm:$0xff]  ;;  %v91_v13 = vld [vmem:[%s3737_s0 + $0x28] sm:$0xff] }
  0x13   :  { %236 = vmatpush.msra.mxu1 %v218_v2  ;;  %v92_v14 = vld [vmem:[%s3737_s0 + $0x30] sm:$0xff]  ;;  %v105_v15 = vld [vmem:[#allocation4 + $0x38] sm:$0xff]  ;;  %v103_v19 = vld [vmem:[#allocation4 + $0x28] sm:$0xff] }
  0x14   :  { %v3114_v16 = vld [vmem:[#allocation7 + $0x18] sm:$0xff]  ;;  %v104_v17 = vld [vmem:[#allocation4 + $0x30] sm:$0xff]  ;;  %155 = vmatpush.msra.mxu0 %v105_v15  ;;  %v102_v21 = vld [vmem:[#allocation4 + $0x20] sm:$0xff] }
  0x15   :  { %237 = vmatpush.msra.mxu1 %v217_v3  ;;  %346 = vmatpush.msra.mxu3 %v3114_v16  ;;  %v3117_v18 = vld [vmem:[#allocation7 + $0x10] sm:$0xff]  ;;  %v93_v22 = vld [vmem:[%s3737_s0 + $0x38] sm:$0xff]  ;;  %v3128_v24 = vld [vmem:[#allocation7 + $0x8] sm:$0xff] }
  0x16   :  { %156 = vmatpush.msra.mxu0 %v104_v17  ;;  %v101_v23 = vld [vmem:[#allocation4 + $0x18] sm:$0xff]  ;;  %v100_v25 = vld [vmem:[#allocation4 + $0x10] sm:$0xff]  ;;  %324 = vmatpush.msra.mxu2 %v3128_v24  ;;  %v3131_v26 = vld [vmem:[#allocation7] sm:$0xff] }
  0x17   :  { %238 = vmatpush.msra.mxu1 %v216_v4  ;;  %347 = vmatpush.msra.mxu3 %v3117_v18  ;;  %v99_v27 = vld [vmem:[#allocation4 + $0x8] sm:$0xff]  ;;  %v98_v28 = vld [vmem:[#allocation4] sm:$0xff]  ;;  %v96_v31 = vld [vmem:[%s3737_s0 + $0x50] sm:$0xff] }
  0x18   :  { %348 = vmatmul.f32.vlgmr.msra.gmra.mxu3 %v3011_v20  ;;  %157 = vmatpush.msra.mxu0 %v103_v19  ;;  %v94_v29 = vld [vmem:[%s3737_s0 + $0x40] sm:$0xff]  ;;  %v95_v30 = vld [vmem:[%s3737_s0 + $0x48] sm:$0xff]  ;;  %v97_v32 = vld [vmem:[%s3737_s0 + $0x58] sm:$0xff] }
  0x19   :  { %239 = vmatpush.msra.mxu1 %v215_v5  ;;  %325 = vmatpush.msra.mxu2 %v3131_v26  ;;  %v3191_v44 = vld [vmem:[%s3741_s4 + $0x1] ss:$0 sm:$0xff]  ;;  %v3196_v46 = vld [vmem:[%s3741_s4] ss:$0 sm:$0xff] }
  0x1a   :  { %158 = vmatpush.msra.mxu0 %v102_v21  ;;  %326 = vmatmul.f32.vlgmr.msra.gmra.mxu2 %v3011_v20 }
  0x1b   :  { %240 = vmatpush.msra.mxu1 %v214_v6 }
  0x1c   :  { %159 = vmatpush.msra.mxu0 %v101_v23 }
  0x1d   :  { %241 = vmatpush.msra.mxu1 %v213_v7 }
  0x1e   :  { %2584 = vmatmul.msk.f32.vlgmr.msra.gmra.mxu1 %vm110_vm0, %v86_v8  ;;  %160 = vmatpush.msra.mxu0 %v100_v25 }
  0x1f   :  { %1565 = vmatpush.msrb.mxu1 %v3114_v16 }
  0x20   :  { %161 = vmatpush.msra.mxu0 %v99_v27 }
  0x21   :  { %1566 = vmatpush.msrb.mxu1 %v3117_v18 }
  0x22   :  { %162 = vmatpush.msra.mxu0 %v98_v28 }
  0x23   :  { %1739 = vmatpush.msra.mxu1 %v3114_v16  ;;  %2571 = vmatmul.msk.f32.vlgmr.msra.gmra.mxu0 %vm110_vm0, %v86_v8 }
  0x24   :  { %1540 = vmatpush.msrb.mxu0 %v3128_v24 }
  0x25   :  { %1740 = vmatpush.msra.mxu1 %v3117_v18 }
  0x26   :  { %2585 = vmatmul.msk.f32.gmra.mxu1 %vm110_vm0, %v87_v9  ;;  %1541 = vmatpush.msrb.mxu0 %v3131_v26 }
  0x28   :  { %1714 = vmatpush.msra.mxu0 %v3128_v24 }
  0x2a   :  { %1715 = vmatpush.msra.mxu0 %v3131_v26 }
  0x2b   :  { %2572 = vmatmul.msk.f32.gmra.mxu0 %vm110_vm0, %v87_v9 }
  0x2e   :  { %2586 = vmatmul.msk.f32.gmra.mxu1 %vm110_vm0, %v88_v10 }
  0x33   :  { %2573 = vmatmul.msk.f32.gmra.mxu0 %vm110_vm0, %v88_v10 }
  0x36   :  { %2587 = vmatmul.msk.f32.gmra.mxu1 %vm110_vm0, %v89_v11 }
  0x3b   :  { %2574 = vmatmul.msk.f32.gmra.mxu0 %vm110_vm0, %v89_v11 }
  0x3e   :  { %2588 = vmatmul.msk.f32.gmra.mxu1 %vm110_vm0, %v90_v12 }
  0x43   :  { %2575 = vmatmul.msk.f32.gmra.mxu0 %vm110_vm0, %v90_v12 }
  0x46   :  { %2589 = vmatmul.msk.f32.gmra.mxu1 %vm110_vm0, %v91_v13 }
  0x4b   :  { %2576 = vmatmul.msk.f32.gmra.mxu0 %vm110_vm0, %v91_v13 }
  0x4e   :  { %2590 = vmatmul.msk.f32.gmra.mxu1 %vm110_vm0, %v92_v14 }
  0x53   :  { %2577 = vmatmul.msk.f32.gmra.mxu0 %vm110_vm0, %v92_v14 }
  0x56   :  { %2591 = vmatmul.msk.f32.gmra.mxu1 %vm110_vm0, %v93_v22 }
  0x5b   :  { %2578 = vmatmul.msk.f32.gmra.mxu0 %vm110_vm0, %v93_v22 }
  0x5e   :  { %2592 = vmatmul.msk.f32.gmra.mxu1 %vm110_vm0, %v94_v29 }
  0x63   :  { %2579 = vmatmul.msk.f32.gmra.mxu0 %vm110_vm0, %v94_v29 }
  0x66   :  { %2593 = vmatmul.msk.f32.gmra.mxu1 %vm110_vm0, %v95_v30 }
  0x6b   :  { %2580 = vmatmul.msk.f32.gmra.mxu0 %vm110_vm0, %v95_v30 }
  0x6e   :  { %2594 = vmatmul.msk.f32.gmra.mxu1 %vm110_vm0, %v96_v31 }
  0x73   :  { %2581 = vmatmul.msk.f32.gmra.mxu0 %vm110_vm0, %v96_v31 }
  0x76   :  { %2595 = vmatmul.msk.f32.gmra.mxu1 %vm110_vm0, %v97_v32 }
  0x7b   :  { %2582 = vmatmul.msk.f32.gmra.mxu0 %vm110_vm0, %v97_v32 }
  0x9b   :  { %v3162_v33 = vpop.f32.mrf.mxu1  ;;  %v349_v45 = vpop.f32.mrf.mxu3 }
  0x9d   :  { %v327_v52 = vpop.f32.mrf.mxu2 }
  0xa0   :  { %v164_v48 = vpop.f32.mrf.mxu0 }
  0xa1   :  { %v165_v51 = vadd.f32 %v3196_v46, %v164_v48  ;;  %v3220_v48 = vld [vmem:[%s3740_s3 + $0x30] sm:$0xff] }
  0xa3   :  { %v3165_v34 = vpop.f32.mrf.mxu1  ;;  %v330_v53 = vadd.f32 %v327_v52, %v165_v51 }
  0xa5   :  { %v2600_v57 = vmul.f32 -1.442695, %v330_v53 }
  0xab   :  { %v3168_v35 = vpop.f32.mrf.mxu1 }
  0xb3   :  { %v3171_v36 = vpop.f32.mrf.mxu1 }
  0xbb   :  { %v3174_v37 = vpop.f32.mrf.mxu1 }
  0xc3   :  { %v3176_v38 = vpop.f32.mrf.mxu1 }
  0xcb   :  { %v3178_v39 = vpop.f32.mrf.mxu1 }
  0xd3   :  { %v3180_v40 = vpop.f32.mrf.mxu1 }
  0xdb   :  { %v3182_v41 = vpop.f32.mrf.mxu1 }
  0xe3   :  { %v3184_v42 = vpop.f32.mrf.mxu1 }
  0xeb   :  { %v3186_v43 = vpop.f32.mrf.mxu1 }
  0xf3   :  { %v276_v47 = vpop.f32.mrf.mxu1 }
  0xf4   :  { %v277_v49 = vadd.f32 %v3191_v44, %v276_v47  ;;  %v3215_v47 = vld [vmem:[%s3740_s3 + $0x38] sm:$0xff] }
  0xf5   :  { %470 = vmatpush.msrb.mxu3 %v3215_v47 }
  0xf6   :  { %v352_v50 = vadd.f32 %v349_v45, %v277_v49  ;;  %v3226_v49 = vld [vmem:[%s3740_s3 + $0x28] sm:$0xff] }
  0xf7   :  { %471 = vmatpush.msrb.mxu3 %v3220_v48 }
  0xf8   :  { %2690 = vtanh.f32 %v352_v50  ;;  %v2601_v56 = vmul.f32 -1.442695, %v352_v50  ;;  %v3232_v50 = vld [vmem:[%s3740_s3 + $0x20] sm:$0xff] }
  0xf9   :  { %2692 = vtanh.f32 %v330_v53  ;;  %472 = vmatpush.msrb.mxu3 %v3226_v49 }
  0xfa   :  { %2694 = vpow2.f32 %v2601_v56  ;;  %v3248_v56 = vld [vmem:[%s3740_s3 + $0x10] sm:$0xff] }
  0xfb   :  { %2696 = vpow2.f32 %v2600_v57  ;;  %473 = vmatpush.msrb.mxu3 %v3232_v50  ;;  %v3254_v57 = vld [vmem:[%s3740_s3 + $0x8] sm:$0xff] }
  0xfd   :  { %521 = vmatpush.msra.mxu3 %v3114_v16 }
  0xfe   :  { %v2691_v54 = vpop.eup %2690 }
  0xff   :  { %406 = vrot.lane.b32.xlu0 %v2691_v54, %s3012_s17  ;;  %v2693_v55 = vpop.eup %2692  ;;  %522 = vmatpush.msra.mxu3 %v3117_v18 }
 0x100   :  { %v2695_v58 = vpop.eup %2694 }
 0x101   :  { %v375_v59 = vadd.f32 1.0, %v2695_v58  ;;  %v2697_v60 = vpop.eup %2696  ;;  %v3260_v58 = vld [vmem:[%s3740_s3] sm:$0xff] }
 0x102   :  { %v356_v61 = vadd.f32 1.0, %v2697_v60 }
 0x103   :  { %2698 = vrcp.f32 %v375_v59  ;;  %v387_v6 = vand.u32 2147483648, %v375_v59  ;;  %vm381_vm2 = vweird.f32 %v375_v59  ;;  %v385_v7 = vand.u32 2147483647, %v375_v59 }
 0x104   :  { %2700 = vrcp.f32 %v356_v61  ;;  %vm362_vm4 = vweird.f32 %v356_v61  ;;  %v368_v11 = vand.u32 2147483648, %v356_v61  ;;  %v366_v13 = vand.u32 2147483647, %v356_v61 }
 0x105   :  { %v388_v10 = vor.u32 1.1754944e-38, %v387_v6  ;;  %vm386_vm6 = vcmp.eq.f32.partialorder %v385_v7, 8.507059e+37 }
 0x106   :  { %v369_v19 = vor.u32 1.1754944e-38, %v368_v11  ;;  %vm367_vm8 = vcmp.eq.f32.partialorder %v366_v13, 8.507059e+37 }
 0x107   :  { %394 = vrot.lane.b32.xlu0 %v2693_v55, %s3012_s17  ;;  %v3243_v55 = vld [vmem:[%s3740_s3 + $0x18] sm:$0xff] }
 0x108   :  { %439 = vmatpush.msrb.mxu2 %v3243_v55 }
 0x109   :  { %v2699_v62 = vpop.eup %2698 }
 0x10a   :  { %v377_v63 = vmul.f32 %v2699_v62, %v375_v59  ;;  %v2701_v0 = vpop.eup %2700  ;;  %vm382_vm1 = vweird.f32 %v2699_v62  ;;  %440 = vmatpush.msrb.mxu2 %v3248_v56 }
 0x10b   :  { %v358_v2 = vmul.f32 %v2701_v0, %v356_v61  ;;  %vm383_vm3 = vmor %vm381_vm2, %vm382_vm1  ;;  %vm363_vm5 = vweird.f32 %v2701_v0 }
 0x10c   :  { %v378_v1 = vsub.f32 1.0, %v377_v63  ;;  %vm364_vm7 = vmor %vm362_vm4, %vm363_vm5  ;;  %441 = vmatpush.msrb.mxu2 %v3254_v57  ;;  %v274_v63 = vadd.f32 %v3191_v44, %v3186_v43 }
 0x10d   :  { %v359_v4 = vsub.f32 1.0, %v358_v2  ;;  %v167_v2 = vpop.f32.mrf.mxu0 }
 0x10e   :  { %v379_v3 = vmul.f32 %v2699_v62, %v378_v1  ;;  %442 = vmatpush.msrb.mxu2 %v3260_v58 }
 0x10f   :  { %v360_v8 = vmul.f32 %v2701_v0, %v359_v4 }
 0x110   :  { %v380_v5 = vadd.f32 %v2699_v62, %v379_v3  ;;  %496 = vmatpush.msra.mxu2 %v3128_v24  ;;  %v168_v3 = vadd.f32 %v3196_v46, %v167_v2 }
 0x111   :  { %v361_v12 = vadd.f32 %v2701_v0, %v360_v8 }
 0x112   :  { %v384_v9 = vsel %vm383_vm3, %v2699_v62, %v380_v5  ;;  %497 = vmatpush.msra.mxu2 %v3131_v26 }
 0x113   :  { %v389_v15 = vsel %vm386_vm6, %v388_v10, %v384_v9  ;;  %v365_v20 = vsel %vm364_vm7, %v2701_v0, %v361_v12 }
 0x114   :  { %v370_v21 = vsel %vm367_vm8, %v369_v19, %v365_v20  ;;  %v403_v25 = vmul.f32 0.0, %v389_v15 }
 0x115   :  { %v391_v29 = vmul.f32 0.0, %v370_v21 }
 0x171   :  { %v407_v14 = vpop.permute.xlu0 %406 }
 0x172   :  { %v409_v17 = vmul.f32 %v407_v14, %v389_v15 }
 0x174   :  { %411 = vrot.lane.b32.xlu1 %v409_v17, %s3013_s18 }
 0x179   :  { %v395_v22 = vpop.permute.xlu0 %394 }
 0x17a   :  { %v397_v23 = vmul.f32 %v395_v22, %v370_v21 }
 0x17c   :  { %399 = vrot.lane.b32.xlu1 %v397_v23, %s3013_s18 }
 0x1e6   :  { %v412_v27 = vpop.permute.xlu1 %411 }
 0x1e7   :  { %v3204_v28 = vadd.f32 %v412_v27, %v403_v25 }
 0x1e9   :  { %2702 = vtanh.f32 %v3204_v28 }
 0x1ee   :  { %v400_v30 = vpop.permute.xlu1 %399 }
 0x1ef   :  { %v2703_v31 = vpop.eup %2702  ;;  %v3207_v32 = vadd.f32 %v400_v30, %v391_v29 }
 0x1f0   :  { %449 = vrot.lane.b32.xlu2 %v2703_v31, %s3012_s17 }
 0x1f1   :  { %2704 = vtanh.f32 %v3207_v32 }
 0x1f7   :  { %v2705_v45 = vpop.eup %2704 }
 0x1f8   :  { %417 = vrot.lane.b32.xlu2 %v2705_v45, %s3012_s17 }
 0x24a   :  { %v450_v51 = vpop.permute.xlu2 %449 }
 0x24b   :  { %v452_v52 = vmul.f32 %v450_v51, %v389_v15 }
 0x24d   :  { %454 = vrot.lane.b32.xlu0 %v452_v52, %s3013_s18 }
 0x252   :  { %v418_v53 = vpop.permute.xlu2 %417 }
 0x253   :  { %v420_v54 = vmul.f32 %v418_v53, %v370_v21 }
 0x255   :  { %422 = vrot.lane.b32.xlu1 %v420_v54, %s3013_s18 }
 0x2bf   :  { %v455_v59 = vpop.permute.xlu0 %454 }
 0x2c0   :  { %2603 = vmatmul.msk.f32.vlgmr.msrb.gmra.mxu3 %vm424_vm9, %v455_v59 }
 0x2c1   :  { %644 = vmatpush.msrb.mxu3 %v3215_v47 }
 0x2c3   :  { %645 = vmatpush.msrb.mxu3 %v3220_v48 }
 0x2c5   :  { %646 = vmatpush.msrb.mxu3 %v3226_v49 }
 0x2c7   :  { %v423_v60 = vpop.permute.xlu1 %422  ;;  %647 = vmatpush.msrb.mxu3 %v3232_v50 }
 0x2c8   :  { %2602 = vmatmul.msk.f32.vlgmr.msrb.gmra.mxu2 %vm424_vm9, %v423_v60 }
 0x2c9   :  { %613 = vmatpush.msrb.mxu2 %v3243_v55 }
 0x2cb   :  { %614 = vmatpush.msrb.mxu2 %v3248_v56 }
 0x2cd   :  { %615 = vmatpush.msrb.mxu2 %v3254_v57 }
 0x2cf   :  { %616 = vmatpush.msrb.mxu2 %v3260_v58 }
 0x343   :  { %v475_v61 = vpop.f32.mrf.mxu3 }
 0x344   :  { %2605 = vmatmul.msk.f32.vlgmr.msra.gmra.mxu3 %vm306_vm10, %v475_v61 }
 0x345   :  { %695 = vmatpush.msra.mxu3 %v3114_v16 }
 0x347   :  { %696 = vmatpush.msra.mxu3 %v3117_v18 }
 0x34b   :  { %v444_v62 = vpop.f32.mrf.mxu2 }
 0x34c   :  { %2604 = vmatmul.msk.f32.vlgmr.msra.gmra.mxu2 %vm306_vm10, %v444_v62 }
 0x34d   :  { %670 = vmatpush.msra.mxu2 %v3128_v24 }
 0x34f   :  { %671 = vmatpush.msra.mxu2 %v3131_v26 }
 0x3c7   :  { %v524_v0 = vpop.f32.mrf.mxu3 }
 0x3c8   :  { %v527_v1 = vadd.f32 %v524_v0, %v274_v63 }
 0x3ca   :  { %2706 = vtanh.f32 %v527_v1  ;;  %v2607_v8 = vmul.f32 -1.442695, %v527_v1 }
 0x3cf   :  { %v499_v4 = vpop.f32.mrf.mxu2 }
 0x3d0   :  { %v2707_v5 = vpop.eup %2706  ;;  %v502_v6 = vadd.f32 %v499_v4, %v168_v3 }
 0x3d1   :  { %581 = vrot.lane.b32.xlu2 %v2707_v5, %s3012_s17 }
 0x3d2   :  { %2708 = vtanh.f32 %v502_v6  ;;  %v2606_v13 = vmul.f32 -1.442695, %v502_v6 }
 0x3d3   :  { %2710 = vpow2.f32 %v2607_v8 }
 0x3d8   :  { %v2709_v7 = vpop.eup %2708 }
 0x3d9   :  { %569 = vrot.lane.b32.xlu0 %v2709_v7, %s3012_s17  ;;  %v2711_v9 = vpop.eup %2710 }
 0x3da   :  { %v550_v10 = vadd.f32 1.0, %v2711_v9 }
 0x3dc   :  { %2712 = vrcp.f32 %v550_v10  ;;  %v562_v17 = vand.u32 2147483648, %v550_v10  ;;  %vm556_vm12 = vweird.f32 %v550_v10  ;;  %v560_v19 = vand.u32 2147483647, %v550_v10 }
 0x3dd   :  { %2714 = vpow2.f32 %v2606_v13  ;;  %v271_v13 = vadd.f32 %v3191_v44, %v3184_v42 }
 0x3de   :  { %v563_v22 = vor.u32 1.1754944e-38, %v562_v17  ;;  %vm561_vm14 = vcmp.eq.f32.partialorder %v560_v19, 8.507059e+37  ;;  %v170_v19 = vpop.f32.mrf.mxu0 }
 0x3e2   :  { %v2713_v43 = vpop.eup %2712 }
 0x3e3   :  { %v552_v11 = vmul.f32 %v2713_v43, %v550_v10  ;;  %vm557_vm11 = vweird.f32 %v2713_v43  ;;  %v2715_v20 = vpop.eup %2714 }
 0x3e4   :  { %vm558_vm13 = vmor %vm556_vm12, %vm557_vm11  ;;  %v531_v23 = vadd.f32 1.0, %v2715_v20  ;;  %v171_v20 = vadd.f32 %v3196_v46, %v170_v19 }
 0x3e5   :  { %v553_v12 = vsub.f32 1.0, %v552_v11 }
 0x3e6   :  { %2716 = vrcp.f32 %v531_v23  ;;  %v543_v53 = vand.u32 2147483648, %v531_v23  ;;  %vm537_vm0 = vweird.f32 %v531_v23  ;;  %v541_v54 = vand.u32 2147483647, %v531_v23 }
 0x3e7   :  { %v554_v14 = vmul.f32 %v2713_v43, %v553_v12 }
 0x3e8   :  { %v544_v60 = vor.u32 1.1754944e-38, %v543_v53  ;;  %vm542_vm2 = vcmp.eq.f32.partialorder %v541_v54, 8.507059e+37 }
 0x3e9   :  { %v555_v15 = vadd.f32 %v2713_v43, %v554_v14 }
 0x3eb   :  { %v559_v21 = vsel %vm558_vm13, %v2713_v43, %v555_v15 }
 0x3ec   :  { %v564_v25 = vsel %vm561_vm14, %v563_v22, %v559_v21  ;;  %v2717_v30 = vpop.eup %2716 }
 0x3ed   :  { %v533_v31 = vmul.f32 %v2717_v30, %v531_v23  ;;  %vm538_vm15 = vweird.f32 %v2717_v30  ;;  %v578_v0 = vmul.f32 %v564_v25, %v3204_v28 }
 0x3ee   :  { %vm539_vm1 = vmor %vm537_vm0, %vm538_vm15 }
 0x3ef   :  { %v534_v45 = vsub.f32 1.0, %v533_v31 }
 0x3f1   :  { %v535_v51 = vmul.f32 %v2717_v30, %v534_v45 }
 0x3f3   :  { %v536_v52 = vadd.f32 %v2717_v30, %v535_v51 }
 0x3f5   :  { %v540_v59 = vsel %vm539_vm1, %v2717_v30, %v536_v52 }
 0x3f6   :  { %v545_v62 = vsel %vm542_vm2, %v544_v60, %v540_v59 }
 0x3f7   :  { %v566_v3 = vmul.f32 %v545_v62, %v3207_v32 }
 0x42b   :  { %v582_v27 = vpop.permute.xlu2 %581 }
 0x42c   :  { %v584_v29 = vmul.f32 %v582_v27, %v564_v25 }
 0x42e   :  { %586 = vrot.lane.b32.xlu1 %v584_v29, %s3013_s18 }
 0x44b   :  { %v570_v61 = vpop.permute.xlu0 %569 }
 0x44c   :  { %v572_v63 = vmul.f32 %v570_v61, %v545_v62 }
 0x44e   :  { %574 = vrot.lane.b32.xlu2 %v572_v63, %s3013_s18 }
 0x4a0   :  { %v587_v1 = vpop.permute.xlu1 %586 }
 0x4a1   :  { %v3290_v2 = vadd.f32 %v587_v1, %v578_v0 }
 0x4a3   :  { %2718 = vtanh.f32 %v3290_v2 }
 0x4a8   :  { %v575_v4 = vpop.permute.xlu2 %574 }
 0x4a9   :  { %v2719_v5 = vpop.eup %2718  ;;  %v3294_v6 = vadd.f32 %v575_v4, %v566_v3 }
 0x4aa   :  { %623 = vrot.lane.b32.xlu0 %v2719_v5, %s3012_s17 }
 0x4ab   :  { %2720 = vtanh.f32 %v3294_v6 }
 0x4b1   :  { %v2721_v7 = vpop.eup %2720 }
 0x4b2   :  { %592 = vrot.lane.b32.xlu1 %v2721_v7, %s3012_s17 }
 0x51c   :  { %v624_v8 = vpop.permute.xlu0 %623 }
 0x51d   :  { %v626_v28 = vmul.f32 %v624_v8, %v564_v25 }
 0x51f   :  { %628 = vrot.lane.b32.xlu2 %v626_v28, %s3013_s18 }
 0x524   :  { %v593_v9 = vpop.permute.xlu1 %592 }
 0x525   :  { %v595_v10 = vmul.f32 %v593_v9, %v545_v62 }
 0x527   :  { %597 = vrot.lane.b32.xlu0 %v595_v10, %s3013_s18 }
 0x579   :  { %v629_v32 = vpop.permute.xlu2 %628 }
 0x57a   :  { %2609 = vmatmul.msk.f32.vlgmr.msrb.gmra.mxu3 %vm424_vm9, %v629_v32 }
 0x57b   :  { %818 = vmatpush.msrb.mxu3 %v3215_v47 }
 0x57d   :  { %819 = vmatpush.msrb.mxu3 %v3220_v48 }
 0x57f   :  { %820 = vmatpush.msrb.mxu3 %v3226_v49 }
 0x581   :  { %821 = vmatpush.msrb.mxu3 %v3232_v50 }
 0x599   :  { %v598_v43 = vpop.permute.xlu0 %597 }
 0x59a   :  { %2608 = vmatmul.msk.f32.vlgmr.msrb.gmra.mxu2 %vm424_vm9, %v598_v43 }
 0x59b   :  { %787 = vmatpush.msrb.mxu2 %v3243_v55 }
 0x59d   :  { %788 = vmatpush.msrb.mxu2 %v3248_v56 }
 0x59f   :  { %789 = vmatpush.msrb.mxu2 %v3254_v57 }
 0x5a1   :  { %790 = vmatpush.msrb.mxu2 %v3260_v58 }
 0x5fd   :  { %v649_v11 = vpop.f32.mrf.mxu3 }
 0x5fe   :  { %2611 = vmatmul.msk.f32.vlgmr.msra.gmra.mxu3 %vm306_vm10, %v649_v11 }
 0x5ff   :  { %869 = vmatpush.msra.mxu3 %v3114_v16 }
 0x601   :  { %870 = vmatpush.msra.mxu3 %v3117_v18 }
 0x61d   :  { %v618_v12 = vpop.f32.mrf.mxu2 }
 0x61e   :  { %2610 = vmatmul.msk.f32.vlgmr.msra.gmra.mxu2 %vm306_vm10, %v618_v12 }
 0x61f   :  { %844 = vmatpush.msra.mxu2 %v3128_v24 }
 0x621   :  { %845 = vmatpush.msra.mxu2 %v3131_v26 }
 0x681   :  { %v698_v14 = vpop.f32.mrf.mxu3 }
 0x682   :  { %v701_v15 = vadd.f32 %v698_v14, %v271_v13 }
 0x684   :  { %2722 = vtanh.f32 %v701_v15  ;;  %v2613_v25 = vmul.f32 -1.442695, %v701_v15 }
 0x68a   :  { %v2723_v17 = vpop.eup %2722 }
 0x68b   :  { %755 = vrot.lane.b32.xlu1 %v2723_v17, %s3012_s17 }
 0x6a1   :  { %v673_v21 = vpop.f32.mrf.mxu2 }
 0x6a2   :  { %v676_v22 = vadd.f32 %v673_v21, %v171_v20 }
 0x6a4   :  { %2724 = vtanh.f32 %v676_v22  ;;  %v2612_v27 = vmul.f32 -1.442695, %v676_v22 }
 0x6a5   :  { %2726 = vpow2.f32 %v2613_v25 }
 0x6a6   :  { %2728 = vpow2.f32 %v2612_v27 }
 0x6aa   :  { %v2725_v23 = vpop.eup %2724 }
 0x6ab   :  { %743 = vrot.lane.b32.xlu2 %v2725_v23, %s3012_s17  ;;  %v2727_v29 = vpop.eup %2726 }
 0x6ac   :  { %v724_v42 = vadd.f32 1.0, %v2727_v29  ;;  %v2729_v30 = vpop.eup %2728 }
 0x6ad   :  { %v705_v31 = vadd.f32 1.0, %v2729_v30 }
 0x6ae   :  { %2730 = vrcp.f32 %v724_v42  ;;  %v736_v62 = vand.u32 2147483648, %v724_v42  ;;  %vm730_vm4 = vweird.f32 %v724_v42  ;;  %v734_v63 = vand.u32 2147483647, %v724_v42 }
 0x6af   :  { %2732 = vrcp.f32 %v705_v31  ;;  %v717_v28 = vand.u32 2147483648, %v705_v31  ;;  %vm711_vm8 = vweird.f32 %v705_v31  ;;  %v715_v9 = vand.u32 2147483647, %v705_v31 }
 0x6b0   :  { %v737_v3 = vor.u32 1.1754944e-38, %v736_v62  ;;  %vm735_vm6 = vcmp.eq.f32.partialorder %v734_v63, 8.507059e+37 }
 0x6b1   :  { %v718_v32 = vor.u32 1.1754944e-38, %v717_v28  ;;  %vm716_vm12 = vcmp.eq.f32.partialorder %v715_v9, 8.507059e+37 }
 0x6b4   :  { %v2731_v45 = vpop.eup %2730 }
 0x6b5   :  { %v726_v51 = vmul.f32 %v2731_v45, %v724_v42  ;;  %v2733_v53 = vpop.eup %2732  ;;  %vm731_vm3 = vweird.f32 %v2731_v45 }
 0x6b6   :  { %v707_v59 = vmul.f32 %v2733_v53, %v705_v31  ;;  %vm732_vm5 = vmor %vm730_vm4, %vm731_vm3  ;;  %vm712_vm7 = vweird.f32 %v2733_v53  ;;  %v268_v31 = vadd.f32 %v3191_v44, %v3182_v41 }
 0x6b7   :  { %v727_v52 = vsub.f32 1.0, %v726_v51  ;;  %vm713_vm11 = vmor %vm711_vm8, %vm712_vm7 }
 0x6b8   :  { %v708_v61 = vsub.f32 1.0, %v707_v59 }
 0x6b9   :  { %v728_v54 = vmul.f32 %v2731_v45, %v727_v52  ;;  %v173_v52 = vpop.f32.mrf.mxu0 }
 0x6ba   :  { %v709_v1 = vmul.f32 %v2733_v53, %v708_v61 }
 0x6bb   :  { %v729_v60 = vadd.f32 %v2731_v45, %v728_v54 }
 0x6bc   :  { %v710_v8 = vadd.f32 %v2733_v53, %v709_v1 }
 0x6bd   :  { %v733_v0 = vsel %vm732_vm5, %v2731_v45, %v729_v60 }
 0x6be   :  { %v738_v5 = vsel %vm735_vm6, %v737_v3, %v733_v0  ;;  %v714_v10 = vsel %vm713_vm11, %v2733_v53, %v710_v8  ;;  %v174_v53 = vadd.f32 %v3196_v46, %v173_v52 }
 0x6bf   :  { %v719_v43 = vsel %vm716_vm12, %v718_v32, %v714_v10  ;;  %v752_v13 = vmul.f32 %v738_v5, %v3290_v2 }
 0x6c0   :  { %v740_v17 = vmul.f32 %v719_v43, %v3294_v6 }
 0x6fd   :  { %v756_v4 = vpop.permute.xlu1 %755 }
 0x6fe   :  { %v758_v7 = vmul.f32 %v756_v4, %v738_v5 }
 0x700   :  { %760 = vrot.lane.b32.xlu0 %v758_v7, %s3013_s18 }
 0x705   :  { %v744_v11 = vpop.permute.xlu2 %743 }
 0x706   :  { %v746_v12 = vmul.f32 %v744_v11, %v719_v43 }
 0x708   :  { %748 = vrot.lane.b32.xlu1 %v746_v12, %s3013_s18 }
 0x772   :  { %v761_v14 = vpop.permute.xlu0 %760 }
 0x773   :  { %v3325_v15 = vadd.f32 %v761_v14, %v752_v13 }
 0x775   :  { %2734 = vtanh.f32 %v3325_v15 }
 0x77a   :  { %v749_v19 = vpop.permute.xlu1 %748 }
 0x77b   :  { %v2735_v20 = vpop.eup %2734  ;;  %v3329_v21 = vadd.f32 %v749_v19, %v740_v17 }
 0x77c   :  { %797 = vrot.lane.b32.xlu2 %v2735_v20, %s3012_s17 }
 0x77d   :  { %2736 = vtanh.f32 %v3329_v21 }
 0x783   :  { %v2737_v22 = vpop.eup %2736 }
 0x784   :  { %766 = vrot.lane.b32.xlu0 %v2737_v22, %s3012_s17 }
 0x7d6   :  { %v798_v23 = vpop.permute.xlu2 %797 }
 0x7d7   :  { %v800_v2 = vmul.f32 %v798_v23, %v738_v5 }
 0x7d9   :  { %802 = vrot.lane.b32.xlu1 %v800_v2, %s3013_s18 }
 0x7f6   :  { %v767_v25 = vpop.permute.xlu0 %766 }
 0x7f7   :  { %v769_v27 = vmul.f32 %v767_v25, %v719_v43 }
 0x7f9   :  { %771 = vrot.lane.b32.xlu2 %v769_v27, %s3013_s18 }
 0x84b   :  { %v803_v6 = vpop.permute.xlu1 %802 }
 0x84c   :  { %2615 = vmatmul.msk.f32.vlgmr.msrb.gmra.mxu3 %vm424_vm9, %v803_v6 }
 0x84d   :  { %992 = vmatpush.msrb.mxu3 %v3215_v47 }
 0x84f   :  { %993 = vmatpush.msrb.mxu3 %v3220_v48 }
 0x851   :  { %994 = vmatpush.msrb.mxu3 %v3226_v49 }
 0x853   :  { %v772_v29 = vpop.permute.xlu2 %771  ;;  %995 = vmatpush.msrb.mxu3 %v3232_v50 }
 0x854   :  { %2614 = vmatmul.msk.f32.vlgmr.msrb.gmra.mxu2 %vm424_vm9, %v772_v29 }
 0x855   :  { %961 = vmatpush.msrb.mxu2 %v3243_v55 }
 0x857   :  { %962 = vmatpush.msrb.mxu2 %v3248_v56 }
 0x859   :  { %963 = vmatpush.msrb.mxu2 %v3254_v57 }
 0x85b   :  { %964 = vmatpush.msrb.mxu2 %v3260_v58 }
 0x8cf   :  { %v823_v42 = vpop.f32.mrf.mxu3 }
 0x8d0   :  { %2617 = vmatmul.msk.f32.vlgmr.msra.gmra.mxu3 %vm306_vm10, %v823_v42 }
 0x8d1   :  { %1043 = vmatpush.msra.mxu3 %v3114_v16 }
 0x8d3   :  { %1044 = vmatpush.msra.mxu3 %v3117_v18 }
 0x8d7   :  { %v792_v30 = vpop.f32.mrf.mxu2 }
 0x8d8   :  { %2616 = vmatmul.msk.f32.vlgmr.msra.gmra.mxu2 %vm306_vm10, %v792_v30 }
 0x8d9   :  { %1018 = vmatpush.msra.mxu2 %v3128_v24 }
 0x8db   :  { %1019 = vmatpush.msra.mxu2 %v3131_v26 }
 0x953   :  { %v872_v45 = vpop.f32.mrf.mxu3 }
 0x954   :  { %v875_v51 = vadd.f32 %v872_v45, %v268_v31 }
 0x956   :  { %2738 = vtanh.f32 %v875_v51  ;;  %v2619_v62 = vmul.f32 -1.442695, %v875_v51 }
 0x95b   :  { %v847_v54 = vpop.f32.mrf.mxu2 }
 0x95c   :  { %v2739_v59 = vpop.eup %2738  ;;  %v850_v60 = vadd.f32 %v847_v54, %v174_v53 }
 0x95d   :  { %929 = vrot.lane.b32.xlu0 %v2739_v59, %s3012_s17 }
 0x95e   :  { %2740 = vtanh.f32 %v850_v60  ;;  %v2618_v63 = vmul.f32 -1.442695, %v850_v60 }
 0x95f   :  { %2742 = vpow2.f32 %v2619_v62 }
 0x960   :  { %2744 = vpow2.f32 %v2618_v63 }
 0x964   :  { %v2741_v61 = vpop.eup %2740 }
 0x965   :  { %917 = vrot.lane.b32.xlu1 %v2741_v61, %s3012_s17  ;;  %v2743_v0 = vpop.eup %2742 }
 0x966   :  { %v898_v41 = vadd.f32 1.0, %v2743_v0  ;;  %v2745_v1 = vpop.eup %2744 }
 0x967   :  { %v879_v3 = vadd.f32 1.0, %v2745_v1  ;;  %v265_v1 = vadd.f32 %v3191_v44, %v3180_v40 }
 0x968   :  { %2746 = vrcp.f32 %v898_v41  ;;  %v910_v43 = vand.u32 2147483648, %v898_v41  ;;  %vm904_vm14 = vweird.f32 %v898_v41  ;;  %v908_v11 = vand.u32 2147483647, %v898_v41 }
 0x969   :  { %2748 = vrcp.f32 %v879_v3  ;;  %v891_v23 = vand.u32 2147483648, %v879_v3  ;;  %vm885_vm2 = vweird.f32 %v879_v3  ;;  %v889_v2 = vand.u32 2147483647, %v879_v3 }
 0x96a   :  { %v911_v14 = vor.u32 1.1754944e-38, %v910_v43  ;;  %vm909_vm0 = vcmp.eq.f32.partialorder %v908_v11, 8.507059e+37 }
 0x96b   :  { %v892_v27 = vor.u32 1.1754944e-38, %v891_v23  ;;  %vm890_vm4 = vcmp.eq.f32.partialorder %v889_v2, 8.507059e+37 }
 0x96e   :  { %v2747_v4 = vpop.eup %2746 }
 0x96f   :  { %v900_v5 = vmul.f32 %v2747_v4, %v898_v41  ;;  %v2749_v8 = vpop.eup %2748  ;;  %vm905_vm13 = vweird.f32 %v2747_v4 }
 0x970   :  { %v881_v9 = vmul.f32 %v2749_v8, %v879_v3  ;;  %vm906_vm15 = vmor %vm904_vm14, %vm905_vm13  ;;  %vm886_vm1 = vweird.f32 %v2749_v8 }
 0x971   :  { %v901_v7 = vsub.f32 1.0, %v900_v5  ;;  %vm887_vm3 = vmor %vm885_vm2, %vm886_vm1  ;;  %v176_v5 = vpop.f32.mrf.mxu0 }
 0x972   :  { %v882_v32 = vsub.f32 1.0, %v881_v9 }
 0x973   :  { %v902_v28 = vmul.f32 %v2747_v4, %v901_v7  ;;  %v177_v7 = vadd.f32 %v3196_v46, %v176_v5 }
 0x974   :  { %v883_v13 = vmul.f32 %v2749_v8, %v882_v32 }
 0x975   :  { %v903_v10 = vadd.f32 %v2747_v4, %v902_v28 }
 0x976   :  { %v884_v22 = vadd.f32 %v2749_v8, %v883_v13 }
 0x977   :  { %v907_v12 = vsel %vm906_vm15, %v2747_v4, %v903_v10 }
 0x978   :  { %v912_v19 = vsel %vm909_vm0, %v911_v14, %v907_v12  ;;  %v888_v25 = vsel %vm887_vm3, %v2749_v8, %v884_v22 }
 0x979   :  { %v893_v29 = vsel %vm890_vm4, %v892_v27, %v888_v25  ;;  %v926_v30 = vmul.f32 %v912_v19, %v3325_v15 }
 0x97a   :  { %v914_v52 = vmul.f32 %v893_v29, %v3329_v21 }
 0x9cf   :  { %v930_v17 = vpop.permute.xlu0 %929 }
 0x9d0   :  { %v932_v20 = vmul.f32 %v930_v17, %v912_v19 }
 0x9d2   :  { %934 = vrot.lane.b32.xlu2 %v932_v20, %s3013_s18 }
 0x9d7   :  { %v918_v6 = vpop.permute.xlu1 %917 }
 0x9d8   :  { %v920_v42 = vmul.f32 %v918_v6, %v893_v29 }
 0x9da   :  { %922 = vrot.lane.b32.xlu0 %v920_v42, %s3013_s18 }
 0xa2c   :  { %v935_v31 = vpop.permute.xlu2 %934 }
 0xa2d   :  { %v3360_v45 = vadd.f32 %v935_v31, %v926_v30 }
 0xa2f   :  { %2750 = vtanh.f32 %v3360_v45 }
 0xa35   :  { %v2751_v51 = vpop.eup %2750 }
 0xa36   :  { %971 = vrot.lane.b32.xlu1 %v2751_v51, %s3012_s17 }
 0xa4c   :  { %v923_v53 = vpop.permute.xlu0 %922 }
 0xa4d   :  { %v3365_v54 = vadd.f32 %v923_v53, %v914_v52 }
 0xa4f   :  { %2752 = vtanh.f32 %v3365_v54 }
 0xa55   :  { %v2753_v59 = vpop.eup %2752 }
 0xa56   :  { %940 = vrot.lane.b32.xlu2 %v2753_v59, %s3012_s17 }
 0xaa8   :  { %v972_v60 = vpop.permute.xlu1 %971 }
 0xaa9   :  { %v974_v15 = vmul.f32 %v972_v60, %v912_v19 }
 0xaab   :  { %976 = vrot.lane.b32.xlu0 %v974_v15, %s3013_s18 }
 0xab0   :  { %v941_v61 = vpop.permute.xlu2 %940 }
 0xab1   :  { %v943_v62 = vmul.f32 %v941_v61, %v893_v29 }
 0xab3   :  { %945 = vrot.lane.b32.xlu1 %v943_v62, %s3013_s18 }
 0xb1d   :  { %v977_v63 = vpop.permute.xlu0 %976 }
 0xb1e   :  { %2621 = vmatmul.msk.f32.vlgmr.msrb.gmra.mxu3 %vm424_vm9, %v977_v63 }
 0xb1f   :  { %1166 = vmatpush.msrb.mxu3 %v3215_v47 }
 0xb21   :  { %1167 = vmatpush.msrb.mxu3 %v3220_v48 }
 0xb23   :  { %1168 = vmatpush.msrb.mxu3 %v3226_v49 }
 0xb25   :  { %v946_v21 = vpop.permute.xlu1 %945  ;;  %1169 = vmatpush.msrb.mxu3 %v3232_v50 }
 0xb26   :  { %2620 = vmatmul.msk.f32.vlgmr.msrb.gmra.mxu2 %vm424_vm9, %v946_v21 }
 0xb27   :  { %1135 = vmatpush.msrb.mxu2 %v3243_v55 }
 0xb29   :  { %1136 = vmatpush.msrb.mxu2 %v3248_v56 }
 0xb2b   :  { %1137 = vmatpush.msrb.mxu2 %v3254_v57 }
 0xb2d   :  { %1138 = vmatpush.msrb.mxu2 %v3260_v58 }
 0xba1   :  { %v997_v0 = vpop.f32.mrf.mxu3 }
 0xba2   :  { %2623 = vmatmul.msk.f32.vlgmr.msra.gmra.mxu3 %vm306_vm10, %v997_v0 }
 0xba3   :  { %1217 = vmatpush.msra.mxu3 %v3114_v16 }
 0xba5   :  { %1218 = vmatpush.msra.mxu3 %v3117_v18 }
 0xba9   :  { %v966_v41 = vpop.f32.mrf.mxu2 }
 0xbaa   :  { %2622 = vmatmul.msk.f32.vlgmr.msra.gmra.mxu2 %vm306_vm10, %v966_v41 }
 0xbab   :  { %1192 = vmatpush.msra.mxu2 %v3128_v24 }
 0xbad   :  { %1193 = vmatpush.msra.mxu2 %v3131_v26 }
 0xc25   :  { %v1046_v3 = vpop.f32.mrf.mxu3 }
 0xc26   :  { %v1049_v4 = vadd.f32 %v1046_v3, %v265_v1 }
 0xc28   :  { %2754 = vtanh.f32 %v1049_v4  ;;  %v2625_v24 = vmul.f32 -1.442695, %v1049_v4 }
 0xc2d   :  { %v1021_v8 = vpop.f32.mrf.mxu2 }
 0xc2e   :  { %v2755_v16 = vpop.eup %2754  ;;  %v1024_v28 = vadd.f32 %v1021_v8, %v177_v7 }
 0xc2f   :  { %1103 = vrot.lane.b32.xlu2 %v2755_v16, %s3012_s17 }
 0xc30   :  { %2756 = vtanh.f32 %v1024_v28  ;;  %v2624_v43 = vmul.f32 -1.442695, %v1024_v28  ;;  %v3417_v28 = vld [vmem:[#allocation7 + $0x18] sm:$0xff] }
 0xc31   :  { %2758 = vpow2.f32 %v2625_v24 }
 0xc36   :  { %v2757_v18 = vpop.eup %2756 }
 0xc37   :  { %1091 = vrot.lane.b32.xlu0 %v2757_v18, %s3012_s17  ;;  %v2759_v26 = vpop.eup %2758  ;;  %v3420_v18 = vld [vmem:[#allocation7 + $0x10] sm:$0xff] }
 0xc38   :  { %v1072_v9 = vadd.f32 1.0, %v2759_v26  ;;  %v3424_v26 = vld [vmem:[#allocation7 + $0x8] sm:$0xff] }
 0xc3a   :  { %2760 = vrcp.f32 %v1072_v9  ;;  %v1084_v13 = vand.u32 2147483648, %v1072_v9  ;;  %vm1078_vm6 = vweird.f32 %v1072_v9  ;;  %v1082_v14 = vand.u32 2147483647, %v1072_v9 }
 0xc3b   :  { %2762 = vpow2.f32 %v2624_v43 }
 0xc3c   :  { %v1085_v20 = vor.u32 1.1754944e-38, %v1084_v13  ;;  %vm1083_vm8 = vcmp.eq.f32.partialorder %v1082_v14, 8.507059e+37 }
 0xc40   :  { %v2761_v40 = vpop.eup %2760 }
 0xc41   :  { %v1074_v10 = vmul.f32 %v2761_v40, %v1072_v9  ;;  %vm1079_vm5 = vweird.f32 %v2761_v40  ;;  %v2763_v17 = vpop.eup %2762  ;;  %v3427_v9 = vld [vmem:[#allocation7] sm:$0xff] }
 0xc42   :  { %vm1080_vm7 = vmor %vm1078_vm6, %vm1079_vm5  ;;  %v1053_v22 = vadd.f32 1.0, %v2763_v17 }
 0xc43   :  { %v1075_v32 = vsub.f32 1.0, %v1074_v10 }
 0xc44   :  { %2764 = vrcp.f32 %v1053_v22  ;;  %v1065_v31 = vand.u32 2147483648, %v1053_v22  ;;  %vm1059_vm12 = vweird.f32 %v1053_v22  ;;  %v1063_v51 = vand.u32 2147483647, %v1053_v22 }
 0xc45   :  { %v1076_v11 = vmul.f32 %v2761_v40, %v1075_v32 }
 0xc46   :  { %v1066_v53 = vor.u32 1.1754944e-38, %v1065_v31  ;;  %vm1064_vm14 = vcmp.eq.f32.partialorder %v1063_v51, 8.507059e+37 }
 0xc47   :  { %v1077_v12 = vadd.f32 %v2761_v40, %v1076_v11  ;;  %v179_v11 = vpop.f32.mrf.mxu0 }
 0xc49   :  { %v1081_v19 = vsel %vm1080_vm7, %v2761_v40, %v1077_v12  ;;  %v262_v40 = vadd.f32 %v3191_v44, %v3178_v39  ;;  %v180_v12 = vadd.f32 %v3196_v46, %v179_v11 }
 0xc4a   :  { %v1086_v23 = vsel %vm1083_vm8, %v1085_v20, %v1081_v19  ;;  %v2765_v27 = vpop.eup %2764 }
 0xc4b   :  { %v1055_v6 = vmul.f32 %v2765_v27, %v1053_v22  ;;  %vm1060_vm11 = vweird.f32 %v2765_v27  ;;  %v1100_v61 = vmul.f32 %v1086_v23, %v3360_v45 }
 0xc4c   :  { %vm1061_vm13 = vmor %vm1059_vm12, %vm1060_vm11 }
 0xc4d   :  { %v1056_v29 = vsub.f32 1.0, %v1055_v6 }
 0xc4f   :  { %v1057_v42 = vmul.f32 %v2765_v27, %v1056_v29 }
 0xc51   :  { %v1058_v30 = vadd.f32 %v2765_v27, %v1057_v42 }
 0xc53   :  { %v1062_v52 = vsel %vm1061_vm13, %v2765_v27, %v1058_v30 }
 0xc54   :  { %v1067_v60 = vsel %vm1064_vm14, %v1066_v53, %v1062_v52 }
 0xc55   :  { %v1088_v21 = vmul.f32 %v1067_v60, %v3365_v54 }
 0xc89   :  { %v1104_v2 = vpop.permute.xlu2 %1103 }
 0xc8a   :  { %v1106_v25 = vmul.f32 %v1104_v2, %v1086_v23 }
 0xc8c   :  { %1108 = vrot.lane.b32.xlu1 %v1106_v25, %s3013_s18 }
 0xca9   :  { %v1092_v59 = vpop.permute.xlu0 %1091 }
 0xcaa   :  { %v1094_v15 = vmul.f32 %v1092_v59, %v1067_v60 }
 0xcac   :  { %1096 = vrot.lane.b32.xlu2 %v1094_v15, %s3013_s18 }
 0xcfe   :  { %v1109_v62 = vpop.permute.xlu1 %1108 }
 0xcff   :  { %v3395_v63 = vadd.f32 %v1109_v62, %v1100_v61 }
 0xd01   :  { %2766 = vtanh.f32 %v3395_v63 }
 0xd06   :  { %v1097_v0 = vpop.permute.xlu2 %1096 }
 0xd07   :  { %v2767_v41 = vpop.eup %2766  ;;  %v3399_v1 = vadd.f32 %v1097_v0, %v1088_v21 }
 0xd08   :  { %1145 = vrot.lane.b32.xlu0 %v2767_v41, %s3012_s17 }
 0xd09   :  { %2768 = vtanh.f32 %v3399_v1 }
 0xd0f   :  { %v2769_v3 = vpop.eup %2768 }
 0xd10   :  { %1114 = vrot.lane.b32.xlu1 %v2769_v3, %s3012_s17 }
 0xd7a   :  { %v1146_v4 = vpop.permute.xlu0 %1145 }
 0xd7b   :  { %v1148_v45 = vmul.f32 %v1146_v4, %v1086_v23 }
 0xd7d   :  { %1150 = vrot.lane.b32.xlu2 %v1148_v45, %s3013_s18 }
 0xd82   :  { %v1115_v5 = vpop.permute.xlu1 %1114 }
 0xd83   :  { %v1117_v7 = vmul.f32 %v1115_v5, %v1067_v60 }
 0xd85   :  { %1119 = vrot.lane.b32.xlu0 %v1117_v7, %s3013_s18 }
 0xdd7   :  { %v1151_v54 = vpop.permute.xlu2 %1150 }
 0xdd8   :  { %2627 = vmatmul.msk.f32.vlgmr.msrb.gmra.mxu3 %vm424_vm9, %v1151_v54 }
 0xdd9   :  { %1340 = vmatpush.msrb.mxu3 %v3215_v47 }
 0xddb   :  { %1341 = vmatpush.msrb.mxu3 %v3220_v48 }
 0xddd   :  { %1342 = vmatpush.msrb.mxu3 %v3226_v49 }
 0xddf   :  { %1343 = vmatpush.msrb.mxu3 %v3232_v50 }
 0xdf7   :  { %v1120_v8 = vpop.permute.xlu0 %1119 }
 0xdf8   :  { %2626 = vmatmul.msk.f32.vlgmr.msrb.gmra.mxu2 %vm424_vm9, %v1120_v8 }
 0xdf9   :  { %1309 = vmatpush.msrb.mxu2 %v3243_v55 }
 0xdfb   :  { %1310 = vmatpush.msrb.mxu2 %v3248_v56 }
 0xdfd   :  { %1311 = vmatpush.msrb.mxu2 %v3254_v57 }
 0xdff   :  { %1312 = vmatpush.msrb.mxu2 %v3260_v58 }
 0xe5b   :  { %v1171_v16 = vpop.f32.mrf.mxu3 }
 0xe5c   :  { %2629 = vmatmul.msk.f32.vlgmr.msra.gmra.mxu3 %vm306_vm10, %v1171_v16 }
 0xe5d   :  { %1391 = vmatpush.msra.mxu3 %v3417_v28 }
 0xe5f   :  { %1392 = vmatpush.msra.mxu3 %v3420_v18 }
 0xe7b   :  { %v1140_v24 = vpop.f32.mrf.mxu2 }
 0xe7c   :  { %2628 = vmatmul.msk.f32.vlgmr.msra.gmra.mxu2 %vm306_vm10, %v1140_v24 }
 0xe7d   :  { %1366 = vmatpush.msra.mxu2 %v3424_v26 }
 0xe7f   :  { %1367 = vmatpush.msra.mxu2 %v3427_v9 }
 0xedf   :  { %v1220_v10 = vpop.f32.mrf.mxu3 }
 0xee0   :  { %v1223_v32 = vadd.f32 %v1220_v10, %v262_v40 }
 0xee2   :  { %2770 = vtanh.f32 %v1223_v32  ;;  %v2631_v19 = vmul.f32 -1.442695, %v1223_v32 }
 0xee8   :  { %v2771_v43 = vpop.eup %2770 }
 0xee9   :  { %1277 = vrot.lane.b32.xlu1 %v2771_v43, %s3012_s17 }
 0xeff   :  { %v1195_v13 = vpop.f32.mrf.mxu2 }
 0xf00   :  { %v1198_v14 = vadd.f32 %v1195_v13, %v180_v12 }
 0xf02   :  { %2772 = vtanh.f32 %v1198_v14  ;;  %v2630_v20 = vmul.f32 -1.442695, %v1198_v14 }
 0xf03   :  { %2774 = vpow2.f32 %v2631_v19  ;;  %v3492_v19 = vld [vmem:[%s3741_s4 + $0x1] ss:$0 sm:$0xff] }
 0xf04   :  { %2776 = vpow2.f32 %v2630_v20  ;;  %v259_v20 = vadd.f32 %v3492_v19, %v3176_v38 }
 0xf08   :  { %v2773_v17 = vpop.eup %2772 }
 0xf09   :  { %1265 = vrot.lane.b32.xlu2 %v2773_v17, %s3012_s17  ;;  %v2775_v22 = vpop.eup %2774  ;;  %v3481_v17 = vld [vmem:[%s3740_s3 + $0x20] sm:$0xff] }
 0xf0a   :  { %v1246_v39 = vadd.f32 1.0, %v2775_v22  ;;  %v2777_v44 = vpop.eup %2776 }
 0xf0b   :  { %v1227_v23 = vadd.f32 1.0, %v2777_v44  ;;  %v182_v44 = vpop.f32.mrf.mxu0 }
 0xf0c   :  { %2778 = vrcp.f32 %v1246_v39  ;;  %v1258_v31 = vand.u32 2147483648, %v1246_v39  ;;  %vm1252_vm0 = vweird.f32 %v1246_v39  ;;  %v1256_v51 = vand.u32 2147483647, %v1246_v39 }
 0xf0d   :  { %2780 = vrcp.f32 %v1227_v23  ;;  %v1239_v21 = vand.u32 2147483648, %v1227_v23  ;;  %vm1233_vm4 = vweird.f32 %v1227_v23  ;;  %v1237_v0 = vand.u32 2147483647, %v1227_v23 }
 0xf0e   :  { %v1259_v59 = vor.u32 1.1754944e-38, %v1258_v31  ;;  %vm1257_vm2 = vcmp.eq.f32.partialorder %v1256_v51, 8.507059e+37 }
 0xf0f   :  { %v1240_v3 = vor.u32 1.1754944e-38, %v1239_v21  ;;  %vm1238_vm6 = vcmp.eq.f32.partialorder %v1237_v0, 8.507059e+37 }
 0xf12   :  { %v2779_v2 = vpop.eup %2778 }
 0xf13   :  { %v1248_v25 = vmul.f32 %v2779_v2, %v1246_v39  ;;  %v2781_v46 = vpop.eup %2780  ;;  %vm1253_vm15 = vweird.f32 %v2779_v2 }
 0xf14   :  { %v1229_v29 = vmul.f32 %v2781_v46, %v1227_v23  ;;  %vm1254_vm1 = vmor %vm1252_vm0, %vm1253_vm15  ;;  %vm1234_vm3 = vweird.f32 %v2781_v46 }
 0xf15   :  { %v1249_v27 = vsub.f32 1.0, %v1248_v25  ;;  %vm1235_vm5 = vmor %vm1233_vm4, %vm1234_vm3 }
 0xf16   :  { %v1230_v30 = vsub.f32 1.0, %v1229_v29 }
 0xf17   :  { %v1250_v6 = vmul.f32 %v2779_v2, %v1249_v27 }
 0xf18   :  { %v1231_v53 = vmul.f32 %v2781_v46, %v1230_v30 }
 0xf19   :  { %v1251_v42 = vadd.f32 %v2779_v2, %v1250_v6 }
 0xf1a   :  { %v1232_v62 = vadd.f32 %v2781_v46, %v1231_v53 }
 0xf1b   :  { %v1255_v52 = vsel %vm1254_vm1, %v2779_v2, %v1251_v42 }
 0xf1c   :  { %v1260_v15 = vsel %vm1257_vm2, %v1259_v59, %v1255_v52  ;;  %v1236_v41 = vsel %vm1235_vm5, %v2781_v46, %v1232_v62 }
 0xf1d   :  { %v1241_v4 = vsel %vm1238_vm6, %v1240_v3, %v1236_v41  ;;  %v1274_v7 = vmul.f32 %v1260_v15, %v3395_v63 }
 0xf1e   :  { %v1262_v16 = vmul.f32 %v1241_v4, %v3399_v1 }
 0xf5b   :  { %v1278_v60 = vpop.permute.xlu1 %1277 }
 0xf5c   :  { %v1280_v61 = vmul.f32 %v1278_v60, %v1260_v15 }
 0xf5e   :  { %1282 = vrot.lane.b32.xlu0 %v1280_v61, %s3013_s18 }
 0xf63   :  { %v1266_v45 = vpop.permute.xlu2 %1265 }
 0xf64   :  { %v1268_v5 = vmul.f32 %v1266_v45, %v1241_v4 }
 0xf66   :  { %1270 = vrot.lane.b32.xlu1 %v1268_v5, %s3013_s18 }
 0xfd0   :  { %v1283_v54 = vpop.permute.xlu0 %1282 }
 0xfd1   :  { %v3438_v8 = vadd.f32 %v1283_v54, %v1274_v7 }
 0xfd3   :  { %2782 = vtanh.f32 %v3438_v8 }
 0xfd8   :  { %v1271_v24 = vpop.permute.xlu1 %1270 }
 0xfd9   :  { %v2783_v40 = vpop.eup %2782  ;;  %v3442_v10 = vadd.f32 %v1271_v24, %v1262_v16 }
 0xfda   :  { %1319 = vrot.lane.b32.xlu2 %v2783_v40, %s3012_s17 }
 0xfdb   :  { %2784 = vtanh.f32 %v3442_v10 }
 0xfe1   :  { %v2785_v32 = vpop.eup %2784 }
 0xfe2   :  { %1288 = vrot.lane.b32.xlu0 %v2785_v32, %s3012_s17 }
0x1034   :  { %v1320_v43 = vpop.permute.xlu2 %1319 }
0x1035   :  { %v1322_v63 = vmul.f32 %v1320_v43, %v1260_v15 }
0x1037   :  { %1324 = vrot.lane.b32.xlu1 %v1322_v63, %s3013_s18 }
0x1054   :  { %v1289_v11 = vpop.permute.xlu0 %1288 }
0x1055   :  { %v1291_v12 = vmul.f32 %v1289_v11, %v1241_v4 }
0x1057   :  { %1293 = vrot.lane.b32.xlu2 %v1291_v12, %s3013_s18 }
0x10a9   :  { %v1325_v1 = vpop.permute.xlu1 %1324 }
0x10aa   :  { %2633 = vmatmul.msk.f32.vlgmr.msrb.gmra.mxu3 %vm424_vm9, %v1325_v1 }
0x10ab   :  { %1514 = vmatpush.msrb.mxu3 %v3215_v47  ;;  %v3463_v47 = vld [vmem:[%s3740_s3 + $0x38] sm:$0xff] }
0x10ad   :  { %1515 = vmatpush.msrb.mxu3 %v3220_v48  ;;  %v3469_v48 = vld [vmem:[%s3740_s3 + $0x30] sm:$0xff] }
0x10af   :  { %1516 = vmatpush.msrb.mxu3 %v3226_v49  ;;  %v3475_v49 = vld [vmem:[%s3740_s3 + $0x28] sm:$0xff] }
0x10b1   :  { %v1294_v13 = vpop.permute.xlu2 %1293  ;;  %1517 = vmatpush.msrb.mxu3 %v3232_v50 }
0x10b2   :  { %2632 = vmatmul.msk.f32.vlgmr.msrb.gmra.mxu2 %vm424_vm9, %v1294_v13 }
0x10b3   :  { %1483 = vmatpush.msrb.mxu2 %v3243_v55 }
0x10b5   :  { %1484 = vmatpush.msrb.mxu2 %v3248_v56 }
0x10b7   :  { %1485 = vmatpush.msrb.mxu2 %v3254_v57 }
0x10b9   :  { %1486 = vmatpush.msrb.mxu2 %v3260_v58 }
0x112d   :  { %v1345_v14 = vpop.f32.mrf.mxu3 }
0x112e   :  { %2635 = vmatmul.msk.f32.vlgmr.msra.gmra.mxu3 %vm306_vm10, %v1345_v14 }
0x112f   :  { %1688 = vmatpush.msra.mxu3 %v3463_v47 }
0x1131   :  { %1689 = vmatpush.msra.mxu3 %v3469_v48 }
0x1133   :  { %1690 = vmatpush.msra.mxu3 %v3475_v49 }
0x1135   :  { %v1314_v50 = vpop.f32.mrf.mxu2  ;;  %1691 = vmatpush.msra.mxu3 %v3481_v17 }
0x1136   :  { %2634 = vmatmul.msk.f32.vlgmr.msra.gmra.mxu2 %vm306_vm10, %v1314_v50 }
0x1137   :  { %1657 = vmatpush.msra.mxu2 %v3243_v55  ;;  %v3499_v55 = vld [vmem:[%s3741_s4] ss:$0 sm:$0xff]  ;;  %s2560_s4 = sshll.u32 %s3748_s11, 4  ;;  %s2561_s4 = int_to_ptr.hbm [resolvable:$true] %s2560_s4 }
0x1139   :  { %1658 = vmatpush.msra.mxu2 %v3248_v56  ;;  %v183_v56 = vadd.f32 %v3499_v55, %v182_v44 }
0x113b   :  { %1659 = vmatpush.msra.mxu2 %v3254_v57 }
0x113d   :  { %1660 = vmatpush.msra.mxu2 %v3260_v58 }
0x11b1   :  { %v1394_v22 = vpop.f32.mrf.mxu3 }
0x11b2   :  { %v1397_v39 = vadd.f32 %v1394_v22, %v259_v20 }
0x11b4   :  { %2786 = vtanh.f32 %v1397_v39  ;;  %v2637_v38 = vmul.f32 -1.442695, %v1397_v39 }
0x11b9   :  { %v1369_v57 = vpop.f32.mrf.mxu2 }
0x11ba   :  { %v2787_v58 = vpop.eup %2786  ;;  %v1372_v23 = vadd.f32 %v1369_v57, %v183_v56  ;;  %v3527_v56 = vld [vmem:[%s3740_s3 + $0x18] sm:$0xff]  ;;  %v3533_v57 = vld [vmem:[%s3740_s3 + $0x10] sm:$0xff] }
0x11bb   :  { %1451 = vrot.lane.b32.xlu0 %v2787_v58, %s3012_s17  ;;  %v3539_v58 = vld [vmem:[%s3740_s3 + $0x8] sm:$0xff] }
0x11bc   :  { %2788 = vtanh.f32 %v1372_v23  ;;  %v2636_v25 = vmul.f32 -1.442695, %v1372_v23  ;;  %v3545_v23 = vld [vmem:[%s3740_s3] sm:$0xff]  ;;  %s3014_s3 = smov 16  }
0x11bd   :  { %2790 = vpow2.f32 %v2637_v38 }
0x11be   :  { %2792 = vpow2.f32 %v2636_v25  ;;  %v185_v25 = vpop.f32.mrf.mxu0 }
0x11c2   :  { %v2789_v2 = vpop.eup %2788 }
0x11c3   :  { %1439 = vrot.lane.b32.xlu1 %v2789_v2, %s3012_s17  ;;  %v2791_v27 = vpop.eup %2790 }
0x11c4   :  { %v1420_v46 = vadd.f32 1.0, %v2791_v27  ;;  %v2793_v6 = vpop.eup %2792 }
0x11c5   :  { %v1401_v29 = vadd.f32 1.0, %v2793_v6 }
0x11c6   :  { %2794 = vrcp.f32 %v1420_v46  ;;  %v1432_v15 = vand.u32 2147483648, %v1420_v46  ;;  %vm1426_vm8 = vweird.f32 %v1420_v46  ;;  %v1430_v61 = vand.u32 2147483647, %v1420_v46  ;;  %v3554_v27 = vpop.f32.mrf.mxu0 }
0x11c7   :  { %2796 = vrcp.f32 %v1401_v29  ;;  %v1413_v5 = vand.u32 2147483648, %v1401_v29  ;;  %vm1407_vm14 = vweird.f32 %v1401_v29  ;;  %v1411_v7 = vand.u32 2147483647, %v1401_v29 }
0x11c8   :  { %v1433_v0 = vor.u32 1.1754944e-38, %v1432_v15  ;;  %vm1431_vm12 = vcmp.eq.f32.partialorder %v1430_v61, 8.507059e+37 }
0x11c9   :  { %v1414_v16 = vor.u32 1.1754944e-38, %v1413_v5  ;;  %vm1412_vm0 = vcmp.eq.f32.partialorder %v1411_v7, 8.507059e+37 }
0x11cc   :  { %v2795_v42 = vpop.eup %2794 }
0x11cd   :  { %v1422_v30 = vmul.f32 %v2795_v42, %v1420_v46  ;;  %v2797_v51 = vpop.eup %2796  ;;  %vm1427_vm7 = vweird.f32 %v2795_v42 }
0x11ce   :  { %v1403_v53 = vmul.f32 %v2797_v51, %v1401_v29  ;;  %vm1428_vm11 = vmor %vm1426_vm8, %vm1427_vm7  ;;  %vm1408_vm13 = vweird.f32 %v2797_v51  ;;  %v3556_v46 = vpop.f32.mrf.mxu0 }
0x11cf   :  { %v1423_v31 = vsub.f32 1.0, %v1422_v30  ;;  %vm1409_vm15 = vmor %vm1407_vm14, %vm1408_vm13 }
0x11d0   :  { %v1404_v60 = vsub.f32 1.0, %v1403_v53 }
0x11d1   :  { %v1424_v52 = vmul.f32 %v2795_v42, %v1423_v31 }
0x11d2   :  { %v1405_v21 = vmul.f32 %v2797_v51, %v1404_v60 }
0x11d3   :  { %v1425_v59 = vadd.f32 %v2795_v42, %v1424_v52 }
0x11d4   :  { %v1406_v45 = vadd.f32 %v2797_v51, %v1405_v21 }
0x11d5   :  { %v1429_v62 = vsel %vm1428_vm11, %v2795_v42, %v1425_v59  ;;  %v256_v42 = vadd.f32 %v3492_v19, %v3174_v37 }
0x11d6   :  { %v1434_v3 = vsel %vm1431_vm12, %v1433_v0, %v1429_v62  ;;  %v1410_v54 = vsel %vm1409_vm15, %v2797_v51, %v1406_v45  ;;  %v3558_v6 = vpop.f32.mrf.mxu0  ;;  %v186_v51 = vadd.f32 %v3499_v55, %v185_v25 }
0x11d7   :  { %v1415_v40 = vsel %vm1412_vm0, %v1414_v16, %v1410_v54  ;;  %v1448_v43 = vmul.f32 %v1434_v3, %v3438_v8 }
0x11d8   :  { %v1436_v1 = vmul.f32 %v1415_v40, %v3442_v10 }
0x11de   :  { %v3560_v29 = vpop.f32.mrf.mxu0 }
0x122d   :  { %v1452_v41 = vpop.permute.xlu0 %1451 }
0x122e   :  { %v1454_v4 = vmul.f32 %v1452_v41, %v1434_v3 }
0x1230   :  { %1456 = vrot.lane.b32.xlu2 %v1454_v4, %s3013_s18 }
0x1235   :  { %v1440_v24 = vpop.permute.xlu1 %1439 }
0x1236   :  { %v1442_v32 = vmul.f32 %v1440_v24, %v1415_v40 }
0x1238   :  { %1444 = vrot.lane.b32.xlu0 %v1442_v32, %s3013_s18 }
0x128a   :  { %v1457_v63 = vpop.permute.xlu2 %1456 }
0x128b   :  { %v3507_v11 = vadd.f32 %v1457_v63, %v1448_v43 }
0x128d   :  { %2798 = vtanh.f32 %v3507_v11 }
0x1293   :  { %v2799_v12 = vpop.eup %2798 }
0x1294   :  { %1493 = vrot.lane.b32.xlu1 %v2799_v12, %s3012_s17 }
0x12aa   :  { %v1445_v13 = vpop.permute.xlu0 %1444 }
0x12ab   :  { %v3512_v14 = vadd.f32 %v1445_v13, %v1436_v1 }
0x12ad   :  { %2800 = vtanh.f32 %v3512_v14 }
0x12b3   :  { %v2801_v50 = vpop.eup %2800 }
0x12b4   :  { %1462 = vrot.lane.b32.xlu2 %v2801_v50, %s3012_s17 }
0x1306   :  { %v1494_v20 = vpop.permute.xlu1 %1493 }
0x1307   :  { %v1496_v8 = vmul.f32 %v1494_v20, %v1434_v3 }
0x1309   :  { %1498 = vrot.lane.b32.xlu0 %v1496_v8, %s3013_s18 }
0x130e   :  { %v1463_v22 = vpop.permute.xlu2 %1462 }
0x130f   :  { %v1465_v39 = vmul.f32 %v1463_v22, %v1415_v40 }
0x1311   :  { %1467 = vrot.lane.b32.xlu1 %v1465_v39, %s3013_s18 }
0x137b   :  { %v1499_v44 = vpop.permute.xlu0 %1498 }
0x137c   :  { %2639 = vmatmul.msk.f32.vlgmr.msrb.gmra.mxu3 %vm424_vm9, %v1499_v44 }
0x137d   :  { %1862 = vmatpush.msrb.mxu3 %v3463_v47 }
0x137f   :  { %1863 = vmatpush.msrb.mxu3 %v3469_v48 }
0x1381   :  { %1864 = vmatpush.msrb.mxu3 %v3475_v49 }
0x1383   :  { %v1468_v10 = vpop.permute.xlu1 %1467  ;;  %1865 = vmatpush.msrb.mxu3 %v3481_v17 }
0x1384   :  { %2638 = vmatmul.msk.f32.vlgmr.msrb.gmra.mxu2 %vm424_vm9, %v1468_v10 }
0x1385   :  { %1831 = vmatpush.msrb.mxu2 %v3527_v56 }
0x1387   :  { %1832 = vmatpush.msrb.mxu2 %v3533_v57 }
0x1389   :  { %1833 = vmatpush.msrb.mxu2 %v3539_v58 }
0x138b   :  { %1834 = vmatpush.msrb.mxu2 %v3545_v23 }
0x13ff   :  { %v1519_v2 = vpop.f32.mrf.mxu3 }
0x1400   :  { %2641 = vmatmul.msk.f32.vlgmr.msrb.gmra.mxu1 %vm306_vm10, %v1519_v2 }
0x1401   :  { %1913 = vmatpush.msrb.mxu1 %v3417_v28 }
0x1403   :  { %1914 = vmatpush.msrb.mxu1 %v3420_v18 }
0x1407   :  { %v1488_v38 = vpop.f32.mrf.mxu2 }
0x1408   :  { %2640 = vmatmul.msk.f32.vlgmr.msrb.gmra.mxu0 %vm306_vm10, %v1488_v38 }
0x1409   :  { %1888 = vmatpush.msrb.mxu0 %v3424_v26 }
0x140b   :  { %1889 = vmatpush.msrb.mxu0 %v3427_v9 }
0x147d   :  { %v1568_v30 = vpop.f32.mrf.mxu1 }
0x147e   :  { %v1571_v31 = vadd.f32 %v1568_v30, %v256_v42 }
0x1480   :  { %2802 = vtanh.f32 %v1571_v31  ;;  %v2643_v15 = vmul.f32 -1.442695, %v1571_v31 }
0x1485   :  { %v1543_v52 = vpop.f32.mrf.mxu0 }
0x1486   :  { %v2803_v53 = vpop.eup %2802  ;;  %v1546_v59 = vadd.f32 %v1543_v52, %v186_v51 }
0x1487   :  { %1625 = vrot.lane.b32.xlu2 %v2803_v53, %s3012_s17 }
0x1488   :  { %2804 = vtanh.f32 %v1546_v59  ;;  %v2642_v41 = vmul.f32 -1.442695, %v1546_v59 }
0x1489   :  { %2806 = vpow2.f32 %v2643_v15 }
0x148e   :  { %v2805_v60 = vpop.eup %2804 }
0x148f   :  { %1613 = vrot.lane.b32.xlu0 %v2805_v60, %s3012_s17  ;;  %v2807_v61 = vpop.eup %2806 }
0x1490   :  { %v1594_v62 = vadd.f32 1.0, %v2807_v61 }
0x1492   :  { %2808 = vrcp.f32 %v1594_v62  ;;  %v1606_v45 = vand.u32 2147483648, %v1594_v62  ;;  %vm1600_vm2 = vweird.f32 %v1594_v62  ;;  %v1604_v5 = vand.u32 2147483647, %v1594_v62 }
0x1493   :  { %2810 = vpow2.f32 %v2642_v41 }
0x1494   :  { %v1607_v16 = vor.u32 1.1754944e-38, %v1606_v45  ;;  %vm1605_vm4 = vcmp.eq.f32.partialorder %v1604_v5, 8.507059e+37 }
0x1498   :  { %v2809_v37 = vpop.eup %2808 }
0x1499   :  { %v1596_v21 = vmul.f32 %v2809_v37, %v1594_v62  ;;  %vm1601_vm1 = vweird.f32 %v2809_v37  ;;  %v2811_v7 = vpop.eup %2810 }
0x149a   :  { %vm1602_vm3 = vmor %vm1600_vm2, %vm1601_vm1  ;;  %v1575_v24 = vadd.f32 1.0, %v2811_v7 }
0x149b   :  { %v1597_v0 = vsub.f32 1.0, %v1596_v21  ;;  %v253_v21 = vadd.f32 %v3492_v19, %v3171_v36 }
0x149c   :  { %2812 = vrcp.f32 %v1575_v24  ;;  %v1587_v20 = vand.u32 2147483648, %v1575_v24  ;;  %vm1581_vm6 = vweird.f32 %v1575_v24  ;;  %v1585_v8 = vand.u32 2147483647, %v1575_v24 }
0x149d   :  { %v1598_v3 = vmul.f32 %v2809_v37, %v1597_v0 }
0x149e   :  { %v1588_v39 = vor.u32 1.1754944e-38, %v1587_v20  ;;  %vm1586_vm8 = vcmp.eq.f32.partialorder %v1585_v8, 8.507059e+37 }
0x149f   :  { %v1599_v4 = vadd.f32 %v2809_v37, %v1598_v3 }
0x14a1   :  { %v1603_v54 = vsel %vm1602_vm3, %v2809_v37, %v1599_v4  ;;  %v189_v4 = vadd.f32 %v3499_v55, %v3554_v27 }
0x14a2   :  { %v1608_v40 = vsel %vm1605_vm4, %v1607_v16, %v1603_v54  ;;  %v2813_v63 = vpop.eup %2812 }
0x14a3   :  { %v1577_v12 = vmul.f32 %v2813_v63, %v1575_v24  ;;  %vm1582_vm5 = vweird.f32 %v2813_v63  ;;  %v1622_v38 = vmul.f32 %v1608_v40, %v3507_v11 }
0x14a4   :  { %vm1583_vm7 = vmor %vm1581_vm6, %vm1582_vm5 }
0x14a5   :  { %v1578_v1 = vsub.f32 1.0, %v1577_v12 }
0x14a7   :  { %v1579_v13 = vmul.f32 %v2813_v63, %v1578_v1 }
0x14a9   :  { %v1580_v50 = vadd.f32 %v2813_v63, %v1579_v13 }
0x14ab   :  { %v1584_v22 = vsel %vm1583_vm7, %v2813_v63, %v1580_v50 }
0x14ac   :  { %v1589_v10 = vsel %vm1586_vm8, %v1588_v39, %v1584_v22 }
0x14ad   :  { %v1610_v30 = vmul.f32 %v1589_v10, %v3512_v14 }
0x14e1   :  { %v1626_v32 = vpop.permute.xlu2 %1625 }
0x14e2   :  { %v1628_v43 = vmul.f32 %v1626_v32, %v1608_v40 }
0x14e4   :  { %1630 = vrot.lane.b32.xlu1 %v1628_v43, %s3013_s18 }
0x1501   :  { %v1614_v44 = vpop.permute.xlu0 %1613 }
0x1502   :  { %v1616_v2 = vmul.f32 %v1614_v44, %v1589_v10 }
0x1504   :  { %1618 = vrot.lane.b32.xlu2 %v1616_v2, %s3013_s18 }
0x1556   :  { %v1631_v25 = vpop.permute.xlu1 %1630 }
0x1557   :  { %v3570_v42 = vadd.f32 %v1631_v25, %v1622_v38 }
0x1559   :  { %2814 = vtanh.f32 %v3570_v42 }
0x155e   :  { %v1619_v31 = vpop.permute.xlu2 %1618 }
0x155f   :  { %v2815_v51 = vpop.eup %2814  ;;  %v3574_v52 = vadd.f32 %v1619_v31, %v1610_v30 }
0x1560   :  { %1667 = vrot.lane.b32.xlu0 %v2815_v51, %s3012_s17 }
0x1561   :  { %2816 = vtanh.f32 %v3574_v52 }
0x1567   :  { %v2817_v53 = vpop.eup %2816 }
0x1568   :  { %1636 = vrot.lane.b32.xlu1 %v2817_v53, %s3012_s17 }
0x15d2   :  { %v1668_v59 = vpop.permute.xlu0 %1667 }
0x15d3   :  { %v1670_v11 = vmul.f32 %v1668_v59, %v1608_v40 }
0x15d5   :  { %1672 = vrot.lane.b32.xlu2 %v1670_v11, %s3013_s18 }
0x15da   :  { %v1637_v60 = vpop.permute.xlu1 %1636 }
0x15db   :  { %v1639_v15 = vmul.f32 %v1637_v60, %v1589_v10 }
0x15dd   :  { %1641 = vrot.lane.b32.xlu0 %v1639_v15, %s3013_s18 }
0x162f   :  { %v1673_v14 = vpop.permute.xlu2 %1672 }
0x1630   :  { %2645 = vmatmul.msk.f32.vlgmr.msra.gmra.mxu3 %vm424_vm9, %v1673_v14 }
0x1631   :  { %2036 = vmatpush.msra.mxu3 %v3463_v47 }
0x1633   :  { %2037 = vmatpush.msra.mxu3 %v3469_v48 }
0x1635   :  { %2038 = vmatpush.msra.mxu3 %v3475_v49 }
0x1637   :  { %2039 = vmatpush.msra.mxu3 %v3481_v17 }
0x164f   :  { %v1642_v61 = vpop.permute.xlu0 %1641 }
0x1650   :  { %2644 = vmatmul.msk.f32.vlgmr.msra.gmra.mxu2 %vm424_vm9, %v1642_v61 }
0x1651   :  { %2005 = vmatpush.msra.mxu2 %v3527_v56 }
0x1653   :  { %2006 = vmatpush.msra.mxu2 %v3533_v57 }
0x1655   :  { %2007 = vmatpush.msra.mxu2 %v3539_v58 }
0x1657   :  { %2008 = vmatpush.msra.mxu2 %v3545_v23 }
0x16b3   :  { %v1693_v62 = vpop.f32.mrf.mxu3 }
0x16b4   :  { %2647 = vmatmul.msk.f32.vlgmr.msra.gmra.mxu1 %vm306_vm10, %v1693_v62 }
0x16b5   :  { %2087 = vmatpush.msra.mxu1 %v3417_v28 }
0x16b7   :  { %2088 = vmatpush.msra.mxu1 %v3420_v18 }
0x16d3   :  { %v1662_v37 = vpop.f32.mrf.mxu2 }
0x16d4   :  { %2646 = vmatmul.msk.f32.vlgmr.msra.gmra.mxu0 %vm306_vm10, %v1662_v37 }
0x16d5   :  { %2062 = vmatpush.msra.mxu0 %v3424_v26 }
0x16d7   :  { %2063 = vmatpush.msra.mxu0 %v3427_v9 }
0x1731   :  { %v1742_v0 = vpop.f32.mrf.mxu1 }
0x1732   :  { %v1745_v41 = vadd.f32 %v1742_v0, %v253_v21 }
0x1734   :  { %2818 = vtanh.f32 %v1745_v41  ;;  %v2649_v54 = vmul.f32 -1.442695, %v1745_v41 }
0x173a   :  { %v2819_v3 = vpop.eup %2818 }
0x173b   :  { %1799 = vrot.lane.b32.xlu1 %v2819_v3, %s3012_s17 }
0x1751   :  { %v1717_v45 = vpop.f32.mrf.mxu0 }
0x1752   :  { %v1720_v5 = vadd.f32 %v1717_v45, %v189_v4 }
0x1754   :  { %2820 = vtanh.f32 %v1720_v5  ;;  %v2648_v16 = vmul.f32 -1.442695, %v1720_v5 }
0x1755   :  { %2822 = vpow2.f32 %v2649_v54 }
0x1756   :  { %2824 = vpow2.f32 %v2648_v16 }
0x175a   :  { %v2821_v7 = vpop.eup %2820 }
0x175b   :  { %1787 = vrot.lane.b32.xlu2 %v2821_v7, %s3012_s17  ;;  %v2823_v24 = vpop.eup %2822 }
0x175c   :  { %v1768_v36 = vadd.f32 1.0, %v2823_v24  ;;  %v2825_v40 = vpop.eup %2824  ;;  %v250_v24 = vadd.f32 %v3492_v19, %v3168_v35 }
0x175d   :  { %v1749_v32 = vadd.f32 1.0, %v2825_v40 }
0x175e   :  { %2826 = vrcp.f32 %v1768_v36  ;;  %v1780_v8 = vand.u32 2147483648, %v1768_v36  ;;  %vm1774_vm12 = vweird.f32 %v1768_v36  ;;  %v1778_v22 = vand.u32 2147483647, %v1768_v36 }
0x175f   :  { %2828 = vrcp.f32 %v1749_v32  ;;  %v1761_v31 = vand.u32 2147483648, %v1749_v32  ;;  %vm1755_vm0 = vweird.f32 %v1749_v32  ;;  %v1759_v51 = vand.u32 2147483647, %v1749_v32 }
0x1760   :  { %v1781_v10 = vor.u32 1.1754944e-38, %v1780_v8  ;;  %vm1779_vm14 = vcmp.eq.f32.partialorder %v1778_v22, 8.507059e+37 }
0x1761   :  { %v1762_v59 = vor.u32 1.1754944e-38, %v1761_v31  ;;  %vm1760_vm2 = vcmp.eq.f32.partialorder %v1759_v51, 8.507059e+37 }
0x1764   :  { %v2827_v43 = vpop.eup %2826 }
0x1765   :  { %v1770_v63 = vmul.f32 %v2827_v43, %v1768_v36  ;;  %v2829_v27 = vpop.eup %2828  ;;  %vm1775_vm11 = vweird.f32 %v2827_v43 }
0x1766   :  { %v1751_v13 = vmul.f32 %v2829_v27, %v1749_v32  ;;  %vm1776_vm13 = vmor %vm1774_vm12, %vm1775_vm11  ;;  %vm1756_vm15 = vweird.f32 %v2829_v27  ;;  %v192_v32 = vadd.f32 %v3499_v55, %v3556_v46 }
0x1767   :  { %v1771_v12 = vsub.f32 1.0, %v1770_v63  ;;  %vm1757_vm1 = vmor %vm1755_vm0, %vm1756_vm15 }
0x1768   :  { %v1752_v20 = vsub.f32 1.0, %v1751_v13 }
0x1769   :  { %v1772_v1 = vmul.f32 %v2827_v43, %v1771_v12 }
0x176a   :  { %v1753_v44 = vmul.f32 %v2829_v27, %v1752_v20 }
0x176b   :  { %v1773_v50 = vadd.f32 %v2827_v43, %v1772_v1 }
0x176c   :  { %v1754_v30 = vadd.f32 %v2829_v27, %v1753_v44 }
0x176d   :  { %v1777_v39 = vsel %vm1776_vm13, %v2827_v43, %v1773_v50 }
0x176e   :  { %v1782_v38 = vsel %vm1779_vm14, %v1781_v10, %v1777_v39  ;;  %v1758_v53 = vsel %vm1757_vm1, %v2829_v27, %v1754_v30 }
0x176f   :  { %v1763_v11 = vsel %vm1760_vm2, %v1762_v59, %v1758_v53  ;;  %v1796_v14 = vmul.f32 %v1782_v38, %v3570_v42 }
0x1770   :  { %v1784_v37 = vmul.f32 %v1763_v11, %v3574_v52 }
0x17ad   :  { %v1800_v2 = vpop.permute.xlu1 %1799 }
0x17ae   :  { %v1802_v25 = vmul.f32 %v1800_v2, %v1782_v38 }
0x17b0   :  { %1804 = vrot.lane.b32.xlu0 %v1802_v25, %s3013_s18 }
0x17b5   :  { %v1788_v60 = vpop.permute.xlu2 %1787 }
0x17b6   :  { %v1790_v15 = vmul.f32 %v1788_v60, %v1763_v11 }
0x17b8   :  { %1792 = vrot.lane.b32.xlu1 %v1790_v15, %s3013_s18 }
0x1822   :  { %v1805_v61 = vpop.permute.xlu0 %1804 }
0x1823   :  { %v3606_v62 = vadd.f32 %v1805_v61, %v1796_v14 }
0x1825   :  { %2830 = vtanh.f32 %v3606_v62 }
0x182a   :  { %v1793_v21 = vpop.permute.xlu1 %1792 }
0x182b   :  { %v2831_v0 = vpop.eup %2830  ;;  %v3610_v41 = vadd.f32 %v1793_v21, %v1784_v37 }
0x182c   :  { %1841 = vrot.lane.b32.xlu2 %v2831_v0, %s3012_s17 }
0x182d   :  { %2832 = vtanh.f32 %v3610_v41 }
0x1833   :  { %v2833_v3 = vpop.eup %2832 }
0x1834   :  { %1810 = vrot.lane.b32.xlu0 %v2833_v3, %s3012_s17 }
0x1886   :  { %v1842_v4 = vpop.permute.xlu2 %1841 }
0x1887   :  { %v1844_v42 = vmul.f32 %v1842_v4, %v1782_v38 }
0x1889   :  { %1846 = vrot.lane.b32.xlu1 %v1844_v42, %s3013_s18 }
0x18a6   :  { %v1811_v45 = vpop.permute.xlu0 %1810 }
0x18a7   :  { %v1813_v5 = vmul.f32 %v1811_v45, %v1763_v11 }
0x18a9   :  { %1815 = vrot.lane.b32.xlu2 %v1813_v5, %s3013_s18 }
0x18fb   :  { %v1847_v52 = vpop.permute.xlu1 %1846 }
0x18fc   :  { %2651 = vmatmul.msk.f32.vlgmr.msrb.gmra.mxu3 %vm424_vm9, %v1847_v52 }
0x18fd   :  { %2210 = vmatpush.msrb.mxu3 %v3463_v47 }
0x18ff   :  { %2211 = vmatpush.msrb.mxu3 %v3469_v48 }
0x1901   :  { %2212 = vmatpush.msrb.mxu3 %v3475_v49 }
0x1903   :  { %v1816_v7 = vpop.permute.xlu2 %1815  ;;  %2213 = vmatpush.msrb.mxu3 %v3481_v17 }
0x1904   :  { %2650 = vmatmul.msk.f32.vlgmr.msrb.gmra.mxu2 %vm424_vm9, %v1816_v7 }
0x1905   :  { %2179 = vmatpush.msrb.mxu2 %v3527_v56 }
0x1907   :  { %2180 = vmatpush.msrb.mxu2 %v3533_v57 }
0x1909   :  { %2181 = vmatpush.msrb.mxu2 %v3539_v58 }
0x190b   :  { %2182 = vmatpush.msrb.mxu2 %v3545_v23 }
0x197f   :  { %v1867_v54 = vpop.f32.mrf.mxu3 }
0x1980   :  { %2653 = vmatmul.msk.f32.vlgmr.msrb.gmra.mxu1 %vm306_vm10, %v1867_v54 }
0x1981   :  { %2261 = vmatpush.msrb.mxu1 %v3417_v28 }
0x1983   :  { %2262 = vmatpush.msrb.mxu1 %v3420_v18 }
0x1987   :  { %v1836_v16 = vpop.f32.mrf.mxu2 }
0x1988   :  { %2652 = vmatmul.msk.f32.vlgmr.msrb.gmra.mxu0 %vm306_vm10, %v1836_v16 }
0x1989   :  { %2236 = vmatpush.msrb.mxu0 %v3424_v26 }
0x198b   :  { %2237 = vmatpush.msrb.mxu0 %v3427_v9 }
0x19fd   :  { %v1916_v36 = vpop.f32.mrf.mxu1 }
0x19fe   :  { %v1919_v40 = vadd.f32 %v1916_v36, %v250_v24 }
0x1a00   :  { %2834 = vtanh.f32 %v1919_v40  ;;  %v2655_v26 = vmul.f32 -1.442695, %v1919_v40 }
0x1a05   :  { %v1891_v43 = vpop.f32.mrf.mxu0 }
0x1a06   :  { %v2835_v28 = vpop.eup %2834  ;;  %v1894_v63 = vadd.f32 %v1891_v43, %v192_v32 }
0x1a07   :  { %1973 = vrot.lane.b32.xlu0 %v2835_v28, %s3012_s17 }
0x1a08   :  { %2836 = vtanh.f32 %v1894_v63  ;;  %v2654_v9 = vmul.f32 -1.442695, %v1894_v63 }
0x1a09   :  { %2838 = vpow2.f32 %v2655_v26 }
0x1a0a   :  { %2840 = vpow2.f32 %v2654_v9 }
0x1a0e   :  { %v2837_v18 = vpop.eup %2836 }
0x1a0f   :  { %1961 = vrot.lane.b32.xlu1 %v2837_v18, %s3012_s17  ;;  %v2839_v12 = vpop.eup %2838 }
0x1a10   :  { %v1942_v35 = vadd.f32 1.0, %v2839_v12  ;;  %v2841_v27 = vpop.eup %2840 }
0x1a11   :  { %v1923_v1 = vadd.f32 1.0, %v2841_v27 }
0x1a12   :  { %2842 = vrcp.f32 %v1942_v35  ;;  %v1954_v10 = vand.u32 2147483648, %v1942_v35  ;;  %vm1948_vm4 = vweird.f32 %v1942_v35  ;;  %v1952_v2 = vand.u32 2147483647, %v1942_v35 }
0x1a13   :  { %2844 = vrcp.f32 %v1923_v1  ;;  %v1935_v11 = vand.u32 2147483648, %v1923_v1  ;;  %vm1929_vm8 = vweird.f32 %v1923_v1  ;;  %v1933_v60 = vand.u32 2147483647, %v1923_v1 }
0x1a14   :  { %v1955_v30 = vor.u32 1.1754944e-38, %v1954_v10  ;;  %vm1953_vm6 = vcmp.eq.f32.partialorder %v1952_v2, 8.507059e+37 }
0x1a15   :  { %v1936_v14 = vor.u32 1.1754944e-38, %v1935_v11  ;;  %vm1934_vm12 = vcmp.eq.f32.partialorder %v1933_v60, 8.507059e+37 }
0x1a18   :  { %v2843_v13 = vpop.eup %2842 }
0x1a19   :  { %v1944_v46 = vmul.f32 %v2843_v13, %v1942_v35  ;;  %v2845_v20 = vpop.eup %2844  ;;  %vm1949_vm3 = vweird.f32 %v2843_v13 }
0x1a1a   :  { %v1925_v22 = vmul.f32 %v2845_v20, %v1923_v1  ;;  %vm1950_vm5 = vmor %vm1948_vm4, %vm1949_vm3  ;;  %vm1930_vm7 = vweird.f32 %v2845_v20 }
0x1a1b   :  { %v1945_v50 = vsub.f32 1.0, %v1944_v46  ;;  %vm1931_vm11 = vmor %vm1929_vm8, %vm1930_vm7 }
0x1a1c   :  { %v1926_v44 = vsub.f32 1.0, %v1925_v22 }
0x1a1d   :  { %v1946_v8 = vmul.f32 %v2843_v13, %v1945_v50 }
0x1a1e   :  { %v1927_v25 = vmul.f32 %v2845_v20, %v1926_v44 }
0x1a1f   :  { %v1947_v39 = vadd.f32 %v2843_v13, %v1946_v8 }
0x1a20   :  { %v1928_v59 = vadd.f32 %v2845_v20, %v1927_v25 }
0x1a21   :  { %v1951_v38 = vsel %vm1950_vm5, %v2843_v13, %v1947_v39 }
0x1a22   :  { %v1956_v51 = vsel %vm1953_vm6, %v1955_v30, %v1951_v38  ;;  %v1932_v15 = vsel %vm1931_vm11, %v2845_v20, %v1928_v59 }
0x1a23   :  { %v1937_v37 = vsel %vm1934_vm12, %v1936_v14, %v1932_v15  ;;  %v1970_v0 = vmul.f32 %v1956_v51, %v3606_v62 }
0x1a24   :  { %v1958_v45 = vmul.f32 %v1937_v37, %v3610_v41 }
0x1a79   :  { %v1974_v31 = vpop.permute.xlu0 %1973 }
0x1a7a   :  { %v1976_v53 = vmul.f32 %v1974_v31, %v1956_v51 }
0x1a7c   :  { %1978 = vrot.lane.b32.xlu2 %v1976_v53, %s3013_s18 }
0x1a81   :  { %v1962_v61 = vpop.permute.xlu1 %1961 }
0x1a82   :  { %v1964_v21 = vmul.f32 %v1962_v61, %v1937_v37 }
0x1a84   :  { %1966 = vrot.lane.b32.xlu0 %v1964_v21, %s3013_s18 }
0x1ad6   :  { %v1979_v3 = vpop.permute.xlu2 %1978 }
0x1ad7   :  { %v3642_v4 = vadd.f32 %v1979_v3, %v1970_v0 }
0x1ad9   :  { %2846 = vtanh.f32 %v3642_v4 }
0x1adf   :  { %v2847_v42 = vpop.eup %2846 }
0x1ae0   :  { %2015 = vrot.lane.b32.xlu1 %v2847_v42, %s3012_s17 }
0x1af6   :  { %v1967_v5 = vpop.permute.xlu0 %1966 }
0x1af7   :  { %v3647_v52 = vadd.f32 %v1967_v5, %v1958_v45 }
0x1af9   :  { %2848 = vtanh.f32 %v3647_v52 }
0x1aff   :  { %v2849_v7 = vpop.eup %2848 }
0x1b00   :  { %1984 = vrot.lane.b32.xlu2 %v2849_v7, %s3012_s17 }
0x1b52   :  { %v2016_v54 = vpop.permute.xlu1 %2015 }
0x1b53   :  { %v2018_v62 = vmul.f32 %v2016_v54, %v1956_v51 }
0x1b55   :  { %2020 = vrot.lane.b32.xlu0 %v2018_v62, %s3013_s18 }
0x1b5a   :  { %v1985_v16 = vpop.permute.xlu2 %1984 }
0x1b5b   :  { %v1987_v24 = vmul.f32 %v1985_v16, %v1937_v37  ;;  %v244_v16 = vadd.f32 %v3492_v19, %v3162_v33 }
0x1b5d   :  { %1989 = vrot.lane.b32.xlu1 %v1987_v24, %s3013_s18 }
0x1bc7   :  { %v2021_v36 = vpop.permute.xlu0 %2020 }
0x1bc8   :  { %2657 = vmatmul.msk.f32.vlgmr.msra.gmra.mxu3 %vm424_vm9, %v2021_v36 }
0x1bc9   :  { %2384 = vmatpush.msra.mxu3 %v3463_v47 }
0x1bcb   :  { %2385 = vmatpush.msra.mxu3 %v3469_v48  ;;  %v247_v48 = vadd.f32 %v3492_v19, %v3165_v34 }
0x1bcd   :  { %2386 = vmatpush.msra.mxu3 %v3475_v49 }
0x1bcf   :  { %v1990_v41 = vpop.permute.xlu1 %1989  ;;  %2387 = vmatpush.msra.mxu3 %v3481_v17 }
0x1bd0   :  { %2656 = vmatmul.msk.f32.vlgmr.msra.gmra.mxu2 %vm424_vm9, %v1990_v41 }
0x1bd1   :  { %2353 = vmatpush.msra.mxu2 %v3527_v56  ;;  %v195_v56 = vadd.f32 %v3499_v55, %v3558_v6 }
0x1bd3   :  { %2354 = vmatpush.msra.mxu2 %v3533_v57 }
0x1bd5   :  { %2355 = vmatpush.msra.mxu2 %v3539_v58 }
0x1bd7   :  { %2356 = vmatpush.msra.mxu2 %v3545_v23 }
0x1c4b   :  { %v2041_v40 = vpop.f32.mrf.mxu3 }
0x1c4c   :  { %2659 = vmatmul.msk.f32.vlgmr.msra.gmra.mxu1 %vm306_vm10, %v2041_v40  ;;  %v198_v40 = vadd.f32 %v3499_v55, %v3560_v29 }
0x1c53   :  { %v2010_v47 = vpop.f32.mrf.mxu2 }
0x1c54   :  { %2658 = vmatmul.msk.f32.vlgmr.msra.gmra.mxu0 %vm306_vm10, %v2010_v47 }
0x1cc9   :  { %v2090_v49 = vpop.f32.mrf.mxu1 }
0x1cca   :  { %v2093_v17 = vadd.f32 %v2090_v49, %v247_v48 }
0x1ccc   :  { %2850 = vtanh.f32 %v2093_v17  ;;  %v2661_v43 = vmul.f32 -1.442695, %v2093_v17 }
0x1cd1   :  { %v2065_v57 = vpop.f32.mrf.mxu0 }
0x1cd2   :  { %v2851_v32 = vpop.eup %2850  ;;  %v2068_v58 = vadd.f32 %v2065_v57, %v195_v56 }
0x1cd3   :  { %2147 = vrot.lane.b32.xlu2 %v2851_v32, %s3012_s17 }
0x1cd4   :  { %2852 = vtanh.f32 %v2068_v58  ;;  %v2660_v9 = vmul.f32 -1.442695, %v2068_v58 }
0x1cd5   :  { %2854 = vpow2.f32 %v2661_v43 }
0x1cda   :  { %v2853_v23 = vpop.eup %2852 }
0x1cdb   :  { %2135 = vrot.lane.b32.xlu0 %v2853_v23, %s3012_s17  ;;  %v2855_v28 = vpop.eup %2854 }
0x1cdc   :  { %v2116_v63 = vadd.f32 1.0, %v2855_v28 }
0x1cde   :  { %2856 = vrcp.f32 %v2116_v63  ;;  %v2128_v35 = vand.u32 2147483648, %v2116_v63  ;;  %vm2122_vm14 = vweird.f32 %v2116_v63  ;;  %v2126_v27 = vand.u32 2147483647, %v2116_v63 }
0x1cdf   :  { %2858 = vpow2.f32 %v2660_v9 }
0x1ce0   :  { %v2129_v46 = vor.u32 1.1754944e-38, %v2128_v35  ;;  %vm2127_vm0 = vcmp.eq.f32.partialorder %v2126_v27, 8.507059e+37 }
0x1ce4   :  { %v2857_v34 = vpop.eup %2856 }
0x1ce5   :  { %v2118_v18 = vmul.f32 %v2857_v34, %v2116_v63  ;;  %vm2123_vm13 = vweird.f32 %v2857_v34  ;;  %v2859_v1 = vpop.eup %2858 }
0x1ce6   :  { %vm2124_vm15 = vmor %vm2122_vm14, %vm2123_vm13  ;;  %v2097_v50 = vadd.f32 1.0, %v2859_v1 }
0x1ce7   :  { %v2119_v26 = vsub.f32 1.0, %v2118_v18 }
0x1ce8   :  { %2860 = vrcp.f32 %v2097_v50  ;;  %v2109_v25 = vand.u32 2147483648, %v2097_v50  ;;  %vm2103_vm2 = vweird.f32 %v2097_v50  ;;  %v2107_v30 = vand.u32 2147483647, %v2097_v50 }
0x1ce9   :  { %v2120_v12 = vmul.f32 %v2857_v34, %v2119_v26 }
0x1cea   :  { %v2110_v51 = vor.u32 1.1754944e-38, %v2109_v25  ;;  %vm2108_vm4 = vcmp.eq.f32.partialorder %v2107_v30, 8.507059e+37 }
0x1ceb   :  { %v2121_v6 = vadd.f32 %v2857_v34, %v2120_v12 }
0x1ced   :  { %v2125_v13 = vsel %vm2124_vm15, %v2857_v34, %v2121_v6  ;;  %vm2428_vm15 = vcmask 203776  }
0x1cee   :  { %v2130_v20 = vsel %vm2127_vm0, %v2129_v46, %v2125_v13  ;;  %v2861_v39 = vpop.eup %2860 }
0x1cef   :  { %v2099_v44 = vmul.f32 %v2861_v39, %v2097_v50  ;;  %vm2104_vm1 = vweird.f32 %v2861_v39  ;;  %v2144_v60 = vmul.f32 %v2130_v20, %v3642_v4 }
0x1cf0   :  { %vm2105_vm3 = vmor %vm2103_vm2, %vm2104_vm1 }
0x1cf1   :  { %v2100_v10 = vsub.f32 1.0, %v2099_v44 }
0x1cf3   :  { %v2101_v2 = vmul.f32 %v2861_v39, %v2100_v10 }
0x1cf5   :  { %v2102_v38 = vadd.f32 %v2861_v39, %v2101_v2 }
0x1cf7   :  { %v2106_v31 = vsel %vm2105_vm3, %v2861_v39, %v2102_v38 }
0x1cf8   :  { %v2111_v59 = vsel %vm2108_vm4, %v2110_v51, %v2106_v31 }
0x1cf9   :  { %v2132_v61 = vmul.f32 %v2111_v59, %v3647_v52 }
0x1d2d   :  { %v2148_v8 = vpop.permute.xlu2 %2147 }
0x1d2e   :  { %v2150_v22 = vmul.f32 %v2148_v8, %v2130_v20 }
0x1d30   :  { %2152 = vrot.lane.b32.xlu1 %v2150_v22, %s3013_s18 }
0x1d4d   :  { %v2136_v53 = vpop.permute.xlu0 %2135 }
0x1d4e   :  { %v2138_v11 = vmul.f32 %v2136_v53, %v2111_v59 }
0x1d50   :  { %2140 = vrot.lane.b32.xlu2 %v2138_v11, %s3013_s18 }
0x1da2   :  { %v2153_v15 = vpop.permute.xlu1 %2152 }
0x1da3   :  { %v3674_v14 = vadd.f32 %v2153_v15, %v2144_v60 }
0x1da5   :  { %2862 = vtanh.f32 %v3674_v14 }
0x1daa   :  { %v2141_v37 = vpop.permute.xlu2 %2140 }
0x1dab   :  { %v2863_v21 = vpop.eup %2862  ;;  %v3678_v0 = vadd.f32 %v2141_v37, %v2132_v61  ;;  %v2400_v37 = vld [vmem:[#allocation9 + $0x18] sm:$0xff] }
0x1dac   :  { %2189 = vrot.lane.b32.xlu0 %v2863_v21, %s3012_s17  ;;  %v2399_v21 = vld [vmem:[#allocation9 + $0x10] sm:$0xff]  ;;  %2420 = vmatpush.msra.mxu0 %v2400_v37 }
0x1dad   :  { %2864 = vtanh.f32 %v3678_v0 }
0x1dae   :  { %2421 = vmatpush.msra.mxu0 %v2399_v21 }
0x1db3   :  { %v2865_v3 = vpop.eup %2864 }
0x1db4   :  { %2158 = vrot.lane.b32.xlu1 %v2865_v3, %s3012_s17  ;;  %v2397_v3 = vld [vmem:[#allocation9] sm:$0xff] }
0x1e1e   :  { %v2190_v42 = vpop.permute.xlu0 %2189 }
0x1e1f   :  { %v2192_v4 = vmul.f32 %v2190_v42, %v2130_v20 }
0x1e21   :  { %2194 = vrot.lane.b32.xlu2 %v2192_v4, %s3013_s18 }
0x1e26   :  { %v2159_v45 = vpop.permute.xlu1 %2158 }
0x1e27   :  { %v2161_v5 = vmul.f32 %v2159_v45, %v2111_v59 }
0x1e29   :  { %2163 = vrot.lane.b32.xlu0 %v2161_v5, %s3013_s18 }
0x1e7b   :  { %v2195_v52 = vpop.permute.xlu2 %2194 }
0x1e7c   :  { %2663 = vmatmul.msk.f32.vlgmr.msrb.gmra.mxu3 %vm424_vm9, %v2195_v52  ;;  %v3015_v52 = vmov 8.0  }
0x1e9b   :  { %v2164_v7 = vpop.permute.xlu0 %2163 }
0x1e9c   :  { %2662 = vmatmul.msk.f32.vlgmr.msrb.gmra.mxu2 %vm424_vm9, %v2164_v7 }
0x1eff   :  { %v2215_v54 = vpop.f32.mrf.mxu3 }
0x1f00   :  { %2665 = vmatmul.msk.f32.vlgmr.msrb.gmra.mxu1 %vm306_vm10, %v2215_v54  ;;  %v2686_v54 = vld [vmem:[%s3743_s6] ss:$0 sm:$0xff] }
0x1f1f   :  { %v2184_v62 = vpop.f32.mrf.mxu2 }
0x1f20   :  { %2664 = vmatmul.msk.f32.vlgmr.msrb.gmra.mxu0 %vm306_vm10, %v2184_v62 }
0x1f7d   :  { %v2264_v24 = vpop.f32.mrf.mxu1 }
0x1f7e   :  { %v2267_v36 = vadd.f32 %v2264_v24, %v244_v16 }
0x1f80   :  { %2866 = vtanh.f32 %v2267_v36  ;;  %v2667_v17 = vmul.f32 -1.442695, %v2267_v36 }
0x1f86   :  { %v2867_v41 = vpop.eup %2866 }
0x1f87   :  { %2321 = vrot.lane.b32.xlu1 %v2867_v41, %s3012_s17 }
0x1f9d   :  { %v2239_v47 = vpop.f32.mrf.mxu0 }
0x1f9e   :  { %v2242_v48 = vadd.f32 %v2239_v47, %v198_v40 }
0x1fa0   :  { %2868 = vtanh.f32 %v2242_v48  ;;  %v2666_v56 = vmul.f32 -1.442695, %v2242_v48 }
0x1fa1   :  { %2870 = vpow2.f32 %v2667_v17 }
0x1fa2   :  { %2872 = vpow2.f32 %v2666_v56 }
0x1fa6   :  { %v2869_v49 = vpop.eup %2868 }
0x1fa7   :  { %2309 = vrot.lane.b32.xlu2 %v2869_v49, %s3012_s17  ;;  %v2871_v57 = vpop.eup %2870 }
0x1fa8   :  { %v2290_v33 = vadd.f32 1.0, %v2871_v57  ;;  %v2873_v19 = vpop.eup %2872 }
0x1fa9   :  { %v2271_v32 = vadd.f32 1.0, %v2873_v19 }
0x1faa   :  { %2874 = vrcp.f32 %v2290_v33  ;;  %v2302_v18 = vand.u32 2147483648, %v2290_v33  ;;  %vm2296_vm6 = vweird.f32 %v2290_v33  ;;  %v2300_v26 = vand.u32 2147483647, %v2290_v33 }
0x1fab   :  { %2876 = vrcp.f32 %v2271_v32  ;;  %v2283_v46 = vand.u32 2147483648, %v2271_v32  ;;  %vm2277_vm12 = vweird.f32 %v2271_v32  ;;  %v2281_v50 = vand.u32 2147483647, %v2271_v32 }
0x1fac   :  { %v2303_v6 = vor.u32 1.1754944e-38, %v2302_v18  ;;  %vm2301_vm8 = vcmp.eq.f32.partialorder %v2300_v26, 8.507059e+37 }
0x1fad   :  { %v2284_v8 = vor.u32 1.1754944e-38, %v2283_v46  ;;  %vm2282_vm14 = vcmp.eq.f32.partialorder %v2281_v50, 8.507059e+37  ;;  %v2517_v50 = vld [vmem:[%s3746_s9 + $0x8] sm:$0xff] }
0x1fb0   :  { %v2875_v58 = vpop.eup %2874 }
0x1fb1   :  { %v2292_v23 = vmul.f32 %v2875_v58, %v2290_v33  ;;  %v2877_v55 = vpop.eup %2876  ;;  %vm2297_vm5 = vweird.f32 %v2875_v58 }
0x1fb2   :  { %v2273_v28 = vmul.f32 %v2877_v55, %v2271_v32  ;;  %vm2298_vm7 = vmor %vm2296_vm6, %vm2297_vm5  ;;  %vm2278_vm11 = vweird.f32 %v2877_v55 }
0x1fb3   :  { %v2293_v43 = vsub.f32 1.0, %v2292_v23  ;;  %vm2279_vm13 = vmor %vm2277_vm12, %vm2278_vm11 }
0x1fb4   :  { %v2274_v34 = vsub.f32 1.0, %v2273_v28 }
0x1fb5   :  { %v2294_v29 = vmul.f32 %v2875_v58, %v2293_v43 }
0x1fb6   :  { %v2275_v12 = vmul.f32 %v2877_v55, %v2274_v34 }
0x1fb7   :  { %v2295_v63 = vadd.f32 %v2875_v58, %v2294_v29 }
0x1fb8   :  { %v2276_v13 = vadd.f32 %v2877_v55, %v2275_v12 }
0x1fb9   :  { %v2299_v9 = vsel %vm2298_vm7, %v2875_v58, %v2295_v63 }
0x1fba   :  { %v2304_v27 = vsel %vm2301_vm8, %v2303_v6, %v2299_v9  ;;  %v2280_v20 = vsel %vm2279_vm13, %v2877_v55, %v2276_v13  ;;  %v2518_v13 = vld [vmem:[%s3746_s9 + $0x10] sm:$0xff]  ;;  %vm2551_vm8 = vcmask 56320  }
0x1fbb   :  { %v2285_v22 = vsel %vm2282_vm14, %v2284_v8, %v2280_v20  ;;  %v2318_v10 = vmul.f32 %v2304_v27, %v3674_v14  ;;  %v2516_v8 = vld [vmem:[%s3746_s9] sm:$0xff] }
0x1fbc   :  { %v2306_v25 = vmul.f32 %v2285_v22, %v3678_v0  ;;  %v2398_v0 = vld [vmem:[#allocation9 + $0x8] sm:$0xff] }
0x1fbd   :  { %2422 = vmatpush.msra.mxu0 %v2398_v0 }
0x1fbf   :  { %2423 = vmatpush.msra.mxu0 %v2397_v3 }
0x1ff9   :  { %v2322_v35 = vpop.permute.xlu1 %2321 }
0x1ffa   :  { %v2324_v1 = vmul.f32 %v2322_v35, %v2304_v27 }
0x1ffc   :  { %2326 = vrot.lane.b32.xlu0 %v2324_v1, %s3013_s18  ;;  %v2519_v1 = vld [vmem:[%s3746_s9 + $0x18] sm:$0x1]  ;;  %s3016_s9 = smov [#allocation10]  }
0x1ffd   :  { %s2558_s23 = sshll.u32 %s3016_s9, 4  ;;  %s2559_s23 = int_to_ptr.vmem [resolvable:$true] %s2558_s23 }
0x2001   :  { %v2310_v39 = vpop.permute.xlu2 %2309 }
0x2002   :  { %v2312_v44 = vmul.f32 %v2310_v39, %v2285_v22 }
0x2004   :  { %2314 = vrot.lane.b32.xlu1 %v2312_v44, %s3013_s18 }
0x206e   :  { %v2327_v2 = vpop.permute.xlu0 %2326 }
0x206f   :  { %v2329_v38 = vadd.f32 %v2327_v2, %v2318_v10  ;;  %v2688_v10 = vld [vmem:[%s3745_s8] ss:$0 sm:$0xff] }
0x2071   :  { %2878 = vtanh.f32 %v2329_v38 }
0x2076   :  { %v2315_v30 = vpop.permute.xlu1 %2314 }
0x2077   :  { %v2879_v31 = vpop.eup %2878  ;;  %v2317_v51 = vadd.f32 %v2315_v30, %v2306_v25 }
0x2078   :  { %2363 = vrot.lane.b32.xlu2 %v2879_v31, %s3012_s17 }
0x2079   :  { %2880 = vtanh.f32 %v2317_v51 }
0x207a   :  { %2882 = vrcp.f32 %v3015_v52 }
0x207f   :  { %v2881_v53 = vpop.eup %2880 }
0x2080   :  { %2332 = vrot.lane.b32.xlu0 %v2881_v53, %s3012_s17  ;;  %v2883_v7 = vpop.eup %2882 }
0x2081   :  { %v2437_v62 = vmul.f32 8.0, %v2883_v7 }
0x2083   :  { %v2438_v36 = vsub.f32 1.0, %v2437_v62 }
0x2085   :  { %v2439_v47 = vmul.f32 %v2883_v7, %v2438_v36 }
0x2087   :  { %v2440_v17 = vadd.f32 %v2883_v7, %v2439_v47 }
0x20d2   :  { %v2364_v59 = vpop.permute.xlu2 %2363 }
0x20d3   :  { %v2366_v11 = vmul.f32 %v2364_v59, %v2304_v27 }
0x20d5   :  { %2368 = vrot.lane.b32.xlu1 %v2366_v11, %s3013_s18 }
0x20f2   :  { %v2333_v60 = vpop.permute.xlu0 %2332 }
0x20f3   :  { %v2335_v15 = vmul.f32 %v2333_v60, %v2285_v22  ;;  %v2687_v22 = vld [vmem:[%s3744_s7] ss:$0 sm:$0xff] }
0x20f5   :  { %2337 = vrot.lane.b32.xlu2 %v2335_v15, %s3013_s18 }
0x2147   :  { %v2369_v14 = vpop.permute.xlu1 %2368 }
0x2148   :  { %2669 = vmatmul.msk.f32.vlgmr.msra.gmra.mxu3 %vm424_vm9, %v2369_v14 }
0x214f   :  { %v2338_v61 = vpop.permute.xlu2 %2337 }
0x2150   :  { %2668 = vmatmul.msk.f32.vlgmr.msra.gmra.mxu2 %vm424_vm9, %v2338_v61 }
0x21cb   :  { %v2389_v42 = vpop.f32.mrf.mxu3 }
0x21cc   :  { %2393 = vrot.lane.b32.xlu0 %v2389_v42, %s3014_s3 }
0x21d3   :  { %v2358_v4 = vpop.f32.mrf.mxu2 }
0x223e   :  { %v2394_v45 = vpop.permute.xlu0 %2393 }
0x223f   :  { %v2396_v5 = vsel %vm306_vm10, %v2358_v4, %v2394_v45  ;;  %vm2527_vm10 = vcmask 1040384  }
0x2240   :  { %2670 = vmatmul.msk.f32.vlgmr.msra.gmra.mxu0 %vm424_vm9, %v2396_v5  ;;  %vm2441_vm9 = vweird.f32 %v2883_v7  ;;  %2671 = vmatpush.msk.msra.mxu1 %vm2527_vm10, %v2519_v1 }
0x2241   :  { %v2442_v33 = vsel %vm2441_vm9, %v2883_v7, %v2440_v17 }
0x2242   :  { %2544 = vmatpush.msra.mxu1 %v2518_v13 }
0x2244   :  { %2545 = vmatpush.msra.mxu1 %v2517_v50 }
0x2246   :  { %2546 = vmatpush.msra.mxu1 %v2516_v8 }
0x22bd   :  { %v2425_v16 = vpop.f32.mrf.mxu0 }
0x22be   :  { %v2426_v24 = vadd.f32 %v2686_v54, %v2425_v16 }
0x22c0   :  { %v2429_v41 = vsel %vm2428_vm15, %v2426_v24, 0.0 }
0x22c1   :  { %v2430_v40 = vrot.slane %v2429_v41, 4 }
0x22c3   :  { %v2431_v48 = vadd.f32 %v2430_v40, %v2429_v41 }
0x22c5   :  { %v2432_v49 = vrot.slane %v2431_v48, 2 }
0x22c7   :  { %v2433_v56 = vadd.f32 %v2432_v49, %v2431_v48 }
0x22c9   :  { %v2434_v57 = vrot.slane %v2433_v56, 1 }
0x22cb   :  { %v2435_v19 = vadd.f32 %v2434_v57, %v2433_v56 }
0x22cd   :  { %v2443_v32 = vmul.f32 %v2442_v33, %v2435_v19 }
0x22cf   :  { %v2444_v58 = vsub.f32 %v2426_v24, %v2443_v32 }
0x22d1   :  { %v2445_v23 = vmul.f32 %v2444_v58, %v2444_v58 }
0x22d3   :  { %v2446_v43 = vsel %vm2428_vm15, %v2445_v23, 0.0 }
0x22d4   :  { %v2447_v55 = vrot.slane %v2446_v43, 4 }
0x22d6   :  { %v2448_v29 = vadd.f32 %v2447_v55, %v2446_v43 }
0x22d8   :  { %v2449_v28 = vrot.slane %v2448_v29, 2 }
0x22da   :  { %v2450_v63 = vadd.f32 %v2449_v28, %v2448_v29 }
0x22dc   :  { %v2451_v34 = vrot.slane %v2450_v63, 1 }
0x22de   :  { %v2452_v18 = vadd.f32 %v2451_v34, %v2450_v63 }
0x22e0   :  { %v2453_v26 = vmul.f32 %v2452_v18, %v2442_v33  ;;  %v2689_v33 = vld [vmem:[%s3747_s10] ss:$0 sm:$0xff] }
0x22e2   :  { %v2454_v9 = vadd.f32 1e-05, %v2453_v26 }
0x22e4   :  { %2884 = vrsqrt.f32 %v2454_v9  ;;  %vm2461_vm1 = vweird.f32 %v2454_v9 }
0x22ea   :  { %v2885_v12 = vpop.eup %2884 }
0x22eb   :  { %v2456_v6 = vmul.f32 %v2885_v12, %v2454_v9  ;;  %vm2462_vm0 = vweird.f32 %v2885_v12 }
0x22ec   :  { %vm2463_vm2 = vmor %vm2461_vm1, %vm2462_vm0 }
0x22ed   :  { %v2457_v35 = vmul.f32 %v2885_v12, %v2456_v6 }
0x22ef   :  { %v2458_v27 = vmul.f32 0.5, %v2457_v35 }
0x22f1   :  { %v2459_v46 = vsub.f32 1.5, %v2458_v27 }
0x22f3   :  { %v2460_v20 = vmul.f32 %v2885_v12, %v2459_v46 }
0x22f5   :  { %v2464_v39 = vsel %vm2463_vm2, %v2885_v12, %v2460_v20 }
0x22f6   :  { %v2465_v44 = vmul.f32 %v2464_v39, %v2444_v58 }
0x22f8   :  { %v2470_v2 = vmul.f32 %v2687_v22, %v2465_v44 }
0x22fa   :  { %v2475_v38 = vadd.f32 %v2688_v10, %v2470_v2 }
0x22fc   :  { %v2477_v25 = vmul.f32 0.70710677, %v2475_v38  ;;  %v2476_v17 = vmul.f32 0.5, %v2475_v38 }
0x22fe   :  { %v2478_v30 = vand.u32 2147483647, %v2477_v25  ;;  %vm2511_vm7 = vcmp.ge.f32.partialorder %v2477_v25, 0.0 }
0x2300   :  { %v2479_v31 = vmul.f32 0.3275911, %v2478_v30  ;;  %v2505_v0 = vsub.f32 0.0, %v2478_v30 }
0x2302   :  { %v2480_v51 = vadd.f32 1.0, %v2479_v31  ;;  %v2506_v45 = vmul.f32 %v2505_v0, %v2478_v30 }
0x2304   :  { %2886 = vrcp.f32 %v2480_v51  ;;  %v2492_v60 = vand.u32 2147483648, %v2480_v51  ;;  %v2490_v14 = vand.u32 2147483647, %v2480_v51  ;;  %vm2486_vm4 = vweird.f32 %v2480_v51 }
0x2305   :  { %v2507_v7 = vmul.f32 1.442695, %v2506_v45 }
0x2306   :  { %v2493_v37 = vor.u32 1.1754944e-38, %v2492_v60  ;;  %vm2491_vm6 = vcmp.eq.f32.partialorder %v2490_v14, 8.507059e+37 }
0x2307   :  { %2888 = vpow2.f32 %v2507_v7 }
0x230a   :  { %v2887_v53 = vpop.eup %2886 }
0x230b   :  { %v2482_v59 = vmul.f32 %v2887_v53, %v2480_v51  ;;  %vm2487_vm3 = vweird.f32 %v2887_v53 }
0x230c   :  { %vm2488_vm5 = vmor %vm2486_vm4, %vm2487_vm3 }
0x230d   :  { %v2483_v11 = vsub.f32 1.0, %v2482_v59  ;;  %v2889_v41 = vpop.eup %2888 }
0x230f   :  { %v2484_v15 = vmul.f32 %v2887_v53, %v2483_v11 }
0x2311   :  { %v2485_v61 = vadd.f32 %v2887_v53, %v2484_v15 }
0x2313   :  { %v2489_v21 = vsel %vm2488_vm5, %v2887_v53, %v2485_v61 }
0x2314   :  { %v2494_v3 = vsel %vm2491_vm6, %v2493_v37, %v2489_v21 }
0x2315   :  { %v2496_v42 = vmul.f32 1.0614054, %v2494_v3 }
0x2317   :  { %v2497_v4 = vadd.f32 -1.4531521, %v2496_v42 }
0x2319   :  { %v2498_v5 = vmul.f32 %v2497_v4, %v2494_v3 }
0x231b   :  { %v2499_v52 = vadd.f32 1.4214138, %v2498_v5 }
0x231d   :  { %v2500_v54 = vmul.f32 %v2499_v52, %v2494_v3 }
0x231f   :  { %v2501_v62 = vadd.f32 -0.28449672, %v2500_v54 }
0x2321   :  { %v2502_v16 = vmul.f32 %v2501_v62, %v2494_v3 }
0x2323   :  { %v2503_v24 = vadd.f32 0.2548296, %v2502_v16 }
0x2325   :  { %v2504_v36 = vmul.f32 %v2503_v24, %v2494_v3 }
0x2327   :  { %v2509_v40 = vmul.f32 %v2889_v41, %v2504_v36 }
0x2329   :  { %v2510_v47 = vsub.f32 1.0, %v2509_v40 }
0x232b   :  { %v2512_v48 = vsub.f32 0.0, %v2510_v47 }
0x232d   :  { %v2513_v49 = vsel %vm2511_vm7, %v2510_v47, %v2512_v48 }
0x232e   :  { %v2514_v56 = vadd.f32 1.0, %v2513_v49 }
0x2330   :  { %v2515_v57 = vmul.f32 %v2514_v56, %v2476_v17 }
0x2332   :  { %2672 = vmatmul.msk.f32.vlgmr.msra.gmra.mxu1 %vm2428_vm15, %v2515_v57 }
0x23af   :  { %v2548_v19 = vpop.f32.mrf.mxu1 }
0x23b0   :  { %v2549_v32 = vadd.f32 %v2689_v33, %v2548_v19 }
0x23b2   :  { %2552 = vst.msk [vmem:[#allocation10] sm:$0xff] %vm2551_vm8, %v2549_v32 }
0x23b3   :  { %2563 = dma.vmem_to_hbm [thread:$0]  %s2559_s23, 128, %s2561_s4, [#allocation6]  }
0x23b4   :  { %3004 = dma.done.wait [#allocation6], 128  }
0x23b5   :  { %3005 = vsyncadd [#allocation6], 4294967168 }
0x23b6   :  { %2568 = vsyncpa [#allocation5], 1 }
0x23b7   :  { %2569 = vsyncpa [#allocation8], 1 }
0x23b8   :  { %2570 = vsyncpa [#allocation6], 1 }

</bundles_post_ra>
